<compile_context>
chip_gen: v7x
topology: tpu7x:2x2x1
jax: 0.10.0
libtpu: 0.0.40
codegen_flags: <defaults>
</compile_context>

<pallas_src>
import functools

import jax
import jax.numpy as jnp
from jax.experimental import pallas as pl
from jax.experimental.pallas import tpu as pltpu

LANE = 128           # TPU lane width (last-dim tile)
SUBLANE_BF16 = 16    # bf16 sublane tile (second-minor dim)


def _round_up(x, m):
    return ((x + m - 1) // m) * m


def _silu(y):
    # SiLU via the EUP: exp + approximate reciprocal both land on the EUP
    # slot instead of a VPU divide sequence.
    return y * pl.reciprocal(1.0 + jnp.exp(-y), approx=True)


def bottleneck_kernel(x_ref, w1_ref, s1_ref, b1_ref, w2_ref, s2_ref, b2_ref,
                      o_ref, pad_ref, *, add):
    # x_ref : (1, H, W, C1p)  f32   one batch element, NHWC, channels padded
    # w1_ref: (C1p, Cmp)      bf16  cv1 1x1 conv weight (channel matmul)
    # s1/b1 : (1, Cmp)        f32   folded BN scale / bias for cv1
    # w2_ref: (9, Cmp, C2p)   bf16  cv2 3x3 conv weight, one (Cmp,C2p) per tap
    # s2/b2 : (1, C2p)        f32   folded BN scale / bias for cv2
    # o_ref : (1, H, W, C2p)  f32
    # pad_ref: VMEM scratch (H+2, Wp2, Cmp) bf16 — zero-padded cv2 input
    _, H, W, C1p = x_ref.shape
    Cmp = w1_ref.shape[1]
    C2p = w2_ref.shape[2]
    Wp2 = pad_ref.shape[1]

    xm = x_ref[0].reshape(H * W, C1p)                       # f32 (shortcut)

    # ---- cv1: 1x1 conv == full-lane channel matmul (bf16 x bf16 -> f32) ----
    y1 = jnp.dot(xm.astype(jnp.bfloat16), w1_ref[...],
                 preferred_element_type=jnp.float32)
    y1 = y1 * s1_ref[...] + b1_ref[...]                     # folded BN (f32)
    y1 = _silu(y1)                                          # (H*W, Cmp) f32

    # ---- write the zero-padded cv2 input with full-width row stores only ----
    # Interior rows carry the left/right halo (and sublane-alignment padding)
    # folded in, so no width-1 masked column stores are needed.  Every store
    # below covers the full (Wp2, Cmp) minor tile => aligned, unmasked vst.
    y1b = y1.astype(jnp.bfloat16).reshape(H, W, Cmp)
    zl = jnp.zeros((H, 1, Cmp), jnp.bfloat16)
    zr = jnp.zeros((H, Wp2 - (W + 1), Cmp), jnp.bfloat16)
    pad_ref[1:H + 1, :, :] = jnp.concatenate([zl, y1b, zr], axis=1)
    zrow = jnp.zeros((1, Wp2, Cmp), jnp.bfloat16)
    pad_ref[0:1, :, :] = zrow                               # top halo row
    pad_ref[H + 1:H + 2, :, :] = zrow                       # bottom halo row
    # (Per-step halo zeroing is kept so the kernel stays correct when the
    #  batch axis is sharded across TensorCores — each core has its own
    #  scratch instance.)

    # ---- cv2: 3x3 conv (stride 1, pad 1) as 9 per-tap accumulating matmuls --
    # No materialized (H*W, 9*Cmp) im2col buffer: each tap is a shifted view
    # of the padded scratch, matmul'd straight into a single f32 accumulator.
    # (On v6e, concatenating the 3 dx-taps per dy to get K=3*Cmp=384 would
    #  fill the 256-deep MXU better at the cost of a 3x-Cmp intermediate.)
    y2 = None
    for dy in range(3):
        for dx in range(3):
            tap = pad_ref[dy:dy + H, dx:dx + W, :].reshape(H * W, Cmp)  # bf16
            part = jnp.dot(tap, w2_ref[dy * 3 + dx],
                           preferred_element_type=jnp.float32)
            y2 = part if y2 is None else y2 + part

    y2 = y2 * s2_ref[...] + b2_ref[...]                     # folded BN (f32)
    y2 = _silu(y2)                                          # (H*W, C2p) f32

    if add:
        y2 = y2 + xm                                        # shortcut (c1==c2)

    o_ref[0] = y2.reshape(H, W, C2p).astype(o_ref.dtype)


def bottleneck_forward(x_nchw, w1, s1, b1, w2_hwio, s2, b2, *, add):
    """YOLOv5 Bottleneck forward (inference-mode BN folded into scale/bias).

    x_nchw : (N, C1, H, W) float32
    w1     : (C1, Cm)        cv1 1x1 weight (IO layout, spatial squeezed)
    s1, b1 : (Cm,)           folded BN scale / bias for cv1
    w2_hwio: (3, 3, Cm, C2)  cv2 3x3 weight, HWIO layout
    s2, b2 : (C2,)           folded BN scale / bias for cv2
    Returns (N, C2, H, W) float32.
    """
    N, C1, H, W = x_nchw.shape
    Cm = w1.shape[1]
    C2 = w2_hwio.shape[3]

    C1p = _round_up(C1, LANE)
    Cmp = _round_up(Cm, LANE)
    C2p = _round_up(C2, LANE)
    Wp2 = _round_up(W + 2, SUBLANE_BF16)      # scratch width, sublane aligned

    # NCHW -> NHWC and zero-pad channels to lane width (128).
    x = jnp.transpose(x_nchw, (0, 2, 3, 1))
    x = jnp.pad(x, ((0, 0), (0, 0), (0, 0), (0, C1p - C1)))

    # Weights go to the MXU in bf16; BN scale/bias stay f32.
    w1p = jnp.pad(w1, ((0, C1p - C1), (0, Cmp - Cm))).astype(jnp.bfloat16)
    s1p = jnp.pad(s1, (0, Cmp - Cm)).reshape(1, Cmp)
    b1p = jnp.pad(b1, (0, Cmp - Cm)).reshape(1, Cmp)

    w2p = jnp.pad(w2_hwio, ((0, 0), (0, 0), (0, Cmp - Cm), (0, C2p - C2)))
    w2p = w2p.reshape(9, Cmp, C2p).astype(jnp.bfloat16)     # one slab per tap
    s2p = jnp.pad(s2, (0, C2p - C2)).reshape(1, C2p)
    b2p = jnp.pad(b2, (0, C2p - C2)).reshape(1, C2p)

    kernel = functools.partial(bottleneck_kernel, add=add)
    out = pl.pallas_call(
        kernel,
        out_shape=jax.ShapeDtypeStruct((N, H, W, C2p), x.dtype),
        grid=(N,),
        in_specs=[
            pl.BlockSpec((1, H, W, C1p), lambda n: (n, 0, 0, 0)),
            pl.BlockSpec((C1p, Cmp), lambda n: (0, 0)),
            pl.BlockSpec((1, Cmp), lambda n: (0, 0)),
            pl.BlockSpec((1, Cmp), lambda n: (0, 0)),
            pl.BlockSpec((9, Cmp, C2p), lambda n: (0, 0, 0)),
            pl.BlockSpec((1, C2p), lambda n: (0, 0)),
            pl.BlockSpec((1, C2p), lambda n: (0, 0)),
        ],
        out_specs=pl.BlockSpec((1, H, W, C2p), lambda n: (n, 0, 0, 0)),
        scratch_shapes=[pltpu.VMEM((H + 2, Wp2, Cmp), jnp.bfloat16)],
        compiler_params=pltpu.CompilerParams(
            dimension_semantics=("parallel",),       # both TCs on v7x
            vmem_limit_bytes=48 * 1024 * 1024),      # fits v7x 64 MiB budget
    )(x, w1p, s1p, b1p, w2p, s2p, b2p)

    out = out[..., :C2]                                # drop padded channels
    return jnp.transpose(out, (0, 3, 1, 2))            # -> NCHW


# ---------------- pure-JAX references (for correctness check) ----------------
def _ref_conv_bn_silu(x, w_oihw, gamma, beta, mean, var, pad, mxu_dtype=None):
    if mxu_dtype is not None:                      # emulate bf16 MXU operands
        x = x.astype(mxu_dtype)
        w_oihw = w_oihw.astype(mxu_dtype)
    y = jax.lax.conv_general_dilated(
        x, w_oihw, window_strides=(1, 1),
        padding=[(pad, pad), (pad, pad)],
        dimension_numbers=("NCHW", "OIHW", "NCHW"),
        preferred_element_type=jnp.float32)
    eps = 1e-5
    scale = gamma / jnp.sqrt(var + eps)
    bias = beta - mean * scale
    y = y * scale[None, :, None, None] + bias[None, :, None, None]
    return y * jax.nn.sigmoid(y)


def _ref_bottleneck(x, p, add, mxu_dtype=None):
    y = _ref_conv_bn_silu(x, p["w1_oihw"], *p["bn1"], pad=0, mxu_dtype=mxu_dtype)
    y = _ref_conv_bn_silu(y, p["w2_oihw"], *p["bn2"], pad=1, mxu_dtype=mxu_dtype)
    return x + y if add else y


if __name__ == "__main__":
    # Bottleneck(c1=4, c2=4, shortcut=True, g=1, e=0.5)  -> c_ = 2
    N, C1, C2, H, W = 2, 4, 4, 16, 16
    E = 0.5
    Cm = int(C2 * E)
    SHORTCUT = True
    ADD = SHORTCUT and (C1 == C2)

    key = jax.random.PRNGKey(0)
    ks = jax.random.split(key, 11)

    x = jax.random.normal(ks[0], (N, C1, H, W), jnp.float32)

    # conv weights in PyTorch OIHW layout (bias=False)
    w1_oihw = jax.random.normal(ks[1], (Cm, C1, 1, 1), jnp.float32) * 0.3
    w2_oihw = jax.random.normal(ks[2], (C2, Cm, 3, 3), jnp.float32) * 0.3

    # BatchNorm parameters / running stats (deterministic, non-trivial)
    bn1 = (jax.random.uniform(ks[3], (Cm,), jnp.float32, 0.5, 1.5),   # gamma
           jax.random.normal(ks[4], (Cm,), jnp.float32) * 0.1,        # beta
           jax.random.normal(ks[5], (Cm,), jnp.float32) * 0.1,        # mean
           jax.random.uniform(ks[6], (Cm,), jnp.float32, 0.5, 1.5))   # var
    bn2 = (jax.random.uniform(ks[7], (C2,), jnp.float32, 0.5, 1.5),
           jax.random.normal(ks[8], (C2,), jnp.float32) * 0.1,
           jax.random.normal(ks[9], (C2,), jnp.float32) * 0.1,
           jax.random.uniform(ks[10], (C2,), jnp.float32, 0.5, 1.5))

    # Fold BN into per-channel scale/bias; reshape weights for the kernel.
    eps = 1e-5
    s1 = bn1[0] / jnp.sqrt(bn1[3] + eps)
    b1 = bn1[1] - bn1[2] * s1
    s2 = bn2[0] / jnp.sqrt(bn2[3] + eps)
    b2 = bn2[1] - bn2[2] * s2

    w1 = jnp.transpose(w1_oihw[:, :, 0, 0], (1, 0))          # (C1, Cm)
    w2_hwio = jnp.transpose(w2_oihw, (2, 3, 1, 0))            # (3, 3, Cm, C2)

    out = bottleneck_forward(x, w1, s1, b1, w2_hwio, s2, b2, add=ADD)
    out = jax.block_until_ready(out)

    params = {"w1_oihw": w1_oihw, "bn1": bn1, "w2_oihw": w2_oihw, "bn2": bn2}
    # Reference 1: same bf16-operand / f32-accumulate math as the kernel.
    ref_bf16 = jax.block_until_ready(
        _ref_bottleneck(x, params, ADD, mxu_dtype=jnp.bfloat16))
    # Reference 2: exact f32 PyTorch-module semantics (loose tolerance only
    # accounts for the intentional bf16 MXU operand cast).
    ref_f32 = jax.block_until_ready(_ref_bottleneck(x, params, ADD))

    assert out.shape == (N, C2, H, W)
    assert jnp.allclose(out, ref_bf16, atol=3e-2, rtol=3e-2), (
        "vs bf16-emulating ref, max abs diff = "
        f"{float(jnp.max(jnp.abs(out - ref_bf16)))}")
    assert jnp.allclose(out, ref_f32, atol=1e-1, rtol=1e-1), (
        "vs f32 ref, max abs diff = "
        f"{float(jnp.max(jnp.abs(out - ref_f32)))}")

    print("KERNEL_OK")
</pallas_src>

<mosaic_0001>
module attributes {stable_mosaic.version = 11 : i64} {
  func.func @bottleneck_kernel(%arg0: i32, %arg1: memref<1x16x16x128xf32, #tpu.memory_space<vmem>>, %arg2: memref<128x128xbf16, #tpu.memory_space<vmem>>, %arg3: memref<1x128xf32, #tpu.memory_space<vmem>>, %arg4: memref<1x128xf32, #tpu.memory_space<vmem>>, %arg5: memref<9x128x128xbf16, #tpu.memory_space<vmem>>, %arg6: memref<1x128xf32, #tpu.memory_space<vmem>>, %arg7: memref<1x128xf32, #tpu.memory_space<vmem>>, %arg8: memref<1x16x16x128xf32, #tpu.memory_space<vmem>>, %arg9: memref<18x32x128xbf16, #tpu.memory_space<vmem>>) attributes {dimension_semantics = [#tpu.dimension_semantics<parallel>], iteration_bounds = array<i64: 2>, scalar_prefetch = 0 : i64, scratch_operands = 1 : i64, tpu.core_type = #tpu.core_type<tc>, window_params = [{transform_indices = @transform_0, window_bounds = array<i64: 1, 16, 16, 128>}, {pipeline_mode = #tpu.pipeline_mode<synchronous>, transform_indices = @transform_1, window_bounds = array<i64: 128, 128>}, {pipeline_mode = #tpu.pipeline_mode<synchronous>, transform_indices = @transform_2, window_bounds = array<i64: 1, 128>}, {pipeline_mode = #tpu.pipeline_mode<synchronous>, transform_indices = @transform_3, window_bounds = array<i64: 1, 128>}, {pipeline_mode = #tpu.pipeline_mode<synchronous>, transform_indices = @transform_4, window_bounds = array<i64: 9, 128, 128>}, {pipeline_mode = #tpu.pipeline_mode<synchronous>, transform_indices = @transform_5, window_bounds = array<i64: 1, 128>}, {pipeline_mode = #tpu.pipeline_mode<synchronous>, transform_indices = @transform_6, window_bounds = array<i64: 1, 128>}, {transform_indices = @transform_7, window_bounds = array<i64: 1, 16, 16, 128>}]} {
    %c0 = arith.constant 0 : index
    %c0_0 = arith.constant 0 : index
    %c0_1 = arith.constant 0 : index
    %c0_2 = arith.constant 0 : index
    %0 = vector.load %arg1[%c0, %c0_0, %c0_1, %c0_2] : memref<1x16x16x128xf32, #tpu.memory_space<vmem>>, vector<1x16x16x128xf32>
    %1 = vector.shape_cast %0 : vector<1x16x16x128xf32> to vector<16x16x128xf32>
    %2 = vector.shape_cast %1 : vector<16x16x128xf32> to vector<256x128xf32>
    %3 = arith.truncf %2 : vector<256x128xf32> to vector<256x128xbf16>
    %c0_3 = arith.constant 0 : index
    %c0_4 = arith.constant 0 : index
    %4 = vector.load %arg2[%c0_3, %c0_4] : memref<128x128xbf16, #tpu.memory_space<vmem>>, vector<128x128xbf16>
    %cst = arith.constant dense<0.000000e+00> : vector<256x128xf32>
    %5 = tpu.matmul %3, %4, %cst {dimension_numbers = #tpu.dot_dimension_numbers<[1], [0], [0], [1], [0, 0, 1, 1], [], []>} : vector<256x128xbf16>, vector<128x128xbf16>, vector<256x128xf32> -> vector<256x128xf32>
    %c0_5 = arith.constant 0 : index
    %c0_6 = arith.constant 0 : index
    %6 = vector.load %arg3[%c0_5, %c0_6] : memref<1x128xf32, #tpu.memory_space<vmem>>, vector<1x128xf32>
    %7 = vector.broadcast %6 : vector<1x128xf32> to vector<256x128xf32>
    %8 = arith.mulf %5, %7 : vector<256x128xf32>
    %c0_7 = arith.constant 0 : index
    %c0_8 = arith.constant 0 : index
    %9 = vector.load %arg4[%c0_7, %c0_8] : memref<1x128xf32, #tpu.memory_space<vmem>>, vector<1x128xf32>
    %10 = vector.broadcast %9 : vector<1x128xf32> to vector<256x128xf32>
    %11 = arith.addf %8, %10 : vector<256x128xf32>
    %cst_9 = arith.constant 0.000000e+00 : f32
    %12 = vector.broadcast %cst_9 : f32 to vector<256x128xf32>
    %13 = arith.subf %12, %11 : vector<256x128xf32>
    %14 = math.exp %13 : vector<256x128xf32>
    %cst_10 = arith.constant 1.000000e+00 : f32
    %15 = vector.broadcast %cst_10 : f32 to vector<256x128xf32>
    %16 = arith.addf %15, %14 : vector<256x128xf32>
    %17 = tpu.reciprocal %16 {approx = true} : vector<256x128xf32> -> vector<256x128xf32>
    %18 = arith.mulf %11, %17 : vector<256x128xf32>
    %19 = arith.truncf %18 : vector<256x128xf32> to vector<256x128xbf16>
    %20 = vector.shape_cast %19 : vector<256x128xbf16> to vector<16x16x128xbf16>
    %cst_11 = arith.constant 0.000000e+00 : bf16
    %21 = vector.broadcast %cst_11 : bf16 to vector<16x1x128xbf16>
    %cst_12 = arith.constant 0.000000e+00 : bf16
    %22 = vector.broadcast %cst_12 : bf16 to vector<16x15x128xbf16>
    %23 = tpu.concatenate %21, %20, %22 in 1 : vector<16x1x128xbf16>, vector<16x16x128xbf16>, vector<16x15x128xbf16> -> vector<16x32x128xbf16>
    %c1 = arith.constant 1 : index
    %c0_13 = arith.constant 0 : index
    %c0_14 = arith.constant 0 : index
    %24 = vector.load %arg9[%c1, %c0_13, %c0_14] : memref<18x32x128xbf16, #tpu.memory_space<vmem>>, vector<16x32x128xbf16>
    tpu.vector_store %arg9[%c1, %c0_13, %c0_14], %23 {strides = array<i32>} : memref<18x32x128xbf16, #tpu.memory_space<vmem>>, vector<16x32x128xbf16>,
    %cst_15 = arith.constant 0.000000e+00 : bf16
    %25 = vector.broadcast %cst_15 : bf16 to vector<1x32x128xbf16>
    %c0_16 = arith.constant 0 : index
    %c0_17 = arith.constant 0 : index
    %c0_18 = arith.constant 0 : index
    %26 = vector.load %arg9[%c0_16, %c0_17, %c0_18] : memref<18x32x128xbf16, #tpu.memory_space<vmem>>, vector<1x32x128xbf16>
    tpu.vector_store %arg9[%c0_16, %c0_17, %c0_18], %25 {strides = array<i32>} : memref<18x32x128xbf16, #tpu.memory_space<vmem>>, vector<1x32x128xbf16>,
    %c17 = arith.constant 17 : index
    %c0_19 = arith.constant 0 : index
    %c0_20 = arith.constant 0 : index
    %27 = vector.load %arg9[%c17, %c0_19, %c0_20] : memref<18x32x128xbf16, #tpu.memory_space<vmem>>, vector<1x32x128xbf16>
    tpu.vector_store %arg9[%c17, %c0_19, %c0_20], %25 {strides = array<i32>} : memref<18x32x128xbf16, #tpu.memory_space<vmem>>, vector<1x32x128xbf16>,
    %c0_21 = arith.constant 0 : index
    %c0_22 = arith.constant 0 : index
    %c0_23 = arith.constant 0 : index
    %28 = vector.load %arg9[%c0_21, %c0_22, %c0_23] : memref<18x32x128xbf16, #tpu.memory_space<vmem>>, vector<16x16x128xbf16>
    %29 = vector.shape_cast %28 : vector<16x16x128xbf16> to vector<256x128xbf16>
    %c0_24 = arith.constant 0 : index
    %c0_25 = arith.constant 0 : index
    %c0_26 = arith.constant 0 : index
    %30 = vector.load %arg5[%c0_24, %c0_25, %c0_26] : memref<9x128x128xbf16, #tpu.memory_space<vmem>>, vector<1x128x128xbf16>
    %31 = vector.shape_cast %30 : vector<1x128x128xbf16> to vector<128x128xbf16>
    %cst_27 = arith.constant dense<0.000000e+00> : vector<256x128xf32>
    %32 = tpu.matmul %29, %31, %cst_27 {dimension_numbers = #tpu.dot_dimension_numbers<[1], [0], [0], [1], [0, 0, 1, 1], [], []>} : vector<256x128xbf16>, vector<128x128xbf16>, vector<256x128xf32> -> vector<256x128xf32>
    %c0_28 = arith.constant 0 : index
    %c1_29 = arith.constant 1 : index
    %c0_30 = arith.constant 0 : index
    %33 = vector.load %arg9[%c0_28, %c1_29, %c0_30] : memref<18x32x128xbf16, #tpu.memory_space<vmem>>, vector<16x16x128xbf16>
    %34 = vector.shape_cast %33 : vector<16x16x128xbf16> to vector<256x128xbf16>
    %c1_31 = arith.constant 1 : index
    %c0_32 = arith.constant 0 : index
    %c0_33 = arith.constant 0 : index
    %35 = vector.load %arg5[%c1_31, %c0_32, %c0_33] : memref<9x128x128xbf16, #tpu.memory_space<vmem>>, vector<1x128x128xbf16>
    %36 = vector.shape_cast %35 : vector<1x128x128xbf16> to vector<128x128xbf16>
    %cst_34 = arith.constant dense<0.000000e+00> : vector<256x128xf32>
    %37 = tpu.matmul %34, %36, %cst_34 {dimension_numbers = #tpu.dot_dimension_numbers<[1], [0], [0], [1], [0, 0, 1, 1], [], []>} : vector<256x128xbf16>, vector<128x128xbf16>, vector<256x128xf32> -> vector<256x128xf32>
    %38 = arith.addf %32, %37 : vector<256x128xf32>
    %c0_35 = arith.constant 0 : index
    %c2 = arith.constant 2 : index
    %c0_36 = arith.constant 0 : index
    %39 = vector.load %arg9[%c0_35, %c2, %c0_36] : memref<18x32x128xbf16, #tpu.memory_space<vmem>>, vector<16x16x128xbf16>
    %40 = vector.shape_cast %39 : vector<16x16x128xbf16> to vector<256x128xbf16>
    %c2_37 = arith.constant 2 : index
    %c0_38 = arith.constant 0 : index
    %c0_39 = arith.constant 0 : index
    %41 = vector.load %arg5[%c2_37, %c0_38, %c0_39] : memref<9x128x128xbf16, #tpu.memory_space<vmem>>, vector<1x128x128xbf16>
    %42 = vector.shape_cast %41 : vector<1x128x128xbf16> to vector<128x128xbf16>
    %cst_40 = arith.constant dense<0.000000e+00> : vector<256x128xf32>
    %43 = tpu.matmul %40, %42, %cst_40 {dimension_numbers = #tpu.dot_dimension_numbers<[1], [0], [0], [1], [0, 0, 1, 1], [], []>} : vector<256x128xbf16>, vector<128x128xbf16>, vector<256x128xf32> -> vector<256x128xf32>
    %44 = arith.addf %38, %43 : vector<256x128xf32>
    %c1_41 = arith.constant 1 : index
    %c0_42 = arith.constant 0 : index
    %c0_43 = arith.constant 0 : index
    %45 = vector.load %arg9[%c1_41, %c0_42, %c0_43] : memref<18x32x128xbf16, #tpu.memory_space<vmem>>, vector<16x16x128xbf16>
    %46 = vector.shape_cast %45 : vector<16x16x128xbf16> to vector<256x128xbf16>
    %c3 = arith.constant 3 : index
    %c0_44 = arith.constant 0 : index
    %c0_45 = arith.constant 0 : index
    %47 = vector.load %arg5[%c3, %c0_44, %c0_45] : memref<9x128x128xbf16, #tpu.memory_space<vmem>>, vector<1x128x128xbf16>
    %48 = vector.shape_cast %47 : vector<1x128x128xbf16> to vector<128x128xbf16>
    %cst_46 = arith.constant dense<0.000000e+00> : vector<256x128xf32>
    %49 = tpu.matmul %46, %48, %cst_46 {dimension_numbers = #tpu.dot_dimension_numbers<[1], [0], [0], [1], [0, 0, 1, 1], [], []>} : vector<256x128xbf16>, vector<128x128xbf16>, vector<256x128xf32> -> vector<256x128xf32>
    %50 = arith.addf %44, %49 : vector<256x128xf32>
    %c1_47 = arith.constant 1 : index
    %c1_48 = arith.constant 1 : index
    %c0_49 = arith.constant 0 : index
    %51 = vector.load %arg9[%c1_47, %c1_48, %c0_49] : memref<18x32x128xbf16, #tpu.memory_space<vmem>>, vector<16x16x128xbf16>
    %52 = vector.shape_cast %51 : vector<16x16x128xbf16> to vector<256x128xbf16>
    %c4 = arith.constant 4 : index
    %c0_50 = arith.constant 0 : index
    %c0_51 = arith.constant 0 : index
    %53 = vector.load %arg5[%c4, %c0_50, %c0_51] : memref<9x128x128xbf16, #tpu.memory_space<vmem>>, vector<1x128x128xbf16>
    %54 = vector.shape_cast %53 : vector<1x128x128xbf16> to vector<128x128xbf16>
    %cst_52 = arith.constant dense<0.000000e+00> : vector<256x128xf32>
    %55 = tpu.matmul %52, %54, %cst_52 {dimension_numbers = #tpu.dot_dimension_numbers<[1], [0], [0], [1], [0, 0, 1, 1], [], []>} : vector<256x128xbf16>, vector<128x128xbf16>, vector<256x128xf32> -> vector<256x128xf32>
    %56 = arith.addf %50, %55 : vector<256x128xf32>
    %c1_53 = arith.constant 1 : index
    %c2_54 = arith.constant 2 : index
    %c0_55 = arith.constant 0 : index
    %57 = vector.load %arg9[%c1_53, %c2_54, %c0_55] : memref<18x32x128xbf16, #tpu.memory_space<vmem>>, vector<16x16x128xbf16>
    %58 = vector.shape_cast %57 : vector<16x16x128xbf16> to vector<256x128xbf16>
    %c5 = arith.constant 5 : index
    %c0_56 = arith.constant 0 : index
    %c0_57 = arith.constant 0 : index
    %59 = vector.load %arg5[%c5, %c0_56, %c0_57] : memref<9x128x128xbf16, #tpu.memory_space<vmem>>, vector<1x128x128xbf16>
    %60 = vector.shape_cast %59 : vector<1x128x128xbf16> to vector<128x128xbf16>
    %cst_58 = arith.constant dense<0.000000e+00> : vector<256x128xf32>
    %61 = tpu.matmul %58, %60, %cst_58 {dimension_numbers = #tpu.dot_dimension_numbers<[1], [0], [0], [1], [0, 0, 1, 1], [], []>} : vector<256x128xbf16>, vector<128x128xbf16>, vector<256x128xf32> -> vector<256x128xf32>
    %62 = arith.addf %56, %61 : vector<256x128xf32>
    %c2_59 = arith.constant 2 : index
    %c0_60 = arith.constant 0 : index
    %c0_61 = arith.constant 0 : index
    %63 = vector.load %arg9[%c2_59, %c0_60, %c0_61] : memref<18x32x128xbf16, #tpu.memory_space<vmem>>, vector<16x16x128xbf16>
    %64 = vector.shape_cast %63 : vector<16x16x128xbf16> to vector<256x128xbf16>
    %c6 = arith.constant 6 : index
    %c0_62 = arith.constant 0 : index
    %c0_63 = arith.constant 0 : index
    %65 = vector.load %arg5[%c6, %c0_62, %c0_63] : memref<9x128x128xbf16, #tpu.memory_space<vmem>>, vector<1x128x128xbf16>
    %66 = vector.shape_cast %65 : vector<1x128x128xbf16> to vector<128x128xbf16>
    %cst_64 = arith.constant dense<0.000000e+00> : vector<256x128xf32>
    %67 = tpu.matmul %64, %66, %cst_64 {dimension_numbers = #tpu.dot_dimension_numbers<[1], [0], [0], [1], [0, 0, 1, 1], [], []>} : vector<256x128xbf16>, vector<128x128xbf16>, vector<256x128xf32> -> vector<256x128xf32>
    %68 = arith.addf %62, %67 : vector<256x128xf32>
    %c2_65 = arith.constant 2 : index
    %c1_66 = arith.constant 1 : index
    %c0_67 = arith.constant 0 : index
    %69 = vector.load %arg9[%c2_65, %c1_66, %c0_67] : memref<18x32x128xbf16, #tpu.memory_space<vmem>>, vector<16x16x128xbf16>
    %70 = vector.shape_cast %69 : vector<16x16x128xbf16> to vector<256x128xbf16>
    %c7 = arith.constant 7 : index
    %c0_68 = arith.constant 0 : index
    %c0_69 = arith.constant 0 : index
    %71 = vector.load %arg5[%c7, %c0_68, %c0_69] : memref<9x128x128xbf16, #tpu.memory_space<vmem>>, vector<1x128x128xbf16>
    %72 = vector.shape_cast %71 : vector<1x128x128xbf16> to vector<128x128xbf16>
    %cst_70 = arith.constant dense<0.000000e+00> : vector<256x128xf32>
    %73 = tpu.matmul %70, %72, %cst_70 {dimension_numbers = #tpu.dot_dimension_numbers<[1], [0], [0], [1], [0, 0, 1, 1], [], []>} : vector<256x128xbf16>, vector<128x128xbf16>, vector<256x128xf32> -> vector<256x128xf32>
    %74 = arith.addf %68, %73 : vector<256x128xf32>
    %c2_71 = arith.constant 2 : index
    %c2_72 = arith.constant 2 : index
    %c0_73 = arith.constant 0 : index
    %75 = vector.load %arg9[%c2_71, %c2_72, %c0_73] : memref<18x32x128xbf16, #tpu.memory_space<vmem>>, vector<16x16x128xbf16>
    %76 = vector.shape_cast %75 : vector<16x16x128xbf16> to vector<256x128xbf16>
    %c8 = arith.constant 8 : index
    %c0_74 = arith.constant 0 : index
    %c0_75 = arith.constant 0 : index
    %77 = vector.load %arg5[%c8, %c0_74, %c0_75] : memref<9x128x128xbf16, #tpu.memory_space<vmem>>, vector<1x128x128xbf16>
    %78 = vector.shape_cast %77 : vector<1x128x128xbf16> to vector<128x128xbf16>
    %cst_76 = arith.constant dense<0.000000e+00> : vector<256x128xf32>
    %79 = tpu.matmul %76, %78, %cst_76 {dimension_numbers = #tpu.dot_dimension_numbers<[1], [0], [0], [1], [0, 0, 1, 1], [], []>} : vector<256x128xbf16>, vector<128x128xbf16>, vector<256x128xf32> -> vector<256x128xf32>
    %80 = arith.addf %74, %79 : vector<256x128xf32>
    %c0_77 = arith.constant 0 : index
    %c0_78 = arith.constant 0 : index
    %81 = vector.load %arg6[%c0_77, %c0_78] : memref<1x128xf32, #tpu.memory_space<vmem>>, vector<1x128xf32>
    %82 = vector.broadcast %81 : vector<1x128xf32> to vector<256x128xf32>
    %83 = arith.mulf %80, %82 : vector<256x128xf32>
    %c0_79 = arith.constant 0 : index
    %c0_80 = arith.constant 0 : index
    %84 = vector.load %arg7[%c0_79, %c0_80] : memref<1x128xf32, #tpu.memory_space<vmem>>, vector<1x128xf32>
    %85 = vector.broadcast %84 : vector<1x128xf32> to vector<256x128xf32>
    %86 = arith.addf %83, %85 : vector<256x128xf32>
    %cst_81 = arith.constant 0.000000e+00 : f32
    %87 = vector.broadcast %cst_81 : f32 to vector<256x128xf32>
    %88 = arith.subf %87, %86 : vector<256x128xf32>
    %89 = math.exp %88 : vector<256x128xf32>
    %cst_82 = arith.constant 1.000000e+00 : f32
    %90 = vector.broadcast %cst_82 : f32 to vector<256x128xf32>
    %91 = arith.addf %90, %89 : vector<256x128xf32>
    %92 = tpu.reciprocal %91 {approx = true} : vector<256x128xf32> -> vector<256x128xf32>
    %93 = arith.mulf %86, %92 : vector<256x128xf32>
    %94 = arith.addf %93, %2 : vector<256x128xf32>
    %95 = vector.shape_cast %94 : vector<256x128xf32> to vector<16x16x128xf32>
    %c0_83 = arith.constant 0 : index
    %c0_84 = arith.constant 0 : index
    %c0_85 = arith.constant 0 : index
    %c0_86 = arith.constant 0 : index
    %96 = vector.load %arg8[%c0_83, %c0_84, %c0_85, %c0_86] : memref<1x16x16x128xf32, #tpu.memory_space<vmem>>, vector<1x16x16x128xf32>
    %97 = vector.shape_cast %96 : vector<1x16x16x128xf32> to vector<16x16x128xf32>
    %98 = vector.shape_cast %95 : vector<16x16x128xf32> to vector<1x16x16x128xf32>
    tpu.vector_store %arg8[%c0_83, %c0_84, %c0_85, %c0_86], %98 {strides = array<i32>} : memref<1x16x16x128xf32, #tpu.memory_space<vmem>>, vector<1x16x16x128xf32>,
    return
  }
  func.func @transform_0(%arg0: i32) -> (i32, i32, i32, i32) {
    %c0_i32 = arith.constant 0 : i32
    %c0_i32_0 = arith.constant 0 : i32
    %c0_i32_1 = arith.constant 0 : i32
    %c0_i32_2 = arith.constant 0 : i32
    return %arg0, %c0_i32, %c0_i32_0, %c0_i32_1 : i32, i32, i32, i32
  }
  func.func @transform_1(%arg0: i32) -> (i32, i32) {
    %c0_i32 = arith.constant 0 : i32
    %c0_i32_0 = arith.constant 0 : i32
    %c0_i32_1 = arith.constant 0 : i32
    return %c0_i32, %c0_i32_0 : i32, i32
  }
  func.func @transform_2(%arg0: i32) -> (i32, i32) {
    %c0_i32 = arith.constant 0 : i32
    %c0_i32_0 = arith.constant 0 : i32
    %c0_i32_1 = arith.constant 0 : i32
    return %c0_i32, %c0_i32_0 : i32, i32
  }
  func.func @transform_3(%arg0: i32) -> (i32, i32) {
    %c0_i32 = arith.constant 0 : i32
    %c0_i32_0 = arith.constant 0 : i32
    %c0_i32_1 = arith.constant 0 : i32
    return %c0_i32, %c0_i32_0 : i32, i32
  }
  func.func @transform_4(%arg0: i32) -> (i32, i32, i32) {
    %c0_i32 = arith.constant 0 : i32
    %c0_i32_0 = arith.constant 0 : i32
    %c0_i32_1 = arith.constant 0 : i32
    %c0_i32_2 = arith.constant 0 : i32
    return %c0_i32, %c0_i32_0, %c0_i32_1 : i32, i32, i32
  }
  func.func @transform_5(%arg0: i32) -> (i32, i32) {
    %c0_i32 = arith.constant 0 : i32
    %c0_i32_0 = arith.constant 0 : i32
    %c0_i32_1 = arith.constant 0 : i32
    return %c0_i32, %c0_i32_0 : i32, i32
  }
  func.func @transform_6(%arg0: i32) -> (i32, i32) {
    %c0_i32 = arith.constant 0 : i32
    %c0_i32_0 = arith.constant 0 : i32
    %c0_i32_1 = arith.constant 0 : i32
    return %c0_i32, %c0_i32_0 : i32, i32
  }
  func.func @transform_7(%arg0: i32) -> (i32, i32, i32, i32) {
    %c0_i32 = arith.constant 0 : i32
    %c0_i32_0 = arith.constant 0 : i32
    %c0_i32_1 = arith.constant 0 : i32
    %c0_i32_2 = arith.constant 0 : i32
    return %arg0, %c0_i32, %c0_i32_0, %c0_i32_1 : i32, i32, i32, i32
  }
}

</mosaic_0001>

<bundles_post_ra>
// kernel: tpu_custom_call.1
= control target key start
LH: loop header
LB: loop body
LE: loop exit
PB: predicated region body
PF: predicated region fallthrough
CT: control target
= control target key end

     0   :  { %12 = vsyncpa [#allocation4], 0  ;;  %s8040_s0 = inlined_call_operand.hbm [shape: f32[2,16,16,128], index: 0, kind: input, shape index: {}]   ;;  %s8041_s1 = inlined_call_operand.hbm [shape: bf16[128,128], index: 1, kind: input, shape index: {}]   ;;  %s8042_s2 = inlined_call_operand.vmem [shape: f32[1,128], index: 2, kind: input, shape index: {}]   ;;  %s8043_s3 = inlined_call_operand.vmem [shape: f32[1,128], index: 3, kind: input, shape index: {}]   ;;  %s8044_s4 = inlined_call_operand.hbm [shape: bf16[9,128,128], index: 4, kind: input, shape index: {}]   ;;  %s8045_s5 = inlined_call_operand.vmem [shape: f32[1,128], index: 5, kind: input, shape index: {}]   ;;  %s8046_s6 = inlined_call_operand.vmem [shape: f32[1,128], index: 6, kind: input, shape index: {}]   ;;  %s8047_s7 = inlined_call_operand.hbm [shape: f32[2,16,16,128], index: 7, kind: output, shape index: {}]  }
   0x1   :  { %14 = vsyncpa [#allocation4 + $0x1], 0 }
   0x2   :  { %15 = vsyncpa [#allocation7], 0 }
   0x3   :  { %16 = vsyncpa [#allocation5], 0 }
   0x4   :  { %18 = vsyncpa [#allocation5 + $0x1], 0  ;;  %s6633_s24 = smov 0   ;;  %s6635_s25 = smov 0  }
   0x5   :  { %s6637_s26 = smov 0   ;;  %s6639_s27 = smov 0  }
   0x6 LB: > { %s6654_s28 = sadd.s32 4294967295, %s6580_s27   ;;  %s4891_s29 = sadd.s32 4294967294, %s6580_s27   ;;  %s6580_s27 = sphi %s6639_s27, %s8069_s27   ;;  %s6576_s26 = sphi %s6637_s26, %s8068_s26   ;;  %s6572_s25 = sphi %s6635_s25, %s8067_s25   ;;  %s6568_s24 = sphi %s6633_s24, %s8066_s24  }
   0x7   : > { %p44_p0 = scmp.ne.s32.totalorder %s6572_s25, %s6568_s24  ;;  %p8048_p1 = scmp.eq.s32.totalorder %s6654_s28, 0 }
   0x8   : > { %p200_p3 = scmp.eq.s32.totalorder %s4891_s29, 1  ;;  %p4892_p5 = scmp.ge.s32.totalorder %s6580_s27, 1 }
   0x9   : > { %p6663_p4 = por %p8048_p1, %p44_p0  ;;  %p207_p7 = scmp.lt.s32.totalorder %s6580_s27, 3 }
   0xa   : > { %p6668_p6 = por %p200_p3, %p44_p0  ;;  %s6582_s10 = smov [#allocation6]  }
   0xb   : > { %s8051_s30 = scalar_select %p6663_p4, 1, 0 }
   0xc   : > { %s8052_s8 = scalar_select %p6668_p6, 1, 0 }
   0xd   : > { %p6673_p8 = pnand %p4892_p5, %p207_p7  ;;  %s219_s11 = sshll.u32 %s6582_s10, 4  ;;  %s6677_s11 = int_to_ptr.vmem [resolvable:$true] %s219_s11 }
   0xe   : > { %s6583_s13 = smov [#allocation8]   ;;  %s6424_s17 = scalar_lea.hbm %s8041_s1, 1024 }
   0xf   : > { %p5983_p9 = pneg %p6673_p8  ;;  %s238_s14 = sshll.u32 %s6583_s13, 4  ;;  %s6688_s14 = int_to_ptr.vmem [resolvable:$true] %s238_s14 }
  0x10   : > { %p6425_p12 = scmp.ne.s32.totalorder %s8041_s1, %s6424_s17  ;;  %p6431_p5 = scmp.lt.u32.totalorder %s6424_s17, %s8041_s1 }
  0x11   : > { %p6684_p11 = pnand %p5983_p9, %p8048_p1 }
  0x13   : > { %p6426_p13 = pneg %p6684_p11 }
  0x15   : > { %p6427_p0 = pnand %p6426_p13, %p6425_p12 }
  0x17   : > { %p6428_p3 = pneg %p6427_p0 }
  0x19   : > { %p6433_p7 = pnand %p6431_p5, %p6428_p3 }
  0x1b   : > { %6436 = shalt.err (!%p6433_p7)
}
  0x1c   : > { %s6437_s22 = scalar_lea.vmem %s6677_s11, 1024  ;;  %p6445_p2 = scmp.lt.s32.totalorder %s6677_s11, %s6677_s11 }
  0x1d   : > { %p6438_p9 = scmp.ne.s32.totalorder %s6677_s11, %s6437_s22  ;;  %p6446_p12 = scmp.lt.s32.totalorder %s6437_s22, %s6437_s22 }
  0x1f   : > { %p6440_p10 = pnand %p6438_p9, %p6426_p13  ;;  %p6447_p0 = por %p6446_p12, %p6445_p2 }
  0x21   : > { %p6441_p1 = pneg %p6440_p10 }
  0x23   : > { %p6448_p6 = pnand %p6447_p0, %p6441_p1 }
  0x25   : > { %6451 = shalt.err (!%p6448_p6)
}
  0x26   : > { %s6584_s23 = smov 64   ;;  %s6585_s29 = smov 4  }
  0x27   : > { %5986 = dma.hbm_to_vmem [thread:$0]  (!%p6684_p11), %s8041_s1, 1024, %s6677_s11, [#allocation7], %s6584_s23, %s6584_s23, %s6585_s29  }
  0x28   : > { %s6452_s17 = scalar_lea.hbm %s8044_s4, 9216 }
  0x29   : > { %p6453_p2 = scmp.ne.s32.totalorder %s8044_s4, %s6452_s17  ;;  %p6459_p10 = scmp.lt.u32.totalorder %s6452_s17, %s8044_s4 }
  0x2b   : > { %p6455_p1 = pnand %p6453_p2, %p6426_p13 }
  0x2d   : > { %p6456_p6 = pneg %p6455_p1 }
  0x2f   : > { %p6461_p3 = pnand %p6459_p10, %p6456_p6 }
  0x31   : > { %6464 = shalt.err (!%p6461_p3)
}
  0x32   : > { %s6465_s11 = scalar_lea.vmem %s6688_s14, 9216  ;;  %p6473_p12 = scmp.lt.s32.totalorder %s6688_s14, %s6688_s14 }
  0x33   : > { %p6466_p5 = scmp.ne.s32.totalorder %s6688_s14, %s6465_s11  ;;  %p6474_p0 = scmp.lt.s32.totalorder %s6465_s11, %s6465_s11 }
  0x35   : > { %p6468_p7 = pnand %p6466_p5, %p6426_p13  ;;  %p6475_p2 = por %p6474_p0, %p6473_p12 }
  0x37   : > { %p6469_p9 = pneg %p6468_p7 }
  0x39   : > { %p6476_p1 = pnand %p6475_p2, %p6469_p9 }
  0x3b   : > { %6479 = shalt.err (!%p6476_p1)
}
  0x3c   : > { %5989 = dma.hbm_to_vmem [thread:$0]  (!%p6684_p11), %s8044_s4, 9216, %s6688_s14, [#allocation7], %s6584_s23, %s6584_s23, %s6585_s29  }
  0x3d   : > { %s6743_s13 = sadd.s32 1, %s6580_s27   ;;  %s31_s12 = sadd.s32 1, %s6576_s26 }
  0x3e   : > { %s28_s15 = ssub.s32 %s6580_s27, %s6743_s13  ;;  %p38_p13 = scmp.ne.s32.totalorder %s6576_s26, %s6572_s25 }
  0x3f   : > { %p29_p6 = scmp.eq.s32.totalorder %s28_s15, 0  ;;  %p39_p10 = scmp.eq.s32.totalorder %s6580_s27, 0 }
  0x40   : > { %p8055_p3 = scmp.eq.s32.totalorder %s6654_s28, 1  ;;  %p6000_p7 = scmp.lt.s32.totalorder %s6580_s27, 2 }
  0x41   : > { %s6759_s17 = scalar_select %p29_p6, %s6576_s26, %s31_s12  }
  0x42   : > { %p6753_p5 = por %p8055_p3, %p38_p13  ;;  %p40_p9 = por %p39_p10, %p38_p13 }
  0x43   : > { %s258_s18 = sand.u32 1, %s6576_s26   ;;  %s4993_s14 = sshll.u32 %s6580_s27, 12 }
  0x44   : > { %s8056_s16 = scalar_select %p6753_p5, 1, 0 }
  0x45   : > { %s4896_s19 = sshll.u32 %s258_s18, 8  ;;  %s6766_s20 = scalar_lea.hbm %s8040_s0, %s4993_s14 }
  0x46   : > { %s262_s21 = scalar_lea.vmem [#allocation3], %s4896_s19  ;;  %p6770_p11 = pnand %p6000_p7, %p40_p9 }
  0x47   : > { %s269_s11 = sshll.u32 %s262_s21, 4  ;;  %s6774_s10 = scalar_lea.sflag [#allocation4], %s258_s18  ;;  %s6768_s11 = int_to_ptr.vmem [resolvable:$true] %s269_s11 }
  0x48   : > { %s6480_s12 = scalar_lea.hbm %s6766_s20, 4096  ;;  %p6482_p0 = pneg %p6770_p11 }
  0x49   : > { %p6481_p12 = scmp.ne.s32.totalorder %s6766_s20, %s6480_s12  ;;  %s6485_s14 = scalar_lea.hbm %s8040_s0, 8192 }
  0x4a   : > { %p6486_p13 = scmp.lt.u32.totalorder %s6766_s20, %s8040_s0  ;;  %p6487_p6 = scmp.lt.u32.totalorder %s6485_s14, %s6480_s12 }
  0x4b   : > { %p6483_p2 = pnand %p6482_p0, %p6481_p12  ;;  %p6489_p3 = scmp.lt.u32.totalorder %s6480_s12, %s6766_s20 }
  0x4c   : > { %p6488_p10 = por %p6487_p6, %p6486_p13 }
  0x4d   : > { %p6484_p1 = pneg %p6483_p2 }
  0x4e   : > { %p6490_p7 = por %p6489_p3, %p6488_p10 }
  0x50   : > { %p6491_p9 = pnand %p6490_p7, %p6484_p1 }
  0x52   : > { %6494 = shalt.err (!%p6491_p9)
}
  0x53   : > { %s6495_s18 = scalar_lea.vmem %s6768_s11, 4096  ;;  %s6586_s21 = smov [#allocation3]  }
  0x54   : > { %p6496_p12 = scmp.ne.s32.totalorder %s6768_s11, %s6495_s18  ;;  %s6500_s15 = sshll.u32 %s6586_s21, 4  ;;  %s6501_s15 = int_to_ptr.vmem [resolvable:$false] %s6500_s15 }
  0x55   : > { %s6502_s19 = scalar_lea.vmem %s6501_s15, 8192  ;;  %p6503_p4 = scmp.lt.s32.totalorder %s6768_s11, %s6501_s15 }
  0x56   : > { %p6498_p2 = pnand %p6496_p12, %p6482_p0  ;;  %p6504_p13 = scmp.lt.s32.totalorder %s6502_s19, %s6495_s18 }
  0x58   : > { %p6499_p5 = pneg %p6498_p2  ;;  %p6505_p6 = por %p6504_p13, %p6503_p4 }
  0x5a   : > { %p6506_p10 = pnand %p6505_p6, %p6499_p5 }
  0x5c   : > { %6509 = shalt.err (!%p6506_p10)
}
  0x5d   : > { %s6587_s12 = smov 128   ;;  %s6588_s14 = smov 8  }
  0x5e   : > { %5993 = dma.hbm_to_vmem [thread:$0]  (!%p6770_p11), %s6766_s20, 4096, %s6768_s11, %s6774_s10, %s6587_s12, %s6587_s12, %s6588_s14  }
  0x5f   : > { %281 = sbr.rel (%p6673_p8) target bundleno = 1048 (0x418), region = 48  ;;  %s6805_s23 = sand.u32 (!%p6673_p8), 1, %s6572_s25  }
  0x60   : > { %s4900_s29 = sshll.u32 (!%p6673_p8), %s6805_s23, 8  ;;  %s284_s18 = scalar_lea.sflag (!%p6673_p8), [#allocation4], %s6805_s23 }
  0x61   : > { %s6811_s21 = scalar_lea.vmem (!%p6673_p8), [#allocation3], %s4900_s29  ;;  %p8058_p4 = scmp.ne.s32.totalorder (!%p6673_p8), %s8051_s30, 0 }
  0x66   : > { %6555 = dma.done.wait (%p8058_p4), %s284_s18, 4096  }
  0x67   : > { %6557 = vsyncadd (%p8058_p4), %s284_s18, 4294963200  ;;  %p8059_p5 = scmp.eq.s32.totalorder %s6654_s28, 0 }
  0x69   : > { %6559 = dma.done.wait (%p8059_p5), [#allocation7], 10240   ;;  %p8060_p8 = pmov %p8059_p5 }
  0x6a   : > { %v6045_v0 = vld [vmem:[#allocation6] sm:$0xff]   ;;  %v6046_v1 = vld [vmem:[#allocation6 + $0x8] sm:$0xff]   ;;  %v6047_v2 = vld [vmem:[#allocation6 + $0x10] sm:$0xff]   ;;  %vm1151_vm0 = vsmask.f32 7424  ;;  %vm1030_vm1 = vcmask 1040384  }
  0x6b   : > { %6561 = vsyncadd (%p8060_p8), [#allocation7], 4294957056  ;;  %5235 = vmatprep.subr.bf16.mxu0 %v6045_v0  ;;  %v6048_v3 = vld [vmem:[#allocation6 + $0x18] sm:$0xff]   ;;  %v327_v4 = vld [vmem:[%s6811_s21] sm:$0xff]  ;;  %vm1031_vm2 = vsmask.f32 256 }
  0x6c   : > { %5236 = vmatpush3.bf16.msra.mxu0 %v6045_v0  ;;  %v328_v5 = vld [vmem:[%s6811_s21 + $0x8] sm:$0xff]  ;;  %v6049_v7 = vld [vmem:[#allocation6 + $0x20] sm:$0xff]   ;;  %v6051_v9 = vld [vmem:[#allocation6 + $0x30] sm:$0xff]   ;;  %vm1843_vm4 = vcmask 1046528   ;;  %s7804_s12 = scalar_lea.vmem [#allocation9], %s4900_s29  ;;  %s4994_s14 = sshll.u32 %s6654_s28, 12 }
  0x6d   : > { %5237 = vmatprep.subr.bf16.mxu0 %v6046_v1  ;;  %v359_v6 = vpack.c.bf16 %v328_v5, %v327_v4  ;;  %v6050_v8 = vld [vmem:[#allocation6 + $0x28] sm:$0xff]   ;;  %v6052_v10 = vld [vmem:[#allocation6 + $0x38] sm:$0xff]   ;;  %v329_v11 = vld [vmem:[%s6811_s21 + $0x10] sm:$0xff]  ;;  %s4799_s29 = sshll.u32 %s7804_s12, 4  ;;  %s7992_s9 = scalar_lea.hbm %s8047_s7, %s4994_s14  ;;  %s7994_s29 = int_to_ptr.vmem [resolvable:$true] %s4799_s29 }
  0x6e   : > { %v330_v12 = vld [vmem:[%s6811_s21 + $0x18] sm:$0xff]  ;;  %v331_v13 = vld [vmem:[%s6811_s21 + $0x20] sm:$0xff]  ;;  %v332_v14 = vld [vmem:[%s6811_s21 + $0x28] sm:$0xff]  ;;  %s4786_s28 = scalar_lea.sflag [#allocation5], %s6805_s23  ;;  %s6510_s20 = scalar_lea.vmem %s7994_s29, 4096 }
  0x6f   : > { %5251 = vmatprep.mubr.bf16.mxu0 %v359_v6  ;;  %v360_v15 = vpack.c.bf16 %v330_v12, %v329_v11  ;;  %v361_v16 = vpack.c.bf16 %v332_v14, %v331_v13  ;;  %v333_v17 = vld [vmem:[%s6811_s21 + $0x30] sm:$0xff]  ;;  %v334_v18 = vld [vmem:[%s6811_s21 + $0x38] sm:$0xff]  ;;  %v335_v19 = vld [vmem:[%s6811_s21 + $0x40] sm:$0xff]  ;;  %p6511_p11 = scmp.ne.s32.totalorder %s7994_s29, %s6510_s20  ;;  %p8063_p0 = scmp.ne.s32.totalorder %s8056_s16, 0 }
  0x70   : > { %5238 = vmatpush3.bf16.msra.mxu0 %v6046_v1  ;;  %v336_v20 = vld [vmem:[%s6811_s21 + $0x48] sm:$0xff]  ;;  %v362_v21 = vpack.c.bf16 %v334_v18, %v333_v17  ;;  %v337_v23 = vld [vmem:[%s6811_s21 + $0x50] sm:$0xff]  ;;  %v338_v24 = vld [vmem:[%s6811_s21 + $0x58] sm:$0xff]  ;;  %s6590_s11 = smov [#allocation9]  }
  0x71   : > { %5239 = vmatprep.subr.bf16.mxu0 %v6047_v2  ;;  %v363_v22 = vpack.c.bf16 %v336_v20, %v335_v19  ;;  %v339_v25 = vld [vmem:[%s6811_s21 + $0x60] sm:$0xff]  ;;  %v340_v26 = vld [vmem:[%s6811_s21 + $0x68] sm:$0xff]  ;;  %v364_v27 = vpack.c.bf16 %v338_v24, %v337_v23  ;;  %v341_v29 = vld [vmem:[%s6811_s21 + $0x70] sm:$0xff]  ;;  %p6512_p1 = pnand %p6511_p11, %p8063_p0  ;;  %s6514_s22 = sshll.u32 %s6590_s11, 4  ;;  %s6515_s22 = int_to_ptr.vmem [resolvable:$false] %s6514_s22 }
  0x72   : > { %v365_v28 = vpack.c.bf16 %v340_v26, %v339_v25  ;;  %v342_v30 = vld [vmem:[%s6811_s21 + $0x78] sm:$0xff]  ;;  %v343_v31 = vld [vmem:[%s6811_s21 + $0x80] sm:$0xff]  ;;  %v344_v32 = vld [vmem:[%s6811_s21 + $0x88] sm:$0xff]  ;;  %s6516_s10 = scalar_lea.vmem %s6515_s22, 8192  ;;  %p6517_p7 = scmp.lt.s32.totalorder %s7994_s29, %s6515_s22 }
  0x73   : > { %v366_v33 = vpack.c.bf16 %v342_v30, %v341_v29  ;;  %v367_v34 = vpack.c.bf16 %v344_v32, %v343_v31  ;;  %v345_v35 = vld [vmem:[%s6811_s21 + $0x90] sm:$0xff]  ;;  %v346_v36 = vld [vmem:[%s6811_s21 + $0x98] sm:$0xff]  ;;  %v347_v37 = vld [vmem:[%s6811_s21 + $0xa0] sm:$0xff]  ;;  %p6513_p3 = pneg %p6512_p1  ;;  %p6518_p9 = scmp.lt.s32.totalorder %s6516_s10, %s6510_s20 }
  0x74   : > { %5240 = vmatpush3.bf16.msra.mxu0 %v6047_v2  ;;  %v348_v38 = vld [vmem:[%s6811_s21 + $0xa8] sm:$0xff]  ;;  %v368_v39 = vpack.c.bf16 %v346_v36, %v345_v35  ;;  %v349_v41 = vld [vmem:[%s6811_s21 + $0xb0] sm:$0xff]  ;;  %v350_v42 = vld [vmem:[%s6811_s21 + $0xb8] sm:$0xff] }
  0x75   : > { %5241 = vmatprep.subr.bf16.mxu0 %v6048_v3  ;;  %v369_v40 = vpack.c.bf16 %v348_v38, %v347_v37  ;;  %v351_v43 = vld [vmem:[%s6811_s21 + $0xc0] sm:$0xff]  ;;  %v352_v44 = vld [vmem:[%s6811_s21 + $0xc8] sm:$0xff]  ;;  %v370_v45 = vpack.c.bf16 %v350_v42, %v349_v41  ;;  %v353_v47 = vld [vmem:[%s6811_s21 + $0xd0] sm:$0xff]  ;;  %p6519_p12 = por %p6518_p9, %p6517_p7 }
  0x76   : > { %v371_v46 = vpack.c.bf16 %v352_v44, %v351_v43  ;;  %v354_v48 = vld [vmem:[%s6811_s21 + $0xd8] sm:$0xff]  ;;  %v355_v49 = vld [vmem:[%s6811_s21 + $0xe0] sm:$0xff]  ;;  %v356_v50 = vld [vmem:[%s6811_s21 + $0xe8] sm:$0xff] }
  0x77   : > { %v372_v51 = vpack.c.bf16 %v354_v48, %v353_v47  ;;  %v373_v52 = vpack.c.bf16 %v356_v50, %v355_v49  ;;  %v357_v53 = vld [vmem:[%s6811_s21 + $0xf0] sm:$0xff]  ;;  %v358_v54 = vld [vmem:[%s6811_s21 + $0xf8] sm:$0xff]  ;;  %v6053_v56 = vld [vmem:[#allocation8 + $0x40] sm:$0xff]   ;;  %p6520_p2 = pnand %p6519_p12, %p6513_p3 }
  0x78   : > { %5242 = vmatpush3.bf16.msra.mxu0 %v6048_v3  ;;  %v374_v55 = vpack.c.bf16 %v358_v54, %v357_v53  ;;  %v6054_v57 = vld [vmem:[#allocation8 + $0x100] sm:$0xff]   ;;  %v6055_v58 = vld [vmem:[#allocation8 + $0x48] sm:$0xff]   ;;  %v6057_v60 = vld [vmem:[#allocation8 + $0x50] sm:$0xff]   ;;  %v6589_v3 = vmov 0  }
  0x79   : > { %5243 = vmatprep.subr.bf16.mxu0 %v6049_v7  ;;  %5475 = vmatprep.subr.bf16.mxu1 %v6054_v57  ;;  %v6056_v59 = vld [vmem:[#allocation8 + $0x108] sm:$0xff]   ;;  %v6058_v61 = vld [vmem:[#allocation8 + $0x110] sm:$0xff]   ;;  %v6059_v62 = vld [vmem:[#allocation8 + $0x58] sm:$0xff]   ;;  %1098 = vst [vmem:[#allocation2] sm:$0xff] %v6589_v3 }
  0x7a   : > { %5476 = vmatpush3.bf16.msra.mxu1 %v6054_v57  ;;  %v6060_v63 = vld [vmem:[#allocation8 + $0x118] sm:$0xff]   ;;  %v6061_v0 = vld [vmem:[#allocation8 + $0x60] sm:$0xff]   ;;  %v6063_v2 = vld [vmem:[#allocation8 + $0x68] sm:$0xff]   ;;  %1099 = vst [vmem:[#allocation2 + $0x8] sm:$0xff] %v6589_v3 }
  0x7b   : > { %5477 = vmatprep.subr.bf16.mxu1 %v6056_v59  ;;  %v6062_v1 = vld [vmem:[#allocation8 + $0x120] sm:$0xff]   ;;  %1101 = vst [vmem:[#allocation2 + $0x110] sm:$0xff] %v6589_v3  ;;  %1102 = vst [vmem:[#allocation2 + $0x118] sm:$0xff] %v6589_v3  ;;  %v6064_v4 = vld [vmem:[#allocation8 + $0x128] sm:$0xff]  }
  0x7c   : > { %5244 = vmatpush3.bf16.msra.mxu0 %v6049_v7  ;;  %v6065_v5 = vld [vmem:[#allocation8 + $0x70] sm:$0xff]   ;;  %v6068_v12 = vld [vmem:[#allocation8 + $0x138] sm:$0xff]   ;;  %v6854_v14 = vld [vmem:[#allocation8 + $0x140] sm:$0xff]  }
  0x7d   : > { %5245 = vmatprep.subr.bf16.mxu0 %v6050_v8  ;;  %v6066_v6 = vld [vmem:[#allocation8 + $0x130] sm:$0xff]   ;;  %v6865_v17 = vld [vmem:[%s8043_s3] ss:$0 sm:$0xff]  ;;  %vm6971_vm3 = vmand %vm1030_vm1, %vm1031_vm2 }
  0x7e   : > { %5478 = vmatpush3.bf16.msra.mxu1 %v6056_v59  ;;  %v6881_v29 = vld [vmem:[#allocation8] sm:$0xff]  }
  0x7f   : > { %5479 = vmatprep.subr.bf16.mxu1 %v6058_v61 }
  0x80   : > { %5246 = vmatpush3.bf16.msra.mxu0 %v6050_v8  ;;  %v6067_v8 = vld [vmem:[#allocation8 + $0x78] sm:$0xff]  }
  0x81   : > { %5247 = vmatprep.subr.bf16.mxu0 %v6051_v9  ;;  %v1135_v7 = vld [vmem:[#allocation2 + $0x8] sm:$0x1] }
  0x82   : > { %5480 = vmatpush3.bf16.msra.mxu1 %v6058_v61 }
  0x83   : > { %5481 = vmatprep.subr.bf16.mxu1 %v6060_v63 }
  0x84   : > { %5248 = vmatpush3.bf16.msra.mxu0 %v6051_v9  ;;  %v1157_v9 = vrot.slane %v6589_v3, 1 }
  0x85   : > { %5249 = vmatprep.subr.bf16.mxu0 %v6052_v10 }
  0x86   : > { %5482 = vmatpush3.bf16.msra.mxu1 %v6060_v63 }
  0x87   : > { %5483 = vmatprep.subr.bf16.mxu1 %v6062_v1 }
  0x88   : > { %5250 = vmatpush3.bf16.msra.mxu0 %v6052_v10  ;;  %v1160_v10 = vshll.u32 %v1135_v7, 16 }
  0x89   : > { %5283 = vmatprep.subr.bf16.mxu0 %v6053_v56 }
  0x8a   : > { %5484 = vmatpush3.bf16.msra.mxu1 %v6062_v1  ;;  %v1162_v11 = vrot.slane %v1160_v10, 1 }
  0x8b   : > { %5252 = vmatmul.mubr.bf16.vlgmr.msra.gmra.mrb[0].mxu0 %v360_v15  ;;  %5485 = vmatprep.subr.bf16.mxu1 %v6064_v4  ;;  %v6860_v15 = vld [vmem:[%s8042_s2] ss:$0 sm:$0xff] }
  0x8c   : > { %5255 = vmatprep.mubr.bf16.mxu0 %v361_v16  ;;  %5284 = vmatpush3.bf16.msra.mxu0 %v6053_v56  ;;  %v1163_v13 = vsel %vm1151_vm0, %v1157_v9, %v1162_v11 }
  0x8d   : > { %5285 = vmatprep.subr.bf16.mxu0 %v6055_v58 }
  0x8e   : > { %5486 = vmatpush3.bf16.msra.mxu1 %v6064_v4 }
  0x8f   : > { %5487 = vmatprep.subr.bf16.mxu1 %v6066_v6 }
  0x90   : > { %5286 = vmatpush3.bf16.msra.mxu0 %v6055_v58 }
  0x91   : > { %5287 = vmatprep.subr.bf16.mxu0 %v6057_v60 }
  0x92   : > { %5488 = vmatpush3.bf16.msra.mxu1 %v6066_v6 }
  0x93   : > { %5256 = vmatmul.mubr.bf16.gmra.mrb[4].mxu0 %v362_v21  ;;  %5489 = vmatprep.subr.bf16.mxu1 %v6068_v12 }
  0x94   : > { %5259 = vmatprep.mubr.bf16.mxu0 %v363_v22  ;;  %5288 = vmatpush3.bf16.msra.mxu0 %v6057_v60 }
  0x95   : > { %5289 = vmatprep.subr.bf16.mxu0 %v6059_v62 }
  0x96   : > { %5490 = vmatpush3.bf16.msra.mxu1 %v6068_v12 }
  0x97   : > { %5523 = vmatprep.subr.bf16.mxu1 %v6854_v14 }
  0x98   : > { %5290 = vmatpush3.bf16.msra.mxu0 %v6059_v62 }
  0x99   : > { %5291 = vmatprep.subr.bf16.mxu0 %v6061_v0 }
  0x9b   : > { %5260 = vmatmul.mubr.bf16.gmra.mrb[8].mxu0 %v364_v27 }
  0x9c   : > { %5263 = vmatprep.mubr.bf16.mxu0 %v365_v28  ;;  %5292 = vmatpush3.bf16.msra.mxu0 %v6061_v0 }
  0x9d   : > { %5293 = vmatprep.subr.bf16.mxu0 %v6063_v2 }
  0xa0   : > { %5294 = vmatpush3.bf16.msra.mxu0 %v6063_v2 }
  0xa1   : > { %5295 = vmatprep.subr.bf16.mxu0 %v6065_v5 }
  0xa3   : > { %5264 = vmatmul.mubr.bf16.gmra.mrb[12].mxu0 %v366_v33 }
  0xa4   : > { %5267 = vmatprep.mubr.bf16.mxu0 %v367_v34  ;;  %5296 = vmatpush3.bf16.msra.mxu0 %v6065_v5 }
  0xa5   : > { %5297 = vmatprep.subr.bf16.mxu0 %v6067_v8 }
  0xa8   : > { %5298 = vmatpush3.bf16.msra.mxu0 %v6067_v8 }
  0xa9   : > { %5331 = vmatprep.subr.bf16.mxu0 %v6881_v29 }
  0xab   : > { %5268 = vmatmul.mubr.bf16.gmra.mrb[16].mxu0 %v368_v39 }
  0xac   : > { %5271 = vmatprep.mubr.bf16.mxu0 %v369_v40 }
  0xb3   : > { %5272 = vmatmul.mubr.bf16.gmra.mrb[20].mxu0 %v370_v45 }
  0xb4   : > { %5275 = vmatprep.mubr.bf16.mxu0 %v371_v46 }
  0xbb   : > { %5276 = vmatmul.mubr.bf16.gmra.mrb[24].mxu0 %v372_v51 }
  0xbc   : > { %5279 = vmatprep.mubr.bf16.mxu0 %v373_v52 }
  0xc3   : > { %5280 = vmatmul.mubr.bf16.gmra.mrb[28].mxu0 %v374_v55 }
  0xc4   : > { %5299 = vmatprep.mubr.bf16.mxu0 %v1163_v13 }
 0x15e   : > { %v5253_v16 = vpop.f32.mrb[0].mxu0 }
 0x15f   : > { %v609_v18 = vmul.f32 %v5253_v16, %v6860_v15  ;;  %v473_v19 = vpop.f32.mrb[1].mxu0 }
 0x160   : > { %v607_v20 = vmul.f32 %v6860_v15, %v473_v19  ;;  %v5254_v21 = vpop.f32.mrb[2].mxu0 }
 0x161   : > { %v6870_v22 = vadd.f32 %v6865_v17, %v609_v18  ;;  %v610_v23 = vmul.f32 %v5254_v21, %v6860_v15  ;;  %v476_v24 = vpop.f32.mrb[3].mxu0 }
 0x162   : > { %v6874_v25 = vadd.f32 %v6865_v17, %v607_v20  ;;  %v608_v26 = vmul.f32 %v6860_v15, %v476_v24 }
 0x163   : > { %v680_v27 = vsub.f32 0.0, %v6870_v22  ;;  %v6879_v28 = vadd.f32 %v6865_v17, %v610_v23 }
 0x164   : > { %v678_v30 = vsub.f32 0.0, %v6874_v25  ;;  %v6885_v31 = vadd.f32 %v6865_v17, %v608_v26 }
 0x165   : > { %v714_v32 = vmul.f32 1.442695, %v680_v27  ;;  %v681_v33 = vsub.f32 0.0, %v6879_v28 }
 0x166   : > { %v710_v34 = vmul.f32 1.442695, %v678_v30  ;;  %v679_v35 = vsub.f32 0.0, %v6885_v31  ;;  %v5257_v36 = vpop.f32.mrb[4].mxu0 }
 0x167   : > { %6125 = vpow2.f32 %v714_v32  ;;  %v716_v37 = vmul.f32 1.442695, %v681_v33  ;;  %v613_v38 = vmul.f32 %v5257_v36, %v6860_v15  ;;  %v489_v39 = vpop.f32.mrb[5].mxu0 }
 0x168   : > { %6127 = vpow2.f32 %v710_v34  ;;  %v712_v40 = vmul.f32 1.442695, %v679_v35  ;;  %v611_v41 = vmul.f32 %v6860_v15, %v489_v39  ;;  %v5258_v42 = vpop.f32.mrb[6].mxu0 }
 0x169   : > { %6129 = vpow2.f32 %v716_v37  ;;  %v6893_v43 = vadd.f32 %v6865_v17, %v613_v38  ;;  %v614_v44 = vmul.f32 %v5258_v42, %v6860_v15  ;;  %v492_v45 = vpop.f32.mrb[7].mxu0 }
 0x16a   : > { %6131 = vpow2.f32 %v712_v40  ;;  %v6897_v46 = vadd.f32 %v6865_v17, %v611_v41  ;;  %v612_v47 = vmul.f32 %v6860_v15, %v492_v45 }
 0x16b   : > { %v684_v48 = vsub.f32 0.0, %v6893_v43  ;;  %v6902_v49 = vadd.f32 %v6865_v17, %v614_v44 }
 0x16c   : > { %v682_v50 = vsub.f32 0.0, %v6897_v46  ;;  %v6906_v51 = vadd.f32 %v6865_v17, %v612_v47 }
 0x16d   : > { %v722_v52 = vmul.f32 1.442695, %v684_v48  ;;  %v685_v53 = vsub.f32 0.0, %v6902_v49 }
 0x16e   : > { %v718_v54 = vmul.f32 1.442695, %v682_v50  ;;  %v683_v55 = vsub.f32 0.0, %v6906_v51  ;;  %v5261_v56 = vpop.f32.mrb[8].mxu0 }
 0x16f   : > { %6133 = vpow2.f32 %v722_v52  ;;  %v724_v57 = vmul.f32 1.442695, %v685_v53  ;;  %v617_v58 = vmul.f32 %v5261_v56, %v6860_v15  ;;  %v505_v59 = vpop.f32.mrb[9].mxu0 }
 0x170   : > { %6135 = vpow2.f32 %v718_v54  ;;  %v720_v60 = vmul.f32 1.442695, %v683_v55  ;;  %v615_v61 = vmul.f32 %v6860_v15, %v505_v59  ;;  %v5262_v62 = vpop.f32.mrb[10].mxu0 }
 0x171   : > { %v6126_v63 = vpop.eup %6125  ;;  %6137 = vpow2.f32 %v724_v57  ;;  %v6913_v0 = vadd.f32 %v6865_v17, %v617_v58  ;;  %v618_v1 = vmul.f32 %v5262_v62, %v6860_v15  ;;  %v508_v2 = vpop.f32.mrb[11].mxu0 }
 0x172   : > { %v6128_v3 = vpop.eup %6127  ;;  %v776_v4 = vadd.f32 1.0, %v6126_v63  ;;  %6139 = vpow2.f32 %v720_v60  ;;  %v6917_v5 = vadd.f32 %v6865_v17, %v615_v61  ;;  %v616_v6 = vmul.f32 %v6860_v15, %v508_v2 }
 0x173   : > { %v6130_v7 = vpop.eup %6129  ;;  %v774_v8 = vadd.f32 1.0, %v6128_v3  ;;  %v688_v9 = vsub.f32 0.0, %v6913_v0  ;;  %v6922_v10 = vadd.f32 %v6865_v17, %v618_v1 }
 0x174   : > { %v6132_v11 = vpop.eup %6131  ;;  %6141 = vrcp.f32 %v776_v4  ;;  %v777_v12 = vadd.f32 1.0, %v6130_v7  ;;  %v686_v13 = vsub.f32 0.0, %v6917_v5  ;;  %v6926_v16 = vadd.f32 %v6865_v17, %v616_v6 }
 0x175   : > { %6143 = vrcp.f32 %v774_v8  ;;  %v775_v18 = vadd.f32 1.0, %v6132_v11  ;;  %v730_v19 = vmul.f32 1.442695, %v688_v9  ;;  %v689_v20 = vsub.f32 0.0, %v6922_v10 }
 0x176   : > { %6145 = vrcp.f32 %v777_v12  ;;  %v726_v21 = vmul.f32 1.442695, %v686_v13  ;;  %v687_v23 = vsub.f32 0.0, %v6926_v16  ;;  %v5265_v24 = vpop.f32.mrb[12].mxu0 }
 0x177   : > { %6147 = vrcp.f32 %v775_v18  ;;  %v732_v26 = vmul.f32 1.442695, %v689_v20  ;;  %v621_v27 = vmul.f32 %v5265_v24, %v6860_v15  ;;  %v521_v30 = vpop.f32.mrb[13].mxu0 }
 0x178   : > { %6149 = vpow2.f32 %v730_v19  ;;  %v728_v32 = vmul.f32 1.442695, %v687_v23  ;;  %v619_v33 = vmul.f32 %v6860_v15, %v521_v30  ;;  %v5266_v34 = vpop.f32.mrb[14].mxu0 }
 0x179   : > { %v6134_v35 = vpop.eup %6133  ;;  %6151 = vpow2.f32 %v726_v21  ;;  %v6933_v36 = vadd.f32 %v6865_v17, %v621_v27  ;;  %v622_v37 = vmul.f32 %v5266_v34, %v6860_v15  ;;  %v524_v38 = vpop.f32.mrb[15].mxu0 }
 0x17a   : > { %v6136_v39 = vpop.eup %6135  ;;  %v780_v40 = vadd.f32 1.0, %v6134_v35  ;;  %6153 = vpow2.f32 %v732_v26  ;;  %v6937_v41 = vadd.f32 %v6865_v17, %v619_v33  ;;  %v620_v42 = vmul.f32 %v6860_v15, %v524_v38 }
 0x17b   : > { %v6138_v44 = vpop.eup %6137  ;;  %v778_v45 = vadd.f32 1.0, %v6136_v39  ;;  %6155 = vpow2.f32 %v728_v32  ;;  %v692_v47 = vsub.f32 0.0, %v6933_v36  ;;  %v6942_v48 = vadd.f32 %v6865_v17, %v622_v37 }
 0x17c   : > { %v6140_v50 = vpop.eup %6139  ;;  %6157 = vrcp.f32 %v780_v40  ;;  %v781_v52 = vadd.f32 1.0, %v6138_v44  ;;  %v690_v53 = vsub.f32 0.0, %v6937_v41  ;;  %v6946_v54 = vadd.f32 %v6865_v17, %v620_v42 }
 0x17d   : > { %6159 = vrcp.f32 %v778_v45  ;;  %v779_v55 = vadd.f32 1.0, %v6140_v50  ;;  %v738_v56 = vmul.f32 1.442695, %v692_v47  ;;  %v693_v57 = vsub.f32 0.0, %v6942_v48 }
 0x17e   : > { %v6142_v58 = vpop.eup %6141  ;;  %6161 = vrcp.f32 %v781_v52  ;;  %v734_v59 = vmul.f32 1.442695, %v690_v53  ;;  %v691_v60 = vsub.f32 0.0, %v6946_v54  ;;  %v5269_v61 = vpop.f32.mrb[16].mxu0 }
 0x17f   : > { %v6144_v62 = vpop.eup %6143  ;;  %v840_v63 = vmul.f32 %v6142_v58, %v6870_v22  ;;  %6163 = vrcp.f32 %v779_v55  ;;  %v740_v1 = vmul.f32 1.442695, %v693_v57  ;;  %v625_v2 = vmul.f32 %v5269_v61, %v6860_v15  ;;  %v537_v3 = vpop.f32.mrb[17].mxu0 }
 0x180   : > { %v6146_v4 = vpop.eup %6145  ;;  %v838_v6 = vmul.f32 %v6144_v62, %v6874_v25  ;;  %6165 = vpow2.f32 %v738_v56  ;;  %v736_v7 = vmul.f32 1.442695, %v691_v60  ;;  %v623_v8 = vmul.f32 %v6860_v15, %v537_v3  ;;  %v5270_v9 = vpop.f32.mrb[18].mxu0 }
 0x181   : > { %v6148_v11 = vpop.eup %6147  ;;  %v841_v12 = vmul.f32 %v6146_v4, %v6879_v28  ;;  %6167 = vpow2.f32 %v734_v59  ;;  %v6956_v13 = vadd.f32 %v6865_v17, %v625_v2  ;;  %v626_v22 = vmul.f32 %v5270_v9, %v6860_v15  ;;  %v540_v18 = vpop.f32.mrb[19].mxu0 }
 0x182   : > { %v6150_v19 = vpop.eup %6149  ;;  %v839_v20 = vmul.f32 %v6148_v11, %v6885_v31  ;;  %6169 = vpow2.f32 %v740_v1  ;;  %v6961_v25 = vadd.f32 %v6865_v17, %v623_v8  ;;  %v624_v21 = vmul.f32 %v6860_v15, %v540_v18 }
 0x183   : > { %v6152_v23 = vpop.eup %6151  ;;  %v871_v24 = vpack.c.bf16 %v841_v12, %v840_v63  ;;  %v784_v26 = vadd.f32 1.0, %v6150_v19  ;;  %6171 = vpow2.f32 %v736_v7  ;;  %v696_v28 = vsub.f32 0.0, %v6956_v13 }
 0x184   : > { %v6154_v27 = vpop.eup %6153  ;;  %v870_v30 = vpack.c.bf16 %v839_v20, %v838_v6  ;;  %v782_v32 = vadd.f32 1.0, %v6152_v23  ;;  %v694_v33 = vsub.f32 0.0, %v6961_v25  ;;  %v6967_v34 = vadd.f32 %v6865_v17, %v626_v22 }
 0x185   : > { %v6156_v31 = vpop.eup %6155  ;;  %v894_v35 = vshrl.u32 %v871_v24, 16  ;;  %v897_v37 = vshll.u32 %v871_v24, 16  ;;  %6173 = vrcp.f32 %v784_v26  ;;  %v785_v38 = vadd.f32 1.0, %v6154_v27 }
 0x186   : > { %v6158_v39 = vpop.eup %6157  ;;  %v887_v42 = vshrl.u32 %v870_v30, 16  ;;  %v890_v44 = vshll.u32 %v870_v30, 16  ;;  %6175 = vrcp.f32 %v782_v32  ;;  %v783_v45 = vadd.f32 1.0, %v6156_v31  ;;  %v5273_v47 = vpop.f32.mrb[20].mxu0 }
 0x187   : > { %v6160_v50 = vpop.eup %6159  ;;  %v896_v52 = vrot.slane %v894_v35, 7  ;;  %v844_v53 = vmul.f32 %v6158_v39, %v6893_v43  ;;  %6177 = vrcp.f32 %v785_v38  ;;  %v746_v55 = vmul.f32 1.442695, %v696_v28  ;;  %v6976_v56 = vpop.f32.mrb[21].mxu0 }
 0x188   : > { %v6162_v57 = vpop.eup %6161  ;;  %v889_v58 = vrot.slane %v887_v42, 7  ;;  %v842_v59 = vmul.f32 %v6160_v50, %v6897_v46  ;;  %6179 = vrcp.f32 %v783_v45  ;;  %v742_v60 = vmul.f32 1.442695, %v694_v33  ;;  %v6979_v61 = vpop.f32.mrb[22].mxu0 }
 0x189   : > { %v6164_v62 = vpop.eup %6163  ;;  %v899_v63 = vor.u32 %v897_v37, %v896_v52  ;;  %v1050_v1 = vsel %vm6971_vm3, %v896_v52, 0  ;;  %v845_v2 = vmul.f32 %v6162_v57, %v6902_v49  ;;  %6181 = vpow2.f32 %v746_v55  ;;  %v6984_v43 = vpop.f32.mrb[23].mxu0 }
 0x18a   : > { %v6166_v3 = vpop.eup %6165  ;;  %1069 = vst [vmem:[#allocation2 + $0x28] sm:$0xff] %v1050_v1  ;;  %v892_v4 = vor.u32 %v890_v44, %v889_v58  ;;  %v1049_v46 = vsel %vm6971_vm3, %v889_v58, 0  ;;  %v843_v6 = vmul.f32 %v6164_v62, %v6906_v51  ;;  %6183 = vpow2.f32 %v742_v60 }
 0x18b   : > { %v6168_v7 = vpop.eup %6167  ;;  %v1034_v8 = vsel %vm6971_vm3, 0, %v899_v63  ;;  %1067 = vst [vmem:[#allocation2 + $0x18] sm:$0xff] %v1049_v46  ;;  %v873_v9 = vpack.c.bf16 %v845_v2, %v844_v53  ;;  %v788_v11 = vadd.f32 1.0, %v6166_v3  ;;  %v697_v49 = vsub.f32 0.0, %v6967_v34 }
 0x18c   : > { %v6170_v12 = vpop.eup %6169  ;;  %1068 = vst [vmem:[#allocation2 + $0x20] sm:$0xff] %v1034_v8  ;;  %v6994_v22 = vsel %vm6971_vm3, 0, %v892_v4  ;;  %v872_v18 = vpack.c.bf16 %v843_v6, %v842_v59  ;;  %v786_v19 = vadd.f32 1.0, %v6168_v7  ;;  %v6997_v51 = vadd.f32 %v6865_v17, %v624_v21 }
 0x18d   : > { %v6172_v20 = vpop.eup %6171  ;;  %1066 = vst [vmem:[#allocation2 + $0x10] sm:$0xff] %v6994_v22  ;;  %v908_v23 = vshrl.u32 %v873_v9, 16  ;;  %v911_v24 = vshll.u32 %v873_v9, 16  ;;  %6185 = vrcp.f32 %v788_v11  ;;  %v789_v26 = vadd.f32 1.0, %v6170_v12 }
 0x18e   : > { %v901_v28 = vshrl.u32 %v872_v18, 16  ;;  %v904_v27 = vshll.u32 %v872_v18, 16  ;;  %6187 = vrcp.f32 %v786_v19  ;;  %v787_v30 = vadd.f32 1.0, %v6172_v20  ;;  %v7000_v32 = vpop.f32.mrb[24].mxu0 }
 0x18f   : > { %v6174_v33 = vpop.eup %6173  ;;  %v910_v31 = vrot.slane %v908_v23, 7  ;;  %6189 = vrcp.f32 %v789_v26  ;;  %v748_v35 = vmul.f32 1.442695, %v697_v49  ;;  %v695_v21 = vsub.f32 0.0, %v6997_v51  ;;  %v7003_v37 = vpop.f32.mrb[25].mxu0 }
 0x190   : > { %v6176_v38 = vpop.eup %6175  ;;  %v903_v39 = vrot.slane %v901_v28, 7  ;;  %v848_v42 = vmul.f32 %v6174_v33, %v6913_v0  ;;  %6191 = vrcp.f32 %v787_v30  ;;  %v629_v44 = vmul.f32 %v5273_v47, %v6860_v15  ;;  %v7007_v45 = vpop.f32.mrb[26].mxu0 }
 0x191   : > { %v6178_v50 = vpop.eup %6177  ;;  %v913_v52 = vor.u32 %v911_v24, %v910_v31  ;;  %v1052_v53 = vsel %vm6971_vm3, %v910_v31, 0  ;;  %v846_v55 = vmul.f32 %v6176_v38, %v6917_v5  ;;  %6193 = vpow2.f32 %v748_v35  ;;  %v7012_v57 = vpop.f32.mrb[27].mxu0 }
 0x192   : > { %v6180_v58 = vpop.eup %6179  ;;  %1073 = vst [vmem:[#allocation2 + $0x48] sm:$0xff] %v1052_v53  ;;  %v906_v59 = vor.u32 %v904_v27, %v903_v39  ;;  %v1051_v0 = vsel %vm6971_vm3, %v903_v39, 0  ;;  %v849_v47 = vmul.f32 %v6178_v50, %v6922_v10  ;;  %v744_v60 = vmul.f32 1.442695, %v695_v21 }
 0x193   : > { %v6182_v62 = vpop.eup %6181  ;;  %v7019_v63 = vsel %vm6971_vm3, 0, %v913_v52  ;;  %1071 = vst [vmem:[#allocation2 + $0x38] sm:$0xff] %v1051_v0  ;;  %v847_v5 = vmul.f32 %v6180_v58, %v6926_v16  ;;  %v7023_v1 = vadd.f32 %v6865_v17, %v629_v44  ;;  %v627_v2 = vmul.f32 %v6860_v15, %v6976_v56 }
 0x194   : > { %v6184_v3 = vpop.eup %6183  ;;  %1072 = vst [vmem:[#allocation2 + $0x40] sm:$0xff] %v7019_v63  ;;  %v7030_v10 = vsel %vm6971_vm3, 0, %v906_v59  ;;  %v875_v4 = vpack.c.bf16 %v849_v47, %v848_v42  ;;  %v792_v46 = vadd.f32 1.0, %v6182_v62  ;;  %6195 = vpow2.f32 %v744_v60 }
 0x195   : > { %1070 = vst [vmem:[#allocation2 + $0x30] sm:$0xff] %v7030_v10  ;;  %v874_v6 = vpack.c.bf16 %v847_v5, %v846_v55  ;;  %v790_v16 = vadd.f32 1.0, %v6184_v3  ;;  %v700_v7 = vsub.f32 0.0, %v7023_v1  ;;  %v7035_v8 = vadd.f32 %v6865_v17, %v627_v2 }
 0x196   : > { %v922_v56 = vshrl.u32 %v875_v4, 16  ;;  %v925_v9 = vshll.u32 %v875_v4, 16  ;;  %6197 = vrcp.f32 %v792_v46  ;;  %v630_v11 = vmul.f32 %v6979_v61, %v6860_v15  ;;  %v7039_v49 = vpop.f32.mrb[28].mxu0 }
 0x197   : > { %v6186_v12 = vpop.eup %6185  ;;  %v915_v18 = vshrl.u32 %v874_v6, 16  ;;  %v918_v19 = vshll.u32 %v874_v6, 16  ;;  %6199 = vrcp.f32 %v790_v16  ;;  %v754_v20 = vmul.f32 1.442695, %v700_v7  ;;  %v7041_v23 = vpop.f32.mrb[29].mxu0 }
 0x198   : > { %v6188_v24 = vpop.eup %6187  ;;  %v924_v26 = vrot.slane %v922_v56, 7  ;;  %v852_v28 = vmul.f32 %v6186_v12, %v6933_v36  ;;  %v698_v27 = vsub.f32 0.0, %v7035_v8  ;;  %v7046_v30 = vadd.f32 %v6865_v17, %v630_v11  ;;  %v7048_v33 = vpop.f32.mrb[30].mxu0 }
 0x199   : > { %v6190_v61 = vpop.eup %6189  ;;  %v917_v31 = vrot.slane %v915_v18, 7  ;;  %v850_v35 = vmul.f32 %v6188_v24, %v6937_v41  ;;  %6201 = vpow2.f32 %v754_v20  ;;  %v628_v21 = vmul.f32 %v6860_v15, %v6984_v43  ;;  %v7053_v38 = vpop.f32.mrb[31].mxu0 }
 0x19a   : > { %v6192_v39 = vpop.eup %6191  ;;  %v927_v42 = vor.u32 %v925_v9, %v924_v26  ;;  %v1054_v36 = vsel %vm6971_vm3, %v924_v26, 0  ;;  %v853_v44 = vmul.f32 %v6190_v61, %v6942_v48  ;;  %v750_v50 = vmul.f32 1.442695, %v698_v27 }
 0x19b   : > { %v6194_v52 = vpop.eup %6193  ;;  %1077 = vst [vmem:[#allocation2 + $0x68] sm:$0xff] %v1054_v36  ;;  %v920_v53 = vor.u32 %v918_v19, %v917_v31  ;;  %v1053_v41 = vsel %vm6971_vm3, %v917_v31, 0  ;;  %v851_v55 = vmul.f32 %v6192_v39, %v6946_v54  ;;  %v701_v43 = vsub.f32 0.0, %v7046_v30 }
 0x19c   : > { %v7064_v58 = vsel %vm6971_vm3, 0, %v927_v42  ;;  %1075 = vst [vmem:[#allocation2 + $0x58] sm:$0xff] %v1053_v41  ;;  %v877_v59 = vpack.c.bf16 %v853_v44, %v852_v28  ;;  %v793_v0 = vadd.f32 1.0, %v6194_v52  ;;  %6203 = vpow2.f32 %v750_v50 }
 0x19d   : > { %1076 = vst [vmem:[#allocation2 + $0x60] sm:$0xff] %v7064_v58  ;;  %v7069_v48 = vsel %vm6971_vm3, 0, %v920_v53  ;;  %v876_v47 = vpack.c.bf16 %v851_v55, %v850_v35  ;;  %v756_v60 = vmul.f32 1.442695, %v701_v43  ;;  %v7072_v54 = vadd.f32 %v6865_v17, %v628_v21 }
 0x19e   : > { %v6196_v62 = vpop.eup %6195  ;;  %1074 = vst [vmem:[#allocation2 + $0x50] sm:$0xff] %v7069_v48  ;;  %v936_v5 = vshrl.u32 %v877_v59, 16  ;;  %v939_v2 = vshll.u32 %v877_v59, 16  ;;  %6205 = vrcp.f32 %v793_v0  ;;  %v633_v3 = vmul.f32 %v7000_v32, %v6860_v15 }
 0x19f   : > { %v929_v4 = vshrl.u32 %v876_v47, 16  ;;  %v932_v46 = vshll.u32 %v876_v47, 16  ;;  %v791_v6 = vadd.f32 1.0, %v6196_v62  ;;  %6207 = vpow2.f32 %v756_v60 }
 0x1a0   : > { %v6198_v16 = vpop.eup %6197  ;;  %v938_v7 = vrot.slane %v936_v5, 7  ;;  %v699_v56 = vsub.f32 0.0, %v7072_v54  ;;  %v7079_v9 = vadd.f32 %v6865_v17, %v633_v3  ;;  %v631_v11 = vmul.f32 %v6860_v15, %v7003_v37 }
 0x1a1   : > { %v6200_v12 = vpop.eup %6199  ;;  %v931_v18 = vrot.slane %v929_v4, 7  ;;  %v856_v19 = vmul.f32 %v6198_v16, %v6956_v13  ;;  %6209 = vrcp.f32 %v791_v6  ;;  %v634_v32 = vmul.f32 %v7007_v45, %v6860_v15 }
 0x1a2   : > { %v941_v20 = vor.u32 %v939_v2, %v938_v7  ;;  %v1056_v24 = vsel %vm6971_vm3, %v938_v7, 0  ;;  %v854_v26 = vmul.f32 %v6200_v12, %v6961_v25  ;;  %v752_v28 = vmul.f32 1.442695, %v699_v56 }
 0x1a3   : > { %v6202_v27 = vpop.eup %6201  ;;  %1081 = vst [vmem:[#allocation2 + $0x88] sm:$0xff] %v1056_v24  ;;  %v934_v61 = vor.u32 %v932_v46, %v931_v18  ;;  %v1055_v37 = vsel %vm6971_vm3, %v931_v18, 0  ;;  %v704_v31 = vsub.f32 0.0, %v7079_v9  ;;  %v7093_v13 = vadd.f32 %v6865_v17, %v631_v11 }
 0x1a4   : > { %v7097_v45 = vsel %vm6971_vm3, 0, %v941_v20  ;;  %1079 = vst [vmem:[#allocation2 + $0x78] sm:$0xff] %v1055_v37  ;;  %v796_v35 = vadd.f32 1.0, %v6202_v27  ;;  %6211 = vpow2.f32 %v752_v28  ;;  %v7100_v25 = vadd.f32 %v6865_v17, %v634_v32  ;;  %v1136_v28 = vld [vmem:[#allocation2 + $0x18] sm:$0x1] }
 0x1a5   : > { %1080 = vst [vmem:[#allocation2 + $0x80] sm:$0xff] %v7097_v45  ;;  %v7105_v21 = vsel %vm6971_vm3, 0, %v934_v61  ;;  %v762_v39 = vmul.f32 1.442695, %v704_v31  ;;  %v702_v42 = vsub.f32 0.0, %v7093_v13  ;;  %v632_v36 = vmul.f32 %v6860_v15, %v7012_v57 }
 0x1a6   : > { %v6204_v44 = vpop.eup %6203  ;;  %1078 = vst [vmem:[#allocation2 + $0x70] sm:$0xff] %v7105_v21  ;;  %6213 = vrcp.f32 %v796_v35  ;;  %v705_v50 = vsub.f32 0.0, %v7100_v25  ;;  %v637_v52 = vmul.f32 %v7039_v49, %v6860_v15  ;;  %v635_v53 = vmul.f32 %v6860_v15, %v7041_v23  ;;  %v7144_v35 = vld [vmem:[#allocation2 + $0x18] sm:$0x1] }
 0x1a7   : > { %v794_v41 = vadd.f32 1.0, %v6204_v44  ;;  %6215 = vpow2.f32 %v762_v39  ;;  %v758_v55 = vmul.f32 1.442695, %v702_v42  ;;  %v7117_v43 = vadd.f32 %v6865_v17, %v632_v36 }
 0x1a8   : > { %v6206_v59 = vpop.eup %6205  ;;  %v764_v57 = vmul.f32 1.442695, %v705_v50  ;;  %v7120_v0 = vadd.f32 %v6865_v17, %v637_v52  ;;  %v7123_v47 = vadd.f32 %v6865_v17, %v635_v53  ;;  %v638_v49 = vmul.f32 %v7048_v33, %v6860_v15 }
 0x1a9   : > { %v6208_v60 = vpop.eup %6207  ;;  %v857_v23 = vmul.f32 %v6206_v59, %v6967_v34  ;;  %6217 = vrcp.f32 %v794_v41  ;;  %v703_v62 = vsub.f32 0.0, %v7117_v43  ;;  %v636_v5 = vmul.f32 %v6860_v15, %v7053_v38  ;;  %v7153_v59 = vld [vmem:[#allocation2 + $0x20] sm:$0xff] }
 0x1aa   : > { %v797_v2 = vadd.f32 1.0, %v6208_v60  ;;  %6219 = vpow2.f32 %v758_v55  ;;  %v708_v3 = vsub.f32 0.0, %v7120_v0  ;;  %v706_v4 = vsub.f32 0.0, %v7123_v47 }
 0x1ab   : > { %v6210_v46 = vpop.eup %6209  ;;  %v879_v6 = vpack.c.bf16 %v857_v23, %v856_v19  ;;  %6221 = vpow2.f32 %v764_v57  ;;  %v760_v16 = vmul.f32 1.442695, %v703_v62  ;;  %v7134_v33 = vadd.f32 %v6865_v17, %v638_v49 }
 0x1ac   : > { %v855_v34 = vmul.f32 %v6210_v46, %v6997_v51  ;;  %6223 = vrcp.f32 %v797_v2  ;;  %v770_v7 = vmul.f32 1.442695, %v708_v3  ;;  %v766_v56 = vmul.f32 1.442695, %v706_v4  ;;  %v1137_v4 = vld [vmem:[#allocation2 + $0x28] sm:$0x1] }
 0x1ad   : > { %v950_v11 = vshrl.u32 %v879_v6, 16  ;;  %6225 = vpow2.f32 %v760_v16  ;;  %v709_v15 = vsub.f32 0.0, %v7134_v33  ;;  %v953_v12 = vshll.u32 %v879_v6, 16  ;;  %v6075_v46 = vld [vmem:[#allocation8 + $0x8] sm:$0xff]  }
 0x1ae   : > { %v6212_v38 = vpop.eup %6211  ;;  %v878_v18 = vpack.c.bf16 %v855_v34, %v854_v26  ;;  %6227 = vpow2.f32 %v770_v7  ;;  %v7139_v19 = vadd.f32 %v6865_v17, %v636_v5  ;;  %v1165_v37 = vshrl.u32 %v6994_v22, 16 }
 0x1af   : > { %v952_v32 = vrot.slane %v950_v11, 7  ;;  %v795_v20 = vadd.f32 1.0, %v6212_v38  ;;  %6229 = vpow2.f32 %v766_v56  ;;  %v772_v24 = vmul.f32 1.442695, %v709_v15  ;;  %v7164_v11 = vld [vmem:[#allocation2 + $0x28] sm:$0x1] }
 0x1b0   : > { %v6214_v51 = vpop.eup %6213  ;;  %v943_v27 = vshrl.u32 %v878_v18, 16  ;;  %v707_v61 = vsub.f32 0.0, %v7139_v19  ;;  %v1167_v31 = vshll.u32 %v6994_v22, 16  ;;  %v946_v42 = vshll.u32 %v878_v18, 16 }
 0x1b1   : > { %v6216_v26 = vpop.eup %6215  ;;  %v955_v39 = vor.u32 %v953_v12, %v952_v32  ;;  %v1058_v17 = vsel %vm6971_vm3, %v952_v32, 0  ;;  %6231 = vrcp.f32 %v795_v20  ;;  %v1172_v41 = vshll.u32 %v1136_v28, 16 }
 0x1b2   : > { %1085 = vst [vmem:[#allocation2 + $0xa8] sm:$0xff] %v1058_v17  ;;  %v945_v36 = vrot.slane %v943_v27, 7  ;;  %v800_v44 = vadd.f32 1.0, %v6216_v26  ;;  %6233 = vpow2.f32 %v772_v24  ;;  %v768_v50 = vmul.f32 1.442695, %v707_v61 }
 0x1b3   : > { %v6218_v52 = vpop.eup %6217  ;;  %v7150_v53 = vsel %vm6971_vm3, 0, %v955_v39  ;;  %v1169_v22 = vrot.slane %v1167_v31, 1  ;;  %v2480_v55 = vshll.u32 %v7144_v35, 16  ;;  %v860_v23 = vmul.f32 %v6214_v51, %v7023_v1  ;;  %v6076_v39 = vld [vmem:[#allocation8 + $0x10] sm:$0xff]  }
 0x1b4   : > { %v6220_v57 = vpop.eup %6219  ;;  %1084 = vst [vmem:[#allocation2 + $0xa0] sm:$0xff] %v7150_v53  ;;  %v948_v49 = vor.u32 %v946_v42, %v945_v36  ;;  %v1057_v60 = vsel %vm6971_vm3, %v945_v36, 0  ;;  %6235 = vrcp.f32 %v800_v44  ;;  %v1174_v3 = vrot.slane %v1172_v41, 1 }
 0x1b5   : > { %v6222_v62 = vpop.eup %6221  ;;  %1083 = vst [vmem:[#allocation2 + $0x98] sm:$0xff] %v1057_v60  ;;  %v798_v5 = vadd.f32 1.0, %v6220_v57  ;;  %6237 = vpow2.f32 %v768_v50  ;;  %v1170_v2 = vor.u32 %v1169_v22, %v1165_v37  ;;  %v2482_v7 = vrot.slane %v2480_v55, 1  ;;  %v7174_v50 = vld [vmem:[#allocation2 + $0x38] sm:$0x1] }
 0x1b6   : > { %v6224_v6 = vpop.eup %6223  ;;  %v7161_v16 = vsel %vm6971_vm3, 0, %v948_v49  ;;  %v801_v34 = vadd.f32 1.0, %v6222_v62  ;;  %v1177_v56 = vshrl.u32 %v7153_v59, 16  ;;  %v1179_v12 = vshll.u32 %v7153_v59, 16  ;;  %v7176_v22 = vld [vmem:[#allocation2 + $0x38] sm:$0x1] }
 0x1b7   : > { %v6226_v1 = vpop.eup %6225  ;;  %1082 = vst [vmem:[#allocation2 + $0x90] sm:$0xff] %v7161_v16  ;;  %v861_v15 = vmul.f32 %v6224_v6, %v7046_v30  ;;  %6239 = vrcp.f32 %v798_v5  ;;  %v1175_v38 = vsel %vm1151_vm0, %v1170_v2, %v1174_v3  ;;  %v2483_v20 = vsel %vm1151_vm0, %v1170_v2, %v2482_v7 }
 0x1b8   : > { %v6228_v18 = vpop.eup %6227  ;;  %6241 = vrcp.f32 %v801_v34  ;;  %v799_v32 = vadd.f32 1.0, %v6226_v1  ;;  %5300 = vmatmul.mubr.bf16.vlgmr.msra.gmra.mrb[32].mxu0 %v1175_v38  ;;  %v1184_v24 = vshll.u32 %v1137_v4, 16  ;;  %5491 = vmatprep.mubr.bf16.mxu1 %v2483_v20  ;;  %v1181_v61 = vrot.slane %v1179_v12, 1  ;;  %v6078_v4 = vld [vmem:[#allocation8 + $0x18] sm:$0xff]   ;;  %v7191_v12 = vld [vmem:[#allocation2 + $0x40] sm:$0xff] }
 0x1b9   : > { %v6230_v28 = vpop.eup %6229  ;;  %v881_v51 = vpack.c.bf16 %v861_v15, %v860_v23  ;;  %v804_v27 = vadd.f32 1.0, %v6228_v18  ;;  %v2492_v37 = vshll.u32 %v7164_v11, 16  ;;  %5332 = vmatpush3.bf16.msra.mxu0 %v6881_v29  ;;  %v858_v30 = vmul.f32 %v6218_v52, %v7035_v8  ;;  %v6070_v23 = vld [vmem:[#allocation8 + $0x148] sm:$0xff]  }
 0x1ba   : > { %6243 = vrcp.f32 %v799_v32  ;;  %v802_v31 = vadd.f32 1.0, %v6230_v28  ;;  %v1186_v26 = vrot.slane %v1184_v24, 1  ;;  %5333 = vmatprep.subr.bf16.mxu0 %v6075_v46  ;;  %v1182_v44 = vor.u32 %v1181_v61, %v1177_v56  ;;  %v6071_v61 = vld [vmem:[#allocation8 + $0x150] sm:$0xff]  }
 0x1bb   : > { %v6232_v17 = vpop.eup %6231  ;;  %v964_v42 = vshrl.u32 %v881_v51, 16  ;;  %v967_v36 = vshll.u32 %v881_v51, 16  ;;  %6245 = vrcp.f32 %v804_v27  ;;  %v2494_v29 = vrot.slane %v2492_v37, 1 }
 0x1bc   : > { %v6234_v41 = vpop.eup %6233  ;;  %v859_v55 = vmul.f32 %v6232_v17, %v7072_v54  ;;  %6247 = vrcp.f32 %v802_v31  ;;  %v1189_v8 = vshrl.u32 %v7030_v10, 16  ;;  %v1187_v49 = vsel %vm1151_vm0, %v1182_v44, %v1186_v26  ;;  %v7203_v26 = vld [vmem:[#allocation2 + $0x48] sm:$0x1]  ;;  %v6079_v17 = vld [vmem:[#allocation8 + $0x20] sm:$0xff]  }
 0x1bd   : > { %v966_v52 = vrot.slane %v964_v42, 7  ;;  %v805_v57 = vadd.f32 1.0, %v6234_v41  ;;  %v1191_v60 = vshll.u32 %v7030_v10, 16  ;;  %5334 = vmatpush3.bf16.msra.mxu0 %v6075_v46  ;;  %5303 = vmatprep.mubr.bf16.mxu0 %v1187_v49  ;;  %v2495_v2 = vsel %vm1151_vm0, %v1182_v44, %v2494_v29  ;;  %v7188_v46 = vld [vmem:[#allocation2 + $0x48] sm:$0x1] }
 0x1be   : > { %v6236_v62 = vpop.eup %6235  ;;  %v880_v5 = vpack.c.bf16 %v859_v55, %v858_v30  ;;  %v1196_v3 = vshll.u32 %v7174_v50, 16  ;;  %v2504_v54 = vshll.u32 %v7176_v22, 16  ;;  %5335 = vmatprep.subr.bf16.mxu0 %v6076_v39  ;;  %5492 = vmatmul.mubr.bf16.vlgmr.msra.gmra.mrb[0].mxu1 %v2495_v2  ;;  %v1201_v24 = vshrl.u32 %v7019_v63, 16 }
 0x1bf   : > { %v6238_v6 = vpop.eup %6237  ;;  %v969_v34 = vor.u32 %v967_v36, %v966_v52  ;;  %v1060_v7 = vsel %vm6971_vm3, %v966_v52, 0  ;;  %v864_v10 = vmul.f32 %v6236_v62, %v7079_v9  ;;  %6249 = vrcp.f32 %v805_v57  ;;  %5524 = vmatpush3.bf16.msra.mxu1 %v6854_v14  ;;  %v6072_v52 = vld [vmem:[#allocation8 + $0x158] sm:$0xff]  }
 0x1c0   : > { %1089 = vst [vmem:[#allocation2 + $0xc8] sm:$0xff] %v1060_v7  ;;  %v957_v56 = vshrl.u32 %v880_v5, 16  ;;  %v960_v1 = vshll.u32 %v880_v5, 16  ;;  %v803_v15 = vadd.f32 1.0, %v6238_v6  ;;  %v1193_v38 = vrot.slane %v1191_v60, 1  ;;  %5525 = vmatprep.subr.bf16.mxu1 %v6070_v23  ;;  %v6081_v6 = vld [vmem:[#allocation8 + $0x28] sm:$0xff]  }
 0x1c1   : > { %v6240_v18 = vpop.eup %6239  ;;  %v7195_v32 = vsel %vm6971_vm3, 0, %v969_v34  ;;  %v1198_v20 = vrot.slane %v1196_v3, 1  ;;  %v2506_v9 = vrot.slane %v2504_v54, 1  ;;  %5336 = vmatpush3.bf16.msra.mxu0 %v6076_v39  ;;  %v1203_v30 = vshll.u32 %v7019_v63, 16  ;;  %v7220_v54 = vld [vmem:[#allocation2 + $0x58] sm:$0x1] }
 0x1c2   : > { %v6242_v28 = vpop.eup %6241  ;;  %1088 = vst [vmem:[#allocation2 + $0xc0] sm:$0xff] %v7195_v32  ;;  %v959_v51 = vrot.slane %v957_v56, 7  ;;  %v862_v14 = vmul.f32 %v6240_v18, %v7093_v13  ;;  %6251 = vrcp.f32 %v803_v15  ;;  %v1194_v27 = vor.u32 %v1193_v38, %v1189_v8  ;;  %5337 = vmatprep.subr.bf16.mxu0 %v6078_v4  ;;  %v6074_v56 = vld [vmem:[#allocation8 + $0x160] sm:$0xff]  }
 0x1c3   : > { %v865_v37 = vmul.f32 %v6242_v28, %v7100_v25  ;;  %v1208_v31 = vshll.u32 %v7188_v46, 16  ;;  %v2509_v39 = vshrl.u32 %v7191_v12, 16  ;;  %5526 = vmatpush3.bf16.msra.mxu1 %v6070_v23  ;;  %v1205_v29 = vrot.slane %v1203_v30, 1 }
 0x1c4   : > { %v6244_v42 = vpop.eup %6243  ;;  %v962_v36 = vor.u32 %v960_v1, %v959_v51  ;;  %v1059_v13 = vsel %vm6971_vm3, %v959_v51, 0  ;;  %v1199_v44 = vsel %vm1151_vm0, %v1194_v27, %v1198_v20  ;;  %v2507_v41 = vsel %vm1151_vm0, %v1194_v27, %v2506_v9  ;;  %5527 = vmatprep.subr.bf16.mxu1 %v6071_v61  ;;  %v7224_v20 = vld [vmem:[#allocation2 + $0x58] sm:$0x1] }
 0x1c5   : > { %v6246_v25 = vpop.eup %6245  ;;  %1087 = vst [vmem:[#allocation2 + $0xb8] sm:$0xff] %v1059_v13  ;;  %v883_v63 = vpack.c.bf16 %v865_v37, %v864_v10  ;;  %v863_v55 = vmul.f32 %v6244_v42, %v7117_v43  ;;  %5304 = vmatmul.mubr.bf16.gmra.mrb[36].mxu0 %v1199_v44  ;;  %5495 = vmatprep.mubr.bf16.mxu1 %v2507_v41  ;;  %v1210_v8 = vrot.slane %v1208_v31, 1  ;;  %v2511_v62 = vshll.u32 %v7191_v12, 16  ;;  %v7240_v44 = vld [vmem:[#allocation2 + $0x68] sm:$0x1] }
 0x1c6   : > { %v6248_v57 = vpop.eup %6247  ;;  %v7213_v49 = vsel %vm6971_vm3, 0, %v962_v36  ;;  %v868_v60 = vmul.f32 %v6246_v25, %v7120_v0  ;;  %v2516_v23 = vshll.u32 %v7203_v26, 16  ;;  %5338 = vmatpush3.bf16.msra.mxu0 %v6078_v4  ;;  %v1206_v34 = vor.u32 %v1205_v29, %v1201_v24  ;;  %v6077_v29 = vld [vmem:[#allocation8 + $0x168] sm:$0xff]  }
 0x1c7   : > { %1086 = vst [vmem:[#allocation2 + $0xb0] sm:$0xff] %v7213_v49  ;;  %v978_v43 = vshrl.u32 %v883_v63, 16  ;;  %v981_v5 = vshll.u32 %v883_v63, 16  ;;  %v882_v2 = vpack.c.bf16 %v863_v55, %v862_v14  ;;  %v866_v3 = vmul.f32 %v6248_v57, %v7123_v47  ;;  %5339 = vmatprep.subr.bf16.mxu0 %v6079_v17  ;;  %5528 = vmatpush3.bf16.msra.mxu1 %v6071_v61  ;;  %v7243_v55 = vld [vmem:[#allocation2 + $0x68] sm:$0x1] }
 0x1c8   : > { %v2513_v7 = vrot.slane %v2511_v62, 1  ;;  %v2518_v0 = vrot.slane %v2516_v23, 1  ;;  %v1213_v10 = vshrl.u32 %v7069_v48, 16  ;;  %v1215_v18 = vshll.u32 %v7069_v48, 16  ;;  %5529 = vmatprep.subr.bf16.mxu1 %v6072_v52  ;;  %v6082_v48 = vld [vmem:[#allocation8 + $0x30] sm:$0xff]  }
 0x1c9   : > { %v6250_v1 = vpop.eup %6249  ;;  %v980_v4 = vrot.slane %v978_v43, 7  ;;  %v971_v15 = vshrl.u32 %v882_v2, 16  ;;  %v974_v38 = vshll.u32 %v882_v2, 16  ;;  %v1211_v9 = vsel %vm1151_vm0, %v1206_v34, %v1210_v8  ;;  %v7254_v2 = vld [vmem:[#allocation2 + $0x78] sm:$0x1] }
 0x1ca   : > { %v869_v47 = vmul.f32 %v6250_v1, %v7134_v33  ;;  %v2514_v24 = vor.u32 %v2513_v7, %v2509_v39  ;;  %v1220_v28 = vshll.u32 %v7220_v54, 16  ;;  %5340 = vmatpush3.bf16.msra.mxu0 %v6079_v17  ;;  %5307 = vmatprep.mubr.bf16.mxu0 %v1211_v9  ;;  %v1217_v61 = vrot.slane %v1215_v18, 1 }
 0x1cb   : > { %v983_v51 = vor.u32 %v981_v5, %v980_v4  ;;  %v1062_v14 = vsel %vm6971_vm3, %v980_v4, 0  ;;  %v973_v27 = vrot.slane %v971_v15, 7  ;;  %5341 = vmatprep.subr.bf16.mxu0 %v6081_v6  ;;  %v2528_v39 = vshll.u32 %v7224_v20, 16  ;;  %5530 = vmatpush3.bf16.msra.mxu1 %v6072_v52 }
 0x1cc   : > { %v6252_v37 = vpop.eup %6251  ;;  %1093 = vst [vmem:[#allocation2 + $0xe8] sm:$0xff] %v1062_v14  ;;  %v885_v30 = vpack.c.bf16 %v869_v47, %v868_v60  ;;  %v2519_v33 = vsel %vm1151_vm0, %v2514_v24, %v2518_v0  ;;  %v1222_v31 = vrot.slane %v1220_v28, 1  ;;  %5531 = vmatprep.subr.bf16.mxu1 %v6074_v56  ;;  %v1218_v25 = vor.u32 %v1217_v61, %v1213_v10  ;;  %v6084_v60 = vld [vmem:[#allocation8 + $0x38] sm:$0xff]   ;;  %v7265_v24 = vld [vmem:[#allocation8 + $0x80] sm:$0xff]   ;;  %v7274_v61 = vld [vmem:[#allocation2 + $0x88] sm:$0x1] }
 0x1cd   : > { %v7235_v17 = vsel %vm6971_vm3, 0, %v983_v51  ;;  %v976_v42 = vor.u32 %v974_v38, %v973_v27  ;;  %v1061_v36 = vsel %vm6971_vm3, %v973_v27, 0  ;;  %v867_v13 = vmul.f32 %v6252_v37, %v7139_v19  ;;  %5496 = vmatmul.mubr.bf16.gmra.mrb[4].mxu1 %v2519_v33  ;;  %v7258_v10 = vld [vmem:[#allocation2 + $0x78] sm:$0x1] }
 0x1ce   : > { %1092 = vst [vmem:[#allocation2 + $0xe0] sm:$0xff] %v7235_v17  ;;  %1091 = vst [vmem:[#allocation2 + $0xd8] sm:$0xff] %v1061_v36  ;;  %v992_v41 = vshrl.u32 %v885_v30, 16  ;;  %v2530_v63 = vrot.slane %v2528_v39, 1  ;;  %5342 = vmatpush3.bf16.msra.mxu0 %v6081_v6  ;;  %v995_v52 = vshll.u32 %v885_v30, 16  ;;  %v1227_v57 = vshll.u32 %v7064_v58, 16 }
 0x1cf   : > { %v7247_v8 = vsel %vm6971_vm3, 0, %v976_v42  ;;  %v884_v19 = vpack.c.bf16 %v867_v13, %v866_v3  ;;  %5343 = vmatprep.subr.bf16.mxu0 %v6082_v48  ;;  %v1223_v23 = vsel %vm1151_vm0, %v1218_v25, %v1222_v31  ;;  %v1232_v5 = vshll.u32 %v7240_v44, 16  ;;  %5532 = vmatpush3.bf16.msra.mxu1 %v6074_v56  ;;  %v6080_v6 = vld [vmem:[#allocation8 + $0x170] sm:$0xff]   ;;  %v7281_v31 = vld [vmem:[#allocation2 + $0x98] sm:$0x1] }
 0x1d0   : > { %1090 = vst [vmem:[#allocation2 + $0xd0] sm:$0xff] %v7247_v8  ;;  %v994_v62 = vrot.slane %v992_v41, 7  ;;  %v2531_v43 = vsel %vm1151_vm0, %v1218_v25, %v2530_v63  ;;  %5308 = vmatmul.mubr.bf16.gmra.mrb[40].mxu0 %v1223_v23  ;;  %v1225_v3 = vshrl.u32 %v7064_v58, 16  ;;  %v1229_v7 = vrot.slane %v1227_v57, 1  ;;  %5533 = vmatprep.subr.bf16.mxu1 %v6077_v29  ;;  %v7263_v58 = vld [vmem:[#allocation2 + $0x88] sm:$0x1] }
 0x1d1   : > { %v985_v34 = vshrl.u32 %v884_v19, 16  ;;  %5499 = vmatprep.mubr.bf16.mxu1 %v2531_v43  ;;  %v2540_v0 = vshll.u32 %v7243_v55, 16  ;;  %v988_v15 = vshll.u32 %v884_v19, 16  ;;  %v1234_v38 = vrot.slane %v1232_v5, 1  ;;  %v7284_v41 = vld [vmem:[#allocation2 + $0x98] sm:$0x1] }
 0x1d2   : > { %v997_v1 = vor.u32 %v995_v52, %v994_v62  ;;  %v1064_v4 = vsel %vm6971_vm3, %v994_v62, 0  ;;  %5344 = vmatpush3.bf16.msra.mxu0 %v6082_v48  ;;  %v1230_v18 = vor.u32 %v1229_v7, %v1225_v3  ;;  %v1239_v9 = vshll.u32 %v7105_v21, 16  ;;  %v7296_v43 = vld [vmem:[#allocation2 + $0xa8] sm:$0x1] }
 0x1d3   : > { %1097 = vst [vmem:[#allocation2 + $0x108] sm:$0xff] %v1064_v4  ;;  %v987_v56 = vrot.slane %v985_v34, 7  ;;  %v2542_v47 = vrot.slane %v2540_v0, 1  ;;  %5345 = vmatprep.subr.bf16.mxu0 %v6084_v60  ;;  %v1237_v51 = vshrl.u32 %v7105_v21, 16  ;;  %v1244_v14 = vshll.u32 %v7254_v2, 16  ;;  %5534 = vmatpush3.bf16.msra.mxu1 %v6077_v29  ;;  %v6083_v21 = vld [vmem:[#allocation8 + $0x178] sm:$0xff]  }
 0x1d4   : > { %v7269_v28 = vsel %vm6971_vm3, 0, %v997_v1  ;;  %v2552_v27 = vshll.u32 %v7258_v10, 16  ;;  %v1235_v30 = vsel %vm1151_vm0, %v1230_v18, %v1234_v38  ;;  %5535 = vmatprep.subr.bf16.mxu1 %v6080_v6  ;;  %v1241_v39 = vrot.slane %v1239_v9, 1  ;;  %v7305_v4 = vld [vmem:[#allocation2 + $0xa8] sm:$0x1] }
 0x1d5   : > { %1096 = vst [vmem:[#allocation2 + $0x100] sm:$0xff] %v7269_v28  ;;  %v990_v48 = vor.u32 %v988_v15, %v987_v56  ;;  %v1063_v37 = vsel %vm6971_vm3, %v987_v56, 0  ;;  %v2543_v33 = vsel %vm1151_vm0, %v1230_v18, %v2542_v47  ;;  %5311 = vmatprep.mubr.bf16.mxu0 %v1235_v30  ;;  %v1246_v42 = vrot.slane %v1244_v14, 1  ;;  %v7310_v9 = vld [vmem:[#allocation2 + $0xb8] sm:$0x1] }
 0x1d6   : > { %1095 = vst [vmem:[#allocation2 + $0xf8] sm:$0xff] %v1063_v37  ;;  %5500 = vmatmul.mubr.bf16.gmra.mrb[8].mxu1 %v2543_v33  ;;  %v2554_v36 = vrot.slane %v2552_v27, 1  ;;  %v1251_v13 = vshll.u32 %v7097_v45, 16  ;;  %v1249_v63 = vshrl.u32 %v7097_v45, 16  ;;  %v1256_v29 = vshll.u32 %v7263_v58, 16  ;;  %5346 = vmatpush3.bf16.msra.mxu0 %v6084_v60  ;;  %v7301_v60 = vld [vmem:[#allocation8 + $0x180] sm:$0xff]  }
 0x1d7   : > { %v7288_v25 = vsel %vm6971_vm3, 0, %v990_v48  ;;  %v2564_v52 = vshll.u32 %v7274_v61, 16  ;;  %v1242_v19 = vor.u32 %v1241_v39, %v1237_v51  ;;  %v1263_v62 = vshll.u32 %v7161_v16, 16  ;;  %5536 = vmatpush3.bf16.msra.mxu1 %v6080_v6  ;;  %5379 = vmatprep.subr.bf16.mxu0 %v7265_v24  ;;  %v7314_v48 = vld [vmem:[#allocation2 + $0xb8] sm:$0x1] }
 0x1d8   : > { %1094 = vst [vmem:[#allocation2 + $0xf0] sm:$0xff] %v7288_v25  ;;  %v1253_v57 = vrot.slane %v1251_v13, 1  ;;  %v1268_v23 = vshll.u32 %v7281_v31, 16  ;;  %v1258_v40 = vrot.slane %v1256_v29, 1  ;;  %v1261_v5 = vshrl.u32 %v7161_v16, 16  ;;  %5537 = vmatprep.subr.bf16.mxu1 %v6083_v21 }
 0x1d9   : > { %v2566_v45 = vrot.slane %v2564_v52, 1  ;;  %v2576_v34 = vshll.u32 %v7284_v41, 16  ;;  %v1247_v3 = vsel %vm1151_vm0, %v1242_v19, %v1246_v42  ;;  %v2555_v7 = vsel %vm1151_vm0, %v1242_v19, %v2554_v36  ;;  %v7324_v29 = vld [vmem:[#allocation2 + $0xc8] sm:$0x1] }
 0x1da   : > { %v1254_v0 = vor.u32 %v1253_v57, %v1249_v63  ;;  %v1265_v1 = vrot.slane %v1263_v62, 1  ;;  %5312 = vmatmul.mubr.bf16.gmra.mrb[44].mxu0 %v1247_v3  ;;  %5503 = vmatprep.mubr.bf16.mxu1 %v2555_v7  ;;  %v1275_v15 = vshll.u32 %v7150_v53, 16  ;;  %v1280_v38 = vshll.u32 %v7296_v43, 16 }
 0x1db   : > { %v2578_v6 = vrot.slane %v2576_v34, 1  ;;  %v1270_v47 = vrot.slane %v1268_v23, 1  ;;  %5538 = vmatpush3.bf16.msra.mxu1 %v6083_v21  ;;  %v2588_v27 = vshll.u32 %v7305_v4, 16  ;;  %v1287_v37 = vshll.u32 %v7213_v49, 16  ;;  %v7327_v23 = vld [vmem:[#allocation2 + $0xd8] sm:$0x1] }
 0x1dc   : > { %v1259_v56 = vsel %vm1151_vm0, %v1254_v0, %v1258_v40  ;;  %v1266_v18 = vor.u32 %v1265_v1, %v1261_v5  ;;  %v2567_v51 = vsel %vm1151_vm0, %v1254_v0, %v2566_v45  ;;  %v1277_v14 = vrot.slane %v1275_v15, 1  ;;  %5571 = vmatprep.subr.bf16.mxu1 %v7301_v60  ;;  %v7329_v45 = vld [vmem:[#allocation2 + $0xc8] sm:$0x1] }
 0x1dd   : > { %5315 = vmatprep.mubr.bf16.mxu0 %v1259_v56  ;;  %v1273_v33 = vshrl.u32 %v7150_v53, 16  ;;  %v1282_v39 = vrot.slane %v1280_v38, 1  ;;  %v1289_v21 = vrot.slane %v1287_v37, 1  ;;  %v2600_v42 = vshll.u32 %v7310_v9, 16  ;;  %v7338_v56 = vld [vmem:[#allocation2 + $0xd8] sm:$0x1] }
 0x1de   : > { %5504 = vmatmul.mubr.bf16.gmra.mrb[12].mxu1 %v2567_v51  ;;  %v2579_v30 = vsel %vm1151_vm0, %v1266_v18, %v2578_v6  ;;  %v1271_v36 = vsel %vm1151_vm0, %v1266_v18, %v1270_v47  ;;  %v1285_v13 = vshrl.u32 %v7213_v49, 16  ;;  %v1292_v63 = vshll.u32 %v7314_v48, 16 }
 0x1df   : > { %5507 = vmatprep.mubr.bf16.mxu1 %v2579_v30  ;;  %v1278_v52 = vor.u32 %v1277_v14, %v1273_v33  ;;  %v2590_v19 = vrot.slane %v2588_v27, 1  ;;  %v2602_v57 = vrot.slane %v2600_v42, 1  ;;  %v1299_v62 = vshll.u32 %v7195_v32, 16  ;;  %v7344_v33 = vld [vmem:[#allocation2 + $0xe8] sm:$0x1] }
 0x1e0   : > { %v1290_v40 = vor.u32 %v1289_v21, %v1285_v13  ;;  %v1304_v34 = vshll.u32 %v7324_v29, 16  ;;  %v1311_v3 = vshll.u32 %v7247_v8, 16  ;;  %v1294_v7 = vrot.slane %v1292_v63, 1  ;;  %v7349_v63 = vld [vmem:[#allocation2 + $0xe8] sm:$0x1] }
 0x1e1   : > { %v1283_v5 = vsel %vm1151_vm0, %v1278_v52, %v1282_v39  ;;  %v2624_v1 = vshll.u32 %v7327_v23, 16  ;;  %v2591_v6 = vsel %vm1151_vm0, %v1278_v52, %v2590_v19  ;;  %v1301_v15 = vrot.slane %v1299_v62, 1 }
 0x1e2   : > { %5316 = vmatmul.mubr.bf16.gmra.mrb[48].mxu0 %v1271_v36  ;;  %v2603_v0 = vsel %vm1151_vm0, %v1290_v40, %v2602_v57  ;;  %v2612_v38 = vshll.u32 %v7329_v45, 16  ;;  %v1313_v18 = vrot.slane %v1311_v3, 1  ;;  %v1297_v47 = vshrl.u32 %v7195_v32, 16  ;;  %v7347_v36 = vld [vmem:[#allocation2 + $0xf8] sm:$0x1] }
 0x1e3   : > { %5319 = vmatprep.mubr.bf16.mxu0 %v1283_v5  ;;  %v1306_v51 = vrot.slane %v1304_v34, 1  ;;  %v1295_v14 = vsel %vm1151_vm0, %v1290_v40, %v1294_v7  ;;  %v1309_v27 = vshrl.u32 %v7247_v8, 16  ;;  %v1316_v37 = vshll.u32 %v7338_v56, 16 }
 0x1e4   : > { %v2626_v30 = vrot.slane %v2624_v1, 1  ;;  %v1302_v39 = vor.u32 %v1301_v15, %v1297_v47  ;;  %v2614_v21 = vrot.slane %v2612_v38, 1  ;;  %v1323_v42 = vshll.u32 %v7235_v17, 16 }
 0x1e5   : > { %v1314_v13 = vor.u32 %v1313_v18, %v1309_v27  ;;  %v1335_v52 = vshll.u32 %v7288_v25, 16  ;;  %v1328_v57 = vshll.u32 %v7344_v33, 16  ;;  %v1318_v62 = vrot.slane %v1316_v37, 1 }
 0x1e6   : > { %5508 = vmatmul.mubr.bf16.gmra.mrb[16].mxu1 %v2591_v6  ;;  %v1307_v19 = vsel %vm1151_vm0, %v1302_v39, %v1306_v51  ;;  %v2648_v5 = vshll.u32 %v7347_v36, 16  ;;  %v2615_v34 = vsel %vm1151_vm0, %v1302_v39, %v2614_v21  ;;  %v1325_v3 = vrot.slane %v1323_v42, 1 }
 0x1e7   : > { %5511 = vmatprep.mubr.bf16.mxu1 %v2603_v0  ;;  %v2627_v40 = vsel %vm1151_vm0, %v1314_v13, %v2626_v30  ;;  %v2636_v7 = vshll.u32 %v7349_v63, 16  ;;  %v7358_v0 = vld [vmem:[#allocation2 + $0xf8] sm:$0x1]  ;;  %v1337_v1 = vrot.slane %v1335_v52, 1  ;;  %v1321_v6 = vshrl.u32 %v7235_v17, 16 }
 0x1e8   : > { %v1330_v15 = vrot.slane %v1328_v57, 1  ;;  %v1319_v38 = vsel %vm1151_vm0, %v1314_v13, %v1318_v62  ;;  %v1333_v18 = vshrl.u32 %v7288_v25, 16  ;;  %v1340_v47 = vshll.u32 %v7358_v0, 16  ;;  %v7364_v30 = vld [vmem:[#allocation2 + $0x108] sm:$0x1] }
 0x1e9   : > { %v2650_v51 = vrot.slane %v2648_v5, 1  ;;  %v2638_v27 = vrot.slane %v2636_v7, 1  ;;  %v2655_v21 = vshll.u32 %v7269_v28, 16  ;;  %v2938_v62 = vld [vmem:[#allocation2 + $0x10] sm:$0xfe]  ;;  %v2653_v5 = vshrl.u32 %v7269_v28, 16 }
 0x1ea   : > { %5320 = vmatmul.mubr.bf16.gmra.mrb[52].mxu0 %v1295_v14  ;;  %v1326_v14 = vor.u32 %v1325_v3, %v1321_v6  ;;  %v1338_v37 = vor.u32 %v1337_v1, %v1333_v18  ;;  %v1342_v42 = vrot.slane %v1340_v47, 1  ;;  %v2986_v3 = vrot.slane %v2938_v62, 1  ;;  %v7374_v6 = vld [vmem:[#allocation2] sm:$0xff]  ;;  %v2940_v47 = vld [vmem:[#allocation2 + $0x30] sm:$0xfe] }
 0x1eb   : > { %5323 = vmatprep.mubr.bf16.mxu0 %v1307_v19  ;;  %v2660_v19 = vshll.u32 %v7364_v30, 16  ;;  %v2657_v57 = vrot.slane %v2655_v21, 1  ;;  %v2987_v1 = vrot.slane %v7144_v35, 1  ;;  %v2939_v18 = vld [vmem:[#allocation2 + $0x20] sm:$0xfe]  ;;  %v2993_v35 = vrot.slane %v7176_v22, 1 }
 0x1ec   : > { %v1331_v39 = vsel %vm1151_vm0, %v1326_v14, %v1330_v15  ;;  %v2651_v52 = vsel %vm1151_vm0, %v1338_v37, %v2650_v51  ;;  %v2639_v13 = vsel %vm1151_vm0, %v1326_v14, %v2638_v27  ;;  %v2989_v28 = vrot.slane %v2939_v18, 1  ;;  %v6091_v51 = vld [vmem:[#allocation8 + $0x88] sm:$0xff]  }
 0x1ed   : > { %v2658_v7 = vor.u32 %v2657_v57, %v2653_v5  ;;  %v2992_v14 = vrot.slane %v2940_v47, 1  ;;  %v2990_v27 = vrot.slane %v7164_v11, 1  ;;  %v2942_v11 = vld [vmem:[#allocation2 + $0x50] sm:$0xfe]  ;;  %v6094_v57 = vld [vmem:[#allocation8 + $0x98] sm:$0xff]   ;;  %v2996_v62 = vrot.slane %v7203_v26, 1 }
 0x1ee   : > { %5512 = vmatmul.mubr.bf16.gmra.mrb[20].mxu1 %v2615_v34  ;;  %v2662_v34 = vrot.slane %v2660_v19, 1  ;;  %v6087_v19 = vld [vmem:[#allocation8 + $0x190] sm:$0xff]   ;;  %v2998_v22 = vrot.slane %v2942_v11, 1  ;;  %v2999_v5 = vrot.slane %v7224_v20, 1  ;;  %v6090_v26 = vld [vmem:[#allocation8 + $0x1a0] sm:$0xff]   ;;  %v6097_v20 = vld [vmem:[#allocation8 + $0xa8] sm:$0xff]  }
 0x1ef   : > { %5515 = vmatprep.mubr.bf16.mxu1 %v2627_v40  ;;  %v1343_v40 = vsel %vm1151_vm0, %v1338_v37, %v1342_v42  ;;  %v6382_v37 = vld [vmem:[#allocation2 + $0x10] sm:$0xff]  ;;  %v2991_v21 = vsel %vm1843_vm4, %v2989_v28, %v2990_v27  ;;  %v3002_v28 = vrot.slane %v7243_v55, 1  ;;  %v6093_v27 = vld [vmem:[#allocation8 + $0x1a8] sm:$0xff]  }
 0x1f0   : > { %v2663_v15 = vsel %vm1151_vm0, %v2658_v7, %v2662_v34  ;;  %v6092_v42 = vld [vmem:[#allocation8 + $0x90] sm:$0xff]   ;;  %v2943_v7 = vld [vmem:[#allocation2 + $0x60] sm:$0xfe] }
 0x1f1   : > { %v6385_v47 = vld [vmem:[#allocation2 + $0x50] sm:$0xff] }
 0x1f2   : > { %5324 = vmatmul.mubr.bf16.gmra.mrb[56].mxu0 %v1319_v38  ;;  %v2988_v38 = vsel %vm1843_vm4, %v2986_v3, %v2987_v1  ;;  %v3000_v3 = vsel %vm1843_vm4, %v2998_v22, %v2999_v5  ;;  %v6095_v1 = vld [vmem:[#allocation8 + $0xa0] sm:$0xff]   ;;  %v6096_v55 = vld [vmem:[#allocation8 + $0x1b0] sm:$0xff]   ;;  %v3011_v22 = vrot.slane %v7284_v41, 1 }
 0x1f3   : > { %5327 = vmatprep.mubr.bf16.mxu0 %v1331_v39  ;;  %v6086_v39 = vld [vmem:[#allocation8 + $0x188] sm:$0xff]   ;;  %v6387_v11 = vld [vmem:[#allocation2 + $0x70] sm:$0xff]  ;;  %v7398_v5 = vld [vmem:[#allocation8 + $0xc0] sm:$0xff]  }
 0x1f6   : > { %5516 = vmatmul.mubr.bf16.gmra.mrb[24].mxu1 %v2639_v13  ;;  %v2941_v13 = vld [vmem:[#allocation2 + $0x40] sm:$0xfe] }
 0x1f7   : > { %5519 = vmatprep.mubr.bf16.mxu1 %v2651_v52  ;;  %v2994_v52 = vsel %vm1843_vm4, %v2992_v14, %v2993_v35  ;;  %v3005_v14 = vrot.slane %v7258_v10, 1  ;;  %v6100_v10 = vld [vmem:[#allocation8 + $0xb8] sm:$0xff]  }
 0x1fa   : > { %5328 = vmatmul.mubr.bf16.gmra.mrb[60].mxu0 %v1343_v40  ;;  %v6384_v40 = vld [vmem:[#allocation2 + $0x40] sm:$0xff] }
 0x1fb   : > { %5347 = vmatprep.mubr.bf16.mxu0 %v7374_v6 }
 0x1fe   : > { %5520 = vmatmul.mubr.bf16.gmra.mrb[28].mxu1 %v2663_v15  ;;  %v2944_v15 = vld [vmem:[#allocation2 + $0x70] sm:$0xfe] }
 0x1ff   : > { %5539 = vmatprep.mubr.bf16.mxu1 %v2988_v38  ;;  %v3001_v38 = vrot.slane %v2943_v7, 1  ;;  %v3004_v18 = vrot.slane %v2944_v15, 1  ;;  %v3017_v7 = vrot.slane %v7310_v9, 1 }
 0x201   : > { %v3006_v35 = vsel %vm1843_vm4, %v3004_v18, %v3005_v14 }
 0x202   : > { %5348 = vmatmul.mubr.bf16.vlgmr.msra.gmra.mrb[32].mxu0 %v6382_v37  ;;  %v3003_v37 = vsel %vm1843_vm4, %v3001_v38, %v3002_v28  ;;  %v2950_v38 = vld [vmem:[#allocation2 + $0xd0] sm:$0xfe] }
 0x203   : > { %5351 = vmatprep.mubr.bf16.mxu0 %v7153_v59  ;;  %5380 = vmatpush3.bf16.msra.mxu0 %v7265_v24  ;;  %v2995_v59 = vrot.slane %v2941_v13, 1  ;;  %v6383_v24 = vld [vmem:[#allocation2 + $0x30] sm:$0xff] }
 0x204   : > { %5381 = vmatprep.subr.bf16.mxu0 %v6091_v51  ;;  %v2952_v28 = vld [vmem:[#allocation2 + $0xf0] sm:$0xfe] }
 0x205   : > { %v2997_v34 = vsel %vm1843_vm4, %v2995_v59, %v2996_v62  ;;  %v6388_v59 = vld [vmem:[#allocation2 + $0x80] sm:$0xff]  ;;  %v3028_v14 = vrot.slane %v2952_v28, 1 }
 0x206   : > { %5540 = vmatmul.mubr.bf16.vlgmr.msra.gmra.mrb[0].mxu1 %v2991_v21  ;;  %v6098_v21 = vld [vmem:[#allocation8 + $0xb0] sm:$0xff]  }
 0x207   : > { %5572 = vmatpush3.bf16.msra.mxu1 %v7301_v60  ;;  %5543 = vmatprep.mubr.bf16.mxu1 %v2994_v52  ;;  %v6088_v60 = vld [vmem:[#allocation8 + $0x198] sm:$0xff]  }
 0x208   : > { %5573 = vmatprep.subr.bf16.mxu1 %v6086_v39  ;;  %5382 = vmatpush3.bf16.msra.mxu0 %v6091_v51  ;;  %v6386_v51 = vld [vmem:[#allocation2 + $0x60] sm:$0xff] }
 0x209   : > { %5383 = vmatprep.subr.bf16.mxu0 %v6092_v42 }
 0x20a   : > { %5352 = vmatmul.mubr.bf16.gmra.mrb[36].mxu0 %v6383_v24 }
 0x20b   : > { %5574 = vmatpush3.bf16.msra.mxu1 %v6086_v39  ;;  %5355 = vmatprep.mubr.bf16.mxu0 %v6384_v40  ;;  %v2945_v39 = vld [vmem:[#allocation2 + $0x80] sm:$0xfe] }
 0x20c   : > { %5575 = vmatprep.subr.bf16.mxu1 %v6087_v19  ;;  %5384 = vmatpush3.bf16.msra.mxu0 %v6092_v42  ;;  %v2946_v42 = vld [vmem:[#allocation2 + $0x90] sm:$0xfe]  ;;  %v3007_v52 = vrot.slane %v2945_v39, 1  ;;  %v2947_v40 = vld [vmem:[#allocation2 + $0xa0] sm:$0xfe] }
 0x20d   : > { %5385 = vmatprep.subr.bf16.mxu0 %v6094_v57  ;;  %v3010_v13 = vrot.slane %v2946_v42, 1 }
 0x20e   : > { %5544 = vmatmul.mubr.bf16.gmra.mrb[4].mxu1 %v2997_v34  ;;  %v3013_v34 = vrot.slane %v2947_v40, 1  ;;  %v1799_v40 = vld [vmem:[#allocation2 + $0x40] sm:$0xfe] }
 0x20f   : > { %5547 = vmatprep.mubr.bf16.mxu1 %v3000_v3  ;;  %5576 = vmatpush3.bf16.msra.mxu1 %v6087_v19  ;;  %v3008_v19 = vrot.slane %v7274_v61, 1  ;;  %v3012_v62 = vsel %vm1843_vm4, %v3010_v13, %v3011_v22  ;;  %v7400_v61 = vld [vmem:[#allocation8 + $0x1c0] sm:$0xff]   ;;  %v3014_v3 = vrot.slane %v7305_v4, 1 }
 0x210   : > { %5577 = vmatprep.subr.bf16.mxu1 %v6088_v60  ;;  %5386 = vmatpush3.bf16.msra.mxu0 %v6094_v57  ;;  %v6099_v57 = vld [vmem:[#allocation8 + $0x1b8] sm:$0xff]  }
 0x211   : > { %5387 = vmatprep.subr.bf16.mxu0 %v6095_v1  ;;  %v3009_v24 = vsel %vm1843_vm4, %v3007_v52, %v3008_v19  ;;  %v7426_v52 = vld [vmem:[#allocation2 + $0x20] sm:$0xff] }
 0x212   : > { %5356 = vmatmul.mubr.bf16.gmra.mrb[40].mxu0 %v6385_v47  ;;  %v2951_v47 = vld [vmem:[#allocation2 + $0xe0] sm:$0xfe] }
 0x213   : > { %5578 = vmatpush3.bf16.msra.mxu1 %v6088_v60  ;;  %5359 = vmatprep.mubr.bf16.mxu0 %v6386_v51  ;;  %v2948_v60 = vld [vmem:[#allocation2 + $0xb0] sm:$0xfe]  ;;  %v3025_v51 = vrot.slane %v2951_v47, 1  ;;  %v1863_v47 = vrot.slane %v7240_v44, 1 }
 0x214   : > { %5579 = vmatprep.subr.bf16.mxu1 %v6090_v26  ;;  %5388 = vmatpush3.bf16.msra.mxu0 %v6095_v1  ;;  %v3016_v41 = vrot.slane %v2948_v60, 1  ;;  %v3015_v1 = vsel %vm1843_vm4, %v3013_v34, %v3014_v3  ;;  %v7432_v60 = vld [vmem:[#allocation2 + $0x30] sm:$0xff]  ;;  %v1856_v3 = vrot.slane %v1799_v40, 1  ;;  %v1878_v40 = vrot.slane %v7314_v48, 1 }
 0x215   : > { %5389 = vmatprep.subr.bf16.mxu0 %v6097_v20  ;;  %v6108_v34 = vld [vmem:[#allocation8 + $0xd0] sm:$0xff]  }
 0x216   : > { %5548 = vmatmul.mubr.bf16.gmra.mrb[8].mxu1 %v3003_v37  ;;  %v3018_v15 = vsel %vm1843_vm4, %v3016_v41, %v3017_v7  ;;  %v6389_v37 = vld [vmem:[#allocation2 + $0x8] sm:$0x1]  ;;  %v1854_v7 = vrot.slane %v7174_v50, 1  ;;  %v7444_v50 = vld [vmem:[#allocation2 + $0x60] sm:$0xff] }
 0x217   : > { %5551 = vmatprep.mubr.bf16.mxu1 %v3006_v35  ;;  %5580 = vmatpush3.bf16.msra.mxu1 %v6090_v26  ;;  %v2949_v26 = vld [vmem:[#allocation2 + $0xc0] sm:$0xfe]  ;;  %v1845_v35 = vrot.slane %v6389_v37, 1 }
 0x218   : > { %5581 = vmatprep.subr.bf16.mxu1 %v6093_v27  ;;  %5390 = vmatpush3.bf16.msra.mxu0 %v6097_v20  ;;  %v3019_v18 = vrot.slane %v2949_v26, 1  ;;  %v3022_v20 = vrot.slane %v2950_v38, 1  ;;  %v6110_v26 = vld [vmem:[#allocation8 + $0xd8] sm:$0xff]  }
 0x219   : > { %5391 = vmatprep.subr.bf16.mxu0 %v6098_v21 }
 0x21a   : > { %5360 = vmatmul.mubr.bf16.gmra.mrb[44].mxu0 %v6387_v11  ;;  %v6390_v11 = vld [vmem:[#allocation2 + $0x18] sm:$0x1] }
 0x21b   : > { %5582 = vmatpush3.bf16.msra.mxu1 %v6093_v27  ;;  %5363 = vmatprep.mubr.bf16.mxu0 %v6388_v59  ;;  %v1795_v27 = vld [vmem:[#allocation2] sm:$0xfe]  ;;  %v1848_v19 = vrot.slane %v6390_v11, 1  ;;  %v6391_v59 = vld [vmem:[#allocation2 + $0x28] sm:$0x1]  ;;  %v1872_v11 = vrot.slane %v7281_v31, 1 }
 0x21c   : > { %5583 = vmatprep.subr.bf16.mxu1 %v6096_v55  ;;  %5392 = vmatpush3.bf16.msra.mxu0 %v6098_v21  ;;  %v2953_v21 = vld [vmem:[#allocation2 + $0x100] sm:$0xfe]  ;;  %v1851_v22 = vrot.slane %v6391_v59, 1  ;;  %v1875_v59 = vrot.slane %v7296_v43, 1 }
 0x21d   : > { %5393 = vmatprep.subr.bf16.mxu0 %v6100_v10  ;;  %v3031_v42 = vrot.slane %v2953_v21, 1  ;;  %v1869_v21 = vrot.slane %v7263_v58, 1  ;;  %v7477_v31 = vld [vmem:[#allocation2 + $0xc0] sm:$0xff] }
 0x21e   : > { %5552 = vmatmul.mubr.bf16.gmra.mrb[12].mxu1 %v3009_v24  ;;  %v1798_v24 = vld [vmem:[#allocation2 + $0x30] sm:$0xfe] }
 0x21f   : > { %5555 = vmatprep.mubr.bf16.mxu1 %v3012_v62  ;;  %5584 = vmatpush3.bf16.msra.mxu1 %v6096_v55  ;;  %v6102_v62 = vld [vmem:[#allocation8 + $0x1c8] sm:$0xff]   ;;  %v1853_v41 = vrot.slane %v1798_v24, 1  ;;  %v7474_v24 = vld [vmem:[#allocation2 + $0xb0] sm:$0xff] }
 0x220   : > { %5585 = vmatprep.subr.bf16.mxu1 %v6099_v57  ;;  %5394 = vmatpush3.bf16.msra.mxu0 %v6100_v10 }
 0x221   : > { %5427 = vmatprep.subr.bf16.mxu0 %v7398_v5 }
 0x222   : > { %5364 = vmatmul.mubr.bf16.gmra.mrb[48].mxu0 %v7161_v16  ;;  %v3020_v16 = vrot.slane %v7329_v45, 1  ;;  %v1844_v45 = vrot.slane %v1795_v27, 1  ;;  %v1802_v27 = vld [vmem:[#allocation2 + $0x70] sm:$0xfe] }
 0x223   : > { %5586 = vmatpush3.bf16.msra.mxu1 %v6099_v57  ;;  %5367 = vmatprep.mubr.bf16.mxu0 %v7150_v53  ;;  %v3023_v53 = vrot.slane %v7327_v23, 1  ;;  %v6107_v57 = vld [vmem:[#allocation8 + $0xc8] sm:$0xff]   ;;  %v1865_v44 = vrot.slane %v1802_v27, 1 }
 0x224   : > { %5619 = vmatprep.subr.bf16.mxu1 %v7400_v61  ;;  %v3021_v4 = vsel %vm1843_vm4, %v3019_v18, %v3020_v16  ;;  %v1846_v55 = vsel %vm1843_vm4, %v1844_v45, %v1845_v35  ;;  %v1800_v18 = vld [vmem:[#allocation2 + $0x50] sm:$0xfe]  ;;  %v6111_v16 = vld [vmem:[#allocation8 + $0xe0] sm:$0xff]   ;;  %v1866_v35 = vrot.slane %v7254_v2, 1 }
 0x225   : > { %v3024_v9 = vsel %vm1843_vm4, %v3022_v20, %v3023_v53  ;;  %v7441_v20 = vld [vmem:[#allocation2 + $0x50] sm:$0xff]  ;;  %v7464_v2 = vld [vmem:[#allocation2 + $0xa0] sm:$0xff] }
 0x226   : > { %5556 = vmatmul.mubr.bf16.gmra.mrb[16].mxu1 %v3015_v1  ;;  %v6103_v1 = vld [vmem:[#allocation8 + $0x1d0] sm:$0xff]  }
 0x227   : > { %5559 = vmatprep.mubr.bf16.mxu1 %v3018_v15  ;;  %v1857_v15 = vrot.slane %v7188_v46, 1  ;;  %v1859_v46 = vrot.slane %v1800_v18, 1  ;;  %v6114_v45 = vld [vmem:[#allocation8 + $0xf0] sm:$0xff]  }
 0x229   : > { %v1858_v38 = vsel %vm1843_vm4, %v1856_v3, %v1857_v15  ;;  %v7484_v15 = vld [vmem:[#allocation2 + $0xd0] sm:$0xff] }
 0x22a   : > { %5368 = vmatmul.mubr.bf16.gmra.mrb[52].mxu0 %v7213_v49  ;;  %v3026_v49 = vrot.slane %v7349_v63, 1 }
 0x22b   : > { %5371 = vmatprep.mubr.bf16.mxu0 %v7195_v32  ;;  %v3029_v32 = vrot.slane %v7347_v36, 1  ;;  %v1797_v36 = vld [vmem:[#allocation2 + $0x20] sm:$0xfe] }
 0x22c   : > { %v3027_v23 = vsel %vm1843_vm4, %v3025_v51, %v3026_v49  ;;  %v1850_v10 = vrot.slane %v1797_v36, 1  ;;  %v6113_v51 = vld [vmem:[#allocation8 + $0xe8] sm:$0xff]   ;;  %v1803_v49 = vld [vmem:[#allocation2 + $0x80] sm:$0xfe] }
 0x22d   : > { %v3030_v39 = vsel %vm1843_vm4, %v3028_v14, %v3029_v32  ;;  %v6109_v32 = vld [vmem:[#allocation8 + $0x1e8] sm:$0xff]   ;;  %v1868_v37 = vrot.slane %v1803_v49, 1  ;;  %v1805_v36 = vld [vmem:[#allocation2 + $0xa0] sm:$0xfe] }
 0x22e   : > { %5560 = vmatmul.mubr.bf16.gmra.mrb[20].mxu1 %v3021_v4  ;;  %v1860_v4 = vrot.slane %v7220_v54, 1  ;;  %v7454_v54 = vld [vmem:[#allocation2 + $0x80] sm:$0xff] }
 0x22f   : > { %5563 = vmatprep.mubr.bf16.mxu1 %v3024_v9  ;;  %v6106_v9 = vld [vmem:[#allocation8 + $0x1e0] sm:$0xff]  }
 0x230   : > { %v1861_v28 = vsel %vm1843_vm4, %v1859_v46, %v1860_v4  ;;  %v1810_v46 = vld [vmem:[#allocation2 + $0xf0] sm:$0xfe]  ;;  %v7500_v4 = vld [vmem:[#allocation2 + $0x100] sm:$0xff] }
 0x232   : > { %5372 = vmatmul.mubr.bf16.gmra.mrb[56].mxu0 %v7247_v8  ;;  %v3032_v8 = vrot.slane %v7364_v30, 1  ;;  %v1852_v30 = vsel %vm1843_vm4, %v1850_v10, %v1851_v22  ;;  %v1874_v10 = vrot.slane %v1805_v36, 1 }
 0x233   : > { %5375 = vmatprep.mubr.bf16.mxu0 %v7235_v17  ;;  %v1796_v17 = vld [vmem:[#allocation2 + $0x10] sm:$0xfe] }
 0x234   : > { %v3033_v63 = vsel %vm1843_vm4, %v3031_v42, %v3032_v8  ;;  %v1847_v13 = vrot.slane %v1796_v17, 1  ;;  %v1867_v42 = vsel %vm1843_vm4, %v1865_v44, %v1866_v35  ;;  %v1870_v8 = vsel %vm1843_vm4, %v1868_v37, %v1869_v21  ;;  %v1804_v17 = vld [vmem:[#allocation2 + $0x90] sm:$0xfe]  ;;  %v7508_v37 = vld [vmem:[#allocation2 + $0x38] sm:$0x1] }
 0x235   : > { %v1871_v58 = vrot.slane %v1804_v17, 1  ;;  %v2166_v44 = vld [vmem:[#allocation2 + $0x10] sm:$0xff] }
 0x236   : > { %5564 = vmatmul.mubr.bf16.gmra.mrb[24].mxu1 %v3027_v23  ;;  %v7451_v23 = vld [vmem:[#allocation2 + $0x70] sm:$0xff] }
 0x237   : > { %5567 = vmatprep.mubr.bf16.mxu1 %v3030_v39  ;;  %v6112_v39 = vld [vmem:[#allocation8 + $0x1f0] sm:$0xff]   ;;  %v1873_v22 = vsel %vm1843_vm4, %v1871_v58, %v1872_v11 }
 0x23a   : > { %5376 = vmatmul.mubr.bf16.gmra.mrb[60].mxu0 %v7288_v25  ;;  %v1849_v25 = vsel %vm1843_vm4, %v1847_v13, %v1848_v19  ;;  %v7461_v13 = vld [vmem:[#allocation2 + $0x90] sm:$0xff]  ;;  %v7468_v19 = vld [vmem:[#allocation8 + $0x200] sm:$0xff]  }
 0x23b   : > { %5395 = vmatprep.mubr.bf16.mxu0 %v1846_v55  ;;  %v6116_v55 = vld [vmem:[#allocation8 + $0xf8] sm:$0xff]  }
 0x23e   : > { %5568 = vmatmul.mubr.bf16.gmra.mrb[28].mxu1 %v3033_v63  ;;  %v6115_v63 = vld [vmem:[#allocation8 + $0x1f8] sm:$0xff]  }
 0x23f   : > { %5587 = vmatprep.mubr.bf16.mxu1 %v7426_v52 }
 0x242   : > { %5396 = vmatmul.mubr.bf16.vlgmr.msra.gmra.mrb[32].mxu0 %v1849_v25  ;;  %v1806_v25 = vld [vmem:[#allocation2 + $0xb0] sm:$0xfe] }
 0x243   : > { %5399 = vmatprep.mubr.bf16.mxu0 %v1852_v30  ;;  %5428 = vmatpush3.bf16.msra.mxu0 %v7398_v5  ;;  %v1855_v5 = vsel %vm1843_vm4, %v1853_v41, %v1854_v7  ;;  %v1807_v30 = vld [vmem:[#allocation2 + $0xc0] sm:$0xfe]  ;;  %v1808_v7 = vld [vmem:[#allocation2 + $0xd0] sm:$0xfe] }
 0x244   : > { %5429 = vmatprep.subr.bf16.mxu0 %v6107_v57  ;;  %v1880_v43 = vrot.slane %v1807_v30, 1 }
 0x246   : > { %5588 = vmatmul.mubr.bf16.vlgmr.msra.gmra.mrb[0].mxu1 %v7432_v60 }
 0x247   : > { %5620 = vmatpush3.bf16.msra.mxu1 %v7400_v61  ;;  %5591 = vmatprep.mubr.bf16.mxu1 %v7191_v12  ;;  %v1801_v12 = vld [vmem:[#allocation2 + $0x60] sm:$0xfe]  ;;  %v6104_v61 = vld [vmem:[#allocation8 + $0x1d8] sm:$0xff]  }
 0x248   : > { %5621 = vmatprep.subr.bf16.mxu1 %v6102_v62  ;;  %5430 = vmatpush3.bf16.msra.mxu0 %v6107_v57  ;;  %v1862_v53 = vrot.slane %v1801_v12, 1  ;;  %v1876_v57 = vsel %vm1843_vm4, %v1874_v10, %v1875_v59  ;;  %v3618_v12 = vshll.u32 %v7426_v52, 16  ;;  %v3666_v10 = vshll.u32 %v7444_v50, 16 }
 0x249   : > { %5431 = vmatprep.subr.bf16.mxu0 %v6108_v34 }
 0x24a   : > { %5400 = vmatmul.mubr.bf16.gmra.mrb[36].mxu0 %v1855_v5  ;;  %v1864_v14 = vsel %vm1843_vm4, %v1862_v53, %v1863_v47  ;;  %v7487_v5 = vld [vmem:[#allocation2 + $0xe0] sm:$0xff]  ;;  %v7497_v53 = vld [vmem:[#allocation2 + $0x28] sm:$0x1]  ;;  %v1890_v47 = vrot.slane %v7358_v0, 1 }
 0x24b   : > { %5622 = vmatpush3.bf16.msra.mxu1 %v6102_v62  ;;  %5403 = vmatprep.mubr.bf16.mxu0 %v1858_v38  ;;  %v1877_v62 = vrot.slane %v1806_v25, 1  ;;  %v1887_v38 = vrot.slane %v7344_v33, 1  ;;  %v3587_v33 = vld [vmem:[#allocation2 + $0x40] sm:$0xff] }
 0x24c   : > { %5623 = vmatprep.subr.bf16.mxu1 %v6103_v1  ;;  %5432 = vmatpush3.bf16.msra.mxu0 %v6108_v34  ;;  %v1881_v34 = vrot.slane %v7324_v29, 1  ;;  %v1884_v29 = vrot.slane %v7338_v56, 1  ;;  %v1889_v56 = vrot.slane %v1810_v46, 1  ;;  %v7538_v46 = vld [vmem:[#allocation2 + $0x88] sm:$0x1] }
 0x24d   : > { %5433 = vmatprep.subr.bf16.mxu0 %v6110_v26  ;;  %v1879_v41 = vsel %vm1843_vm4, %v1877_v62, %v1878_v40  ;;  %v7524_v62 = vld [vmem:[#allocation2 + $0x68] sm:$0x1]  ;;  %v3668_v40 = vrot.slane %v3666_v10, 1 }
 0x24e   : > { %5592 = vmatmul.mubr.bf16.gmra.mrb[4].mxu1 %v7441_v20  ;;  %v1882_v3 = vsel %vm1843_vm4, %v1880_v43, %v1881_v34  ;;  %v1891_v27 = vsel %vm1843_vm4, %v1889_v56, %v1890_v47  ;;  %v3664_v34 = vshrl.u32 %v7444_v50, 16 }
 0x24f   : > { %5595 = vmatprep.mubr.bf16.mxu1 %v7444_v50  ;;  %5624 = vmatpush3.bf16.msra.mxu1 %v6103_v1  ;;  %v1809_v1 = vld [vmem:[#allocation2 + $0xe0] sm:$0xfe] }
 0x250   : > { %5625 = vmatprep.subr.bf16.mxu1 %v6104_v61  ;;  %5434 = vmatpush3.bf16.msra.mxu0 %v6110_v26  ;;  %v1883_v26 = vrot.slane %v1808_v7, 1  ;;  %v1886_v48 = vrot.slane %v1809_v1, 1  ;;  %v3678_v1 = vshll.u32 %v7451_v23, 16 }
 0x251   : > { %5435 = vmatprep.subr.bf16.mxu0 %v6111_v16 }
 0x252   : > { %5404 = vmatmul.mubr.bf16.gmra.mrb[40].mxu0 %v1861_v28  ;;  %v1885_v18 = vsel %vm1843_vm4, %v1883_v26, %v1884_v29  ;;  %v3616_v28 = vshrl.u32 %v7426_v52, 16  ;;  %v3669_v26 = vor.u32 %v3668_v40, %v3664_v34  ;;  %v6124_v40 = vld [vmem:[#allocation8 + $0x238] sm:$0xff]   ;;  %v7566_v34 = vld [vmem:[#allocation2 + $0xc8] sm:$0x1] }
 0x253   : > { %5626 = vmatpush3.bf16.msra.mxu1 %v6104_v61  ;;  %5407 = vmatprep.mubr.bf16.mxu0 %v1864_v14  ;;  %v1888_v61 = vsel %vm1843_vm4, %v1886_v48, %v1887_v38  ;;  %v3630_v14 = vshll.u32 %v7432_v60, 16  ;;  %v3690_v48 = vshll.u32 %v7454_v54, 16  ;;  %v7535_v38 = vld [vmem:[#allocation2 + $0x78] sm:$0x1] }
 0x254   : > { %5627 = vmatprep.subr.bf16.mxu1 %v6106_v9  ;;  %5436 = vmatpush3.bf16.msra.mxu0 %v6111_v16  ;;  %v7495_v16 = vld [vmem:[#allocation2 + $0xf0] sm:$0xff]  ;;  %v3683_v47 = vshll.u32 %v7535_v38, 16 }
 0x255   : > { %5437 = vmatprep.subr.bf16.mxu0 %v6113_v51  ;;  %v3632_v35 = vrot.slane %v3630_v14, 1 }
 0x256   : > { %5596 = vmatmul.mubr.bf16.gmra.mrb[8].mxu1 %v7451_v23 }
 0x257   : > { %5599 = vmatprep.mubr.bf16.mxu1 %v7454_v54  ;;  %5628 = vmatpush3.bf16.msra.mxu1 %v6106_v9  ;;  %v3620_v9 = vrot.slane %v3618_v12, 1 }
 0x258   : > { %5629 = vmatprep.subr.bf16.mxu1 %v6109_v32  ;;  %5438 = vmatpush3.bf16.msra.mxu0 %v6113_v51  ;;  %v3623_v51 = vshll.u32 %v7497_v53, 16 }
 0x259   : > { %5439 = vmatprep.subr.bf16.mxu0 %v6114_v45  ;;  %v3621_v49 = vor.u32 %v3620_v9, %v3616_v28  ;;  %v3692_v9 = vrot.slane %v3690_v48, 1  ;;  %v3695_v28 = vshll.u32 %v7538_v46, 16  ;;  %v3750_v48 = vshll.u32 %v7484_v15, 16 }
 0x25a   : > { %5408 = vmatmul.mubr.bf16.gmra.mrb[44].mxu0 %v1867_v42  ;;  %v3628_v42 = vshrl.u32 %v7432_v60, 16 }
 0x25b   : > { %5630 = vmatpush3.bf16.msra.mxu1 %v6109_v32  ;;  %5411 = vmatprep.mubr.bf16.mxu0 %v1870_v8  ;;  %v3642_v32 = vshll.u32 %v3587_v33, 16  ;;  %v3640_v8 = vshrl.u32 %v3587_v33, 16 }
 0x25c   : > { %5631 = vmatprep.subr.bf16.mxu1 %v6112_v39  ;;  %5440 = vmatpush3.bf16.msra.mxu0 %v6114_v45  ;;  %v3625_v45 = vrot.slane %v3623_v51, 1  ;;  %v3633_v36 = vor.u32 %v3632_v35, %v3628_v42  ;;  %v6121_v51 = vld [vmem:[#allocation8 + $0x220] sm:$0xff]   ;;  %v7549_v35 = vld [vmem:[#allocation2 + $0x98] sm:$0x1] }
 0x25d   : > { %5441 = vmatprep.subr.bf16.mxu0 %v6116_v55  ;;  %v3644_v21 = vrot.slane %v3642_v32, 1  ;;  %v3714_v32 = vshll.u32 %v7464_v2, 16 }
 0x25e   : > { %5600 = vmatmul.mubr.bf16.gmra.mrb[12].mxu1 %v7461_v13  ;;  %v3626_v0 = vsel %vm1151_vm0, %v3621_v49, %v3625_v45  ;;  %v3697_v45 = vrot.slane %v3695_v28, 1  ;;  %v3748_v28 = vshrl.u32 %v7484_v15, 16 }
 0x25f   : > { %5603 = vmatprep.mubr.bf16.mxu1 %v7464_v2  ;;  %5632 = vmatpush3.bf16.msra.mxu1 %v6112_v39  ;;  %v7510_v39 = vld [vmem:[#allocation2 + $0x48] sm:$0x1]  ;;  %v3645_v58 = vor.u32 %v3644_v21, %v3640_v8 }
 0x260   : > { %5633 = vmatprep.subr.bf16.mxu1 %v6115_v63  ;;  %5442 = vmatpush3.bf16.msra.mxu0 %v6116_v55  ;;  %v3635_v55 = vshll.u32 %v7508_v37, 16  ;;  %v3647_v17 = vshll.u32 %v7510_v39, 16 }
 0x262   : > { %5412 = vmatmul.mubr.bf16.gmra.mrb[48].mxu0 %v1873_v22  ;;  %v3637_v11 = vrot.slane %v3635_v55, 1  ;;  %v3649_v59 = vrot.slane %v3647_v17, 1  ;;  %v6118_v22 = vld [vmem:[#allocation8 + $0x208] sm:$0xff]   ;;  %v3716_v17 = vrot.slane %v3714_v32, 1  ;;  %v3786_v32 = vshll.u32 %v7500_v4, 16 }
 0x263   : > { %5634 = vmatpush3.bf16.msra.mxu1 %v6115_v63  ;;  %5415 = vmatprep.mubr.bf16.mxu0 %v1876_v57  ;;  %v3654_v63 = vshll.u32 %v7441_v20, 16  ;;  %v7521_v57 = vld [vmem:[#allocation2 + $0x58] sm:$0x1]  ;;  %v7552_v55 = vld [vmem:[#allocation2 + $0xa8] sm:$0x1] }
 0x264   : > { %5667 = vmatprep.subr.bf16.mxu1 %v7468_v19  ;;  %v3638_v25 = vsel %vm1151_vm0, %v3633_v36, %v3637_v11  ;;  %v3650_v43 = vsel %vm1151_vm0, %v3645_v58, %v3649_v59  ;;  %v3707_v36 = vshll.u32 %v7549_v35, 16  ;;  %v6123_v58 = vld [vmem:[#allocation8 + $0x230] sm:$0xff]   ;;  %v3726_v11 = vshll.u32 %v7474_v24, 16 }
 0x265   : > { %v3656_v30 = vrot.slane %v3654_v63, 1  ;;  %v3719_v63 = vshll.u32 %v7552_v55, 16 }
 0x266   : > { %5604 = vmatmul.mubr.bf16.gmra.mrb[16].mxu1 %v7474_v24 }
 0x267   : > { %5607 = vmatprep.mubr.bf16.mxu1 %v7477_v31 }
 0x26a   : > { %5416 = vmatmul.mubr.bf16.gmra.mrb[52].mxu0 %v1879_v41  ;;  %v3671_v41 = vshll.u32 %v7524_v62, 16 }
 0x26b   : > { %5419 = vmatprep.mubr.bf16.mxu0 %v1882_v3  ;;  %v6119_v3 = vld [vmem:[#allocation8 + $0x210] sm:$0xff]  }
 0x26e   : > { %5608 = vmatmul.mubr.bf16.gmra.mrb[20].mxu1 %v7484_v15 }
 0x26f   : > { %5611 = vmatprep.mubr.bf16.mxu1 %v7487_v5 }
 0x272   : > { %5420 = vmatmul.mubr.bf16.gmra.mrb[56].mxu0 %v1885_v18  ;;  %v6120_v18 = vld [vmem:[#allocation8 + $0x218] sm:$0xff]  }
 0x273   : > { %5423 = vmatprep.mubr.bf16.mxu0 %v1888_v61  ;;  %v3680_v61 = vrot.slane %v3678_v1, 1  ;;  %v3743_v1 = vshll.u32 %v7566_v34, 16 }
 0x276   : > { %5612 = vmatmul.mubr.bf16.gmra.mrb[24].mxu1 %v7495_v16 }
 0x277   : > { %5615 = vmatprep.mubr.bf16.mxu1 %v7500_v4 }
 0x27a   : > { %5424 = vmatmul.mubr.bf16.gmra.mrb[60].mxu0 %v1891_v27  ;;  %v3702_v27 = vshll.u32 %v7461_v13, 16 }
 0x27b   : > { %5443 = vmatprep.mubr.bf16.mxu0 %v2166_v44  ;;  %v3685_v44 = vrot.slane %v3683_v47, 1 }
 0x27c   : > { %v3704_v42 = vrot.slane %v3702_v27, 1  ;;  %v3774_v27 = vshll.u32 %v7495_v16, 16 }
 0x27e   : > { %5616 = vmatmul.mubr.bf16.gmra.mrb[28].mxu1 %v7374_v6 }
 0x27f   : > { %5635 = vmatprep.mubr.bf16.mxu1 %v3626_v0  ;;  %v6122_v0 = vld [vmem:[#allocation8 + $0x228] sm:$0xff]  }
 0x282   : > { %5444 = vmatmul.mubr.bf16.vlgmr.msra.gmra.mrb[32].mxu0 %v7426_v52  ;;  %v3652_v52 = vshrl.u32 %v7441_v20, 16 }
 0x283   : > { %5447 = vmatprep.mubr.bf16.mxu0 %v7432_v60  ;;  %v3659_v60 = vshll.u32 %v7521_v57, 16 }
 0x284   : > { %v3657_v7 = vor.u32 %v3656_v30, %v3652_v52  ;;  %v3721_v30 = vrot.slane %v3719_v63, 1 }
 0x285   : > { %v3661_v29 = vrot.slane %v3659_v60, 1  ;;  %v3728_v60 = vrot.slane %v3726_v11, 1 }
 0x286   : > { %5636 = vmatmul.mubr.bf16.vlgmr.msra.gmra.mrb[0].mxu1 %v3638_v25  ;;  %v3709_v25 = vrot.slane %v3707_v36, 1  ;;  %v3772_v36 = vshrl.u32 %v7495_v16, 16 }
 0x287   : > { %5668 = vmatpush3.bf16.msra.mxu1 %v7468_v19  ;;  %5639 = vmatprep.mubr.bf16.mxu1 %v3650_v43  ;;  %v3673_v19 = vrot.slane %v3671_v41, 1  ;;  %v3662_v12 = vsel %vm1151_vm0, %v3657_v7, %v3661_v29  ;;  %v7563_v43 = vld [vmem:[#allocation2 + $0xb8] sm:$0x1] }
 0x288   : > { %5669 = vmatprep.subr.bf16.mxu1 %v6118_v22  ;;  %v3731_v7 = vshll.u32 %v7563_v43, 16 }
 0x289   : > { %v3674_v56 = vsel %vm1151_vm0, %v3669_v26, %v3673_v19  ;;  %v3762_v19 = vshll.u32 %v7487_v5, 16 }
 0x28a   : > { %5448 = vmatmul.mubr.bf16.gmra.mrb[36].mxu0 %v3587_v33  ;;  %v3676_v33 = vshrl.u32 %v7451_v23, 16 }
 0x28b   : > { %5670 = vmatpush3.bf16.msra.mxu1 %v6118_v22  ;;  %5451 = vmatprep.mubr.bf16.mxu0 %v7441_v20  ;;  %v3688_v20 = vshrl.u32 %v7454_v54, 16  ;;  %v3738_v22 = vshll.u32 %v7477_v31, 16 }
 0x28c   : > { %5671 = vmatprep.subr.bf16.mxu1 %v6119_v3  ;;  %v3681_v14 = vor.u32 %v3680_v61, %v3676_v33  ;;  %v7577_v61 = vld [vmem:[#allocation2 + $0xd8] sm:$0x1]  ;;  %v7580_v33 = vld [vmem:[#allocation2 + $0xe8] sm:$0x1] }
 0x28d   : > { %v3693_v49 = vor.u32 %v3692_v9, %v3688_v20  ;;  %v3752_v9 = vrot.slane %v3750_v48, 1  ;;  %v3764_v20 = vrot.slane %v3762_v19, 1  ;;  %v4136_v19 = vrot.slane %v7510_v39, 1  ;;  %v4086_v39 = vld [vmem:[#allocation2 + $0x70] sm:$0xfe] }
 0x28e   : > { %5640 = vmatmul.mubr.bf16.gmra.mrb[4].mxu1 %v3662_v12  ;;  %v3686_v21 = vsel %vm1151_vm0, %v3681_v14, %v3685_v44  ;;  %v3745_v12 = vrot.slane %v3743_v1, 1  ;;  %v4083_v1 = vld [vmem:[#allocation2 + $0x40] sm:$0xfe] }
 0x28f   : > { %5643 = vmatprep.mubr.bf16.mxu1 %v3674_v56  ;;  %5672 = vmatpush3.bf16.msra.mxu1 %v6119_v3  ;;  %v3698_v8 = vsel %vm1151_vm0, %v3693_v49, %v3697_v45  ;;  %v3740_v3 = vrot.slane %v3738_v22, 1  ;;  %v3753_v14 = vor.u32 %v3752_v9, %v3748_v28  ;;  %v3796_v22 = vshrl.u32 %v7374_v6, 16 }
 0x290   : > { %5673 = vmatprep.subr.bf16.mxu1 %v6120_v18  ;;  %v4135_v48 = vrot.slane %v4083_v1, 1 }
 0x292   : > { %5452 = vmatmul.mubr.bf16.gmra.mrb[40].mxu0 %v7444_v50  ;;  %v3700_v50 = vshrl.u32 %v7461_v13, 16 }
 0x293   : > { %5674 = vmatpush3.bf16.msra.mxu1 %v6120_v18  ;;  %5455 = vmatprep.mubr.bf16.mxu0 %v7451_v23  ;;  %v3712_v23 = vshrl.u32 %v7464_v2, 16  ;;  %v3733_v18 = vrot.slane %v3731_v7, 1 }
 0x294   : > { %5675 = vmatprep.subr.bf16.mxu1 %v6121_v51  ;;  %v3705_v10 = vor.u32 %v3704_v42, %v3700_v50  ;;  %v3776_v42 = vrot.slane %v3774_v27, 1  ;;  %v3788_v50 = vrot.slane %v3786_v32, 1  ;;  %v4148_v27 = vrot.slane %v7538_v46, 1  ;;  %v4089_v32 = vld [vmem:[#allocation2 + $0xa0] sm:$0xfe] }
 0x295   : > { %v3717_v59 = vor.u32 %v3716_v17, %v3712_v23  ;;  %v3798_v23 = vshll.u32 %v7374_v6, 16  ;;  %v4090_v46 = vld [vmem:[#allocation2 + $0xb0] sm:$0xfe] }
 0x296   : > { %5644 = vmatmul.mubr.bf16.gmra.mrb[8].mxu1 %v3686_v21  ;;  %v3710_v52 = vsel %vm1151_vm0, %v3705_v10, %v3709_v25  ;;  %v3777_v10 = vor.u32 %v3776_v42, %v3772_v36  ;;  %v4154_v42 = vrot.slane %v7552_v55, 1  ;;  %v4156_v36 = vrot.slane %v4090_v46, 1  ;;  %v4092_v55 = vld [vmem:[#allocation2 + $0xd0] sm:$0xfe]  ;;  %v7700_v46 = vld [vmem:[%s8046_s6] ss:$0 sm:$0xff] }
 0x297   : > { %5647 = vmatprep.mubr.bf16.mxu1 %v3698_v8  ;;  %5676 = vmatpush3.bf16.msra.mxu1 %v6121_v51  ;;  %v3722_v41 = vsel %vm1151_vm0, %v3717_v59, %v3721_v30  ;;  %v3760_v51 = vshrl.u32 %v7487_v5, 16  ;;  %v7594_v8 = vld [vmem:[#allocation2 + $0x108] sm:$0x1]  ;;  %v3800_v25 = vrot.slane %v3798_v23, 1  ;;  %v4157_v23 = vrot.slane %v7563_v43, 1 }
 0x298   : > { %5677 = vmatprep.subr.bf16.mxu1 %v6122_v0  ;;  %v3791_v63 = vshll.u32 %v7594_v8, 16 }
 0x299   : > { %v3765_v49 = vor.u32 %v3764_v20, %v3760_v51  ;;  %v4142_v20 = vrot.slane %v7524_v62, 1  ;;  %v4144_v51 = vrot.slane %v4086_v39, 1  ;;  %v4088_v62 = vld [vmem:[#allocation2 + $0x90] sm:$0xfe] }
 0x29a   : > { %5456 = vmatmul.mubr.bf16.gmra.mrb[44].mxu0 %v7454_v54  ;;  %v3724_v54 = vshrl.u32 %v7474_v24, 16 }
 0x29b   : > { %5678 = vmatpush3.bf16.msra.mxu1 %v6122_v0  ;;  %5459 = vmatprep.mubr.bf16.mxu0 %v7461_v13  ;;  %v3736_v13 = vshrl.u32 %v7477_v31, 16  ;;  %v7591_v0 = vld [vmem:[#allocation2 + $0xf8] sm:$0x1] }
 0x29c   : > { %5679 = vmatprep.subr.bf16.mxu1 %v6123_v58  ;;  %v3729_v26 = vor.u32 %v3728_v60, %v3724_v54  ;;  %v4081_v54 = vld [vmem:[#allocation2 + $0x20] sm:$0xfe] }
 0x29d   : > { %v3741_v29 = vor.u32 %v3740_v3, %v3736_v13  ;;  %v4129_v7 = vrot.slane %v4081_v54, 1  ;;  %v4082_v13 = vld [vmem:[#allocation2 + $0x30] sm:$0xfe] }
 0x29e   : > { %5648 = vmatmul.mubr.bf16.gmra.mrb[12].mxu1 %v3710_v52  ;;  %v3734_v56 = vsel %vm1151_vm0, %v3729_v26, %v3733_v18  ;;  %v4132_v26 = vrot.slane %v4082_v13, 1  ;;  %v4096_v54 = vld [vmem:[#allocation2 + $0x110] sm:$0xfe] }
 0x29f   : > { %5651 = vmatprep.mubr.bf16.mxu1 %v3722_v41  ;;  %5680 = vmatpush3.bf16.msra.mxu1 %v6123_v58  ;;  %v3746_v47 = vsel %vm1151_vm0, %v3741_v29, %v3745_v12  ;;  %v7602_v58 = vld [vmem:[#allocation2 + $0x118] sm:$0x1]  ;;  %v3801_v41 = vor.u32 %v3800_v25, %v3796_v22  ;;  %v4133_v29 = vrot.slane %v7508_v37, 1  ;;  %v4084_v12 = vld [vmem:[#allocation2 + $0x50] sm:$0xfe]  ;;  %v4163_v22 = vrot.slane %v7577_v61, 1 }
 0x2a0   : > { %5681 = vmatprep.subr.bf16.mxu1 %v6124_v40  ;;  %v3803_v30 = vshll.u32 %v7602_v58, 16  ;;  %v4166_v25 = vrot.slane %v7580_v33, 1 }
 0x2a1   : > { %v4134_v18 = vsel %vm1843_vm4, %v4132_v26, %v4133_v29 }
 0x2a2   : > { %5460 = vmatmul.mubr.bf16.gmra.mrb[48].mxu0 %v7464_v2  ;;  %v3755_v2 = vshll.u32 %v7577_v61, 16  ;;  %v3805_v3 = vrot.slane %v3803_v30, 1 }
 0x2a3   : > { %5682 = vmatpush3.bf16.msra.mxu1 %v6124_v40  ;;  %5463 = vmatprep.mubr.bf16.mxu0 %v7474_v24  ;;  %v3767_v24 = vshll.u32 %v7580_v33, 16  ;;  %v3793_v40 = vrot.slane %v3791_v63, 1  ;;  %v4158_v63 = vsel %vm1843_vm4, %v4156_v36, %v4157_v23  ;;  %v4174_v33 = vrot.slane %v4096_v54, 1 }
 0x2a4   : > { %v3757_v44 = vrot.slane %v3755_v2, 1  ;;  %v3806_v6 = vsel %vm1151_vm0, %v3801_v41, %v3805_v3  ;;  %v4087_v2 = vld [vmem:[#allocation2 + $0x80] sm:$0xfe]  ;;  %v4169_v41 = vrot.slane %v7591_v0, 1  ;;  %v4172_v3 = vrot.slane %v7594_v8, 1 }
 0x2a5   : > { %v3769_v45 = vrot.slane %v3767_v24, 1  ;;  %v4147_v24 = vrot.slane %v4087_v2, 1 }
 0x2a6   : > { %5652 = vmatmul.mubr.bf16.gmra.mrb[16].mxu1 %v3734_v56  ;;  %v3758_v21 = vsel %vm1151_vm0, %v3753_v14, %v3757_v44  ;;  %v4138_v56 = vrot.slane %v4084_v12, 1  ;;  %v4145_v14 = vrot.slane %v7535_v38, 1  ;;  %v4150_v44 = vrot.slane %v4088_v62, 1 }
 0x2a7   : > { %5655 = vmatprep.mubr.bf16.mxu1 %v3746_v47  ;;  %v3770_v17 = vsel %vm1151_vm0, %v3765_v49, %v3769_v45  ;;  %v4139_v47 = vrot.slane %v7521_v57, 1  ;;  %v4149_v57 = vsel %vm1843_vm4, %v4147_v24, %v4148_v27  ;;  %v4153_v45 = vrot.slane %v4089_v32, 1 }
 0x2a8   : > { %v4146_v49 = vsel %vm1843_vm4, %v4144_v51, %v4145_v14 }
 0x2a9   : > { %v4140_v28 = vsel %vm1843_vm4, %v4138_v56, %v4139_v47  ;;  %v4155_v38 = vsel %vm1843_vm4, %v4153_v45, %v4154_v42  ;;  %v7695_v42 = vld [vmem:[%s8045_s5] ss:$0 sm:$0xff] }
 0x2aa   : > { %5464 = vmatmul.mubr.bf16.gmra.mrb[52].mxu0 %v7477_v31  ;;  %v3779_v31 = vshll.u32 %v7591_v0, 16 }
 0x2ab   : > { %5467 = vmatprep.mubr.bf16.mxu0 %v7484_v15  ;;  %v3784_v15 = vshrl.u32 %v7500_v4, 16 }
 0x2ac   : > { %v3781_v59 = vrot.slane %v3779_v31, 1 }
 0x2ad   : > { %v3789_v11 = vor.u32 %v3788_v50, %v3784_v15  ;;  %v4091_v50 = vld [vmem:[#allocation2 + $0xc0] sm:$0xfe]  ;;  %v4160_v15 = vrot.slane %v7566_v34, 1  ;;  %v4094_v34 = vld [vmem:[#allocation2 + $0xf0] sm:$0xfe] }
 0x2ae   : > { %5656 = vmatmul.mubr.bf16.gmra.mrb[20].mxu1 %v3758_v21  ;;  %v3782_v52 = vsel %vm1151_vm0, %v3777_v10, %v3781_v59  ;;  %v4151_v21 = vrot.slane %v7549_v35, 1  ;;  %v4159_v31 = vrot.slane %v4091_v50, 1  ;;  %v4093_v10 = vld [vmem:[#allocation2 + $0xe0] sm:$0xfe] }
 0x2af   : > { %5659 = vmatprep.mubr.bf16.mxu1 %v3770_v17  ;;  %v3794_v60 = vsel %vm1151_vm0, %v3789_v11, %v3793_v40  ;;  %v4162_v11 = vrot.slane %v4092_v55, 1  ;;  %v4165_v59 = vrot.slane %v4093_v10, 1  ;;  %v4095_v40 = vld [vmem:[#allocation2 + $0x100] sm:$0xfe] }
 0x2b0   : > { %v4152_v17 = vsel %vm1843_vm4, %v4150_v44, %v4151_v21  ;;  %v4161_v35 = vsel %vm1843_vm4, %v4159_v31, %v4160_v15 }
 0x2b1   : > { %v4164_v30 = vsel %vm1843_vm4, %v4162_v11, %v4163_v22  ;;  %v4167_v43 = vsel %vm1843_vm4, %v4165_v59, %v4166_v25 }
 0x2b2   : > { %5468 = vmatmul.mubr.bf16.gmra.mrb[56].mxu0 %v7487_v5  ;;  %v4130_v5 = vrot.slane %v7497_v53, 1  ;;  %v4085_v53 = vld [vmem:[#allocation2 + $0x60] sm:$0xfe] }
 0x2b3   : > { %5471 = vmatprep.mubr.bf16.mxu0 %v7495_v16  ;;  %v4141_v9 = vrot.slane %v4085_v53, 1 }
 0x2b4   : > { %v4131_v16 = vsel %vm1843_vm4, %v4129_v7, %v4130_v5 }
 0x2b5   : > { %v4143_v37 = vsel %vm1843_vm4, %v4141_v9, %v4142_v20 }
 0x2b6   : > { %5660 = vmatmul.mubr.bf16.gmra.mrb[24].mxu1 %v3782_v52  ;;  %v4168_v52 = vrot.slane %v4094_v34, 1 }
 0x2b7   : > { %5663 = vmatprep.mubr.bf16.mxu1 %v3794_v60  ;;  %v4171_v60 = vrot.slane %v4095_v40, 1 }
 0x2b8   : > { %v4170_v7 = vsel %vm1843_vm4, %v4168_v52, %v4169_v41 }
 0x2b9   : > { %v4173_v61 = vsel %vm1843_vm4, %v4171_v60, %v4172_v3 }
 0x2ba   : > { %5472 = vmatmul.mubr.bf16.gmra.mrb[60].mxu0 %v7500_v4  ;;  %v4137_v4 = vsel %vm1843_vm4, %v4135_v48, %v4136_v19 }
 0x2be   : > { %5664 = vmatmul.mubr.bf16.gmra.mrb[28].mxu1 %v3806_v6  ;;  %v4175_v6 = vrot.slane %v7602_v58, 1 }
 0x2bf   : > { %5683 = vmatprep.mubr.bf16.mxu1 %v4131_v16 }
 0x2c0   : > { %v4176_v5 = vsel %vm1843_vm4, %v4174_v33, %v4175_v6 }
 0x2c6   : > { %5684 = vmatmul.mubr.bf16.vlgmr.msra.gmra.mrb[0].mxu1 %v4134_v18 }
 0x2c7   : > { %5687 = vmatprep.mubr.bf16.mxu1 %v4137_v4 }
 0x2ce   : > { %5688 = vmatmul.mubr.bf16.gmra.mrb[4].mxu1 %v4140_v28 }
 0x2cf   : > { %5691 = vmatprep.mubr.bf16.mxu1 %v4143_v37 }
 0x2d6   : > { %5692 = vmatmul.mubr.bf16.gmra.mrb[8].mxu1 %v4146_v49 }
 0x2d7   : > { %5695 = vmatprep.mubr.bf16.mxu1 %v4149_v57 }
 0x2de   : > { %5696 = vmatmul.mubr.bf16.gmra.mrb[12].mxu1 %v4152_v17 }
 0x2df   : > { %5699 = vmatprep.mubr.bf16.mxu1 %v4155_v38 }
 0x2e6   : > { %5700 = vmatmul.mubr.bf16.gmra.mrb[16].mxu1 %v4158_v63 }
 0x2e7   : > { %5703 = vmatprep.mubr.bf16.mxu1 %v4161_v35 }
 0x2ee   : > { %5704 = vmatmul.mubr.bf16.gmra.mrb[20].mxu1 %v4164_v30 }
 0x2ef   : > { %5707 = vmatprep.mubr.bf16.mxu1 %v4167_v43 }
 0x2f6   : > { %5708 = vmatmul.mubr.bf16.gmra.mrb[24].mxu1 %v4170_v7 }
 0x2f7   : > { %5711 = vmatprep.mubr.bf16.mxu1 %v4173_v61 }
 0x2fe   : > { %5712 = vmatmul.mubr.bf16.gmra.mrb[28].mxu1 %v4176_v5 }
 0x355   : > { %v5445_v16 = vpop.f32.mrb[32].mxu0 }
 0x356   : > { %v2281_v13 = vpop.f32.mrb[33].mxu0 }
 0x357   : > { %v5446_v1 = vpop.f32.mrb[34].mxu0 }
 0x358   : > { %v2284_v26 = vpop.f32.mrb[35].mxu0 }
 0x35d   : > { %v5449_v0 = vpop.f32.mrb[36].mxu0 }
 0x35e   : > { %v2297_v48 = vpop.f32.mrb[37].mxu0 }
 0x35f   : > { %v5450_v8 = vpop.f32.mrb[38].mxu0 }
 0x360   : > { %v2300_v29 = vpop.f32.mrb[39].mxu0 }
 0x365   : > { %v7644_v19 = vpop.f32.mrb[40].mxu0 }
 0x366   : > { %v7646_v18 = vpop.f32.mrb[41].mxu0 }
 0x367   : > { %v7648_v4 = vpop.f32.mrb[42].mxu0 }
 0x368   : > { %v7650_v12 = vpop.f32.mrb[43].mxu0 }
 0x36d   : > { %v7652_v58 = vpop.f32.mrb[44].mxu0 }
 0x36e   : > { %v7654_v53 = vpop.f32.mrb[45].mxu0 }
 0x36f   : > { %v7656_v56 = vpop.f32.mrb[46].mxu0 }
 0x370   : > { %v7658_v9 = vpop.f32.mrb[47].mxu0 }
 0x375   : > { %v7660_v47 = vpop.f32.mrb[48].mxu0 }
 0x376   : > { %v7662_v20 = vpop.f32.mrb[49].mxu0 }
 0x377   : > { %v7664_v28 = vpop.f32.mrb[50].mxu0 }
 0x378   : > { %v7666_v37 = vpop.f32.mrb[51].mxu0 }
 0x37d   : > { %v7668_v39 = vpop.f32.mrb[52].mxu0 }
 0x37e   : > { %v7670_v2 = vpop.f32.mrb[53].mxu0 }
 0x37f   : > { %v7672_v51 = vpop.f32.mrb[54].mxu0 }
 0x380   : > { %v7674_v24 = vpop.f32.mrb[55].mxu0 }
 0x385   : > { %v7676_v14 = vpop.f32.mrb[56].mxu0 }
 0x386   : > { %v7678_v27 = vpop.f32.mrb[57].mxu0 }
 0x387   : > { %v7680_v49 = vpop.f32.mrb[58].mxu0 }
 0x388   : > { %v7682_v57 = vpop.f32.mrb[59].mxu0 }
 0x38d   : > { %v7684_v62 = vpop.f32.mrb[60].mxu0 }
 0x38e   : > { %v7686_v32 = vpop.f32.mrb[61].mxu0 }
 0x38f   : > { %v7688_v44 = vpop.f32.mrb[62].mxu0 }
 0x390   : > { %v7690_v45 = vpop.f32.mrb[63].mxu0 }
 0x399   : > { %v5685_v21 = vpop.f32.mrb[0].mxu1 }
 0x39a   : > { %v5715_v17 = vadd.f32 %v5685_v21, %v5445_v16  ;;  %v4292_v38 = vpop.f32.mrb[1].mxu1 }
 0x39b   : > { %v5716_v50 = vadd.f32 %v4292_v38, %v2281_v13  ;;  %v5686_v36 = vpop.f32.mrb[2].mxu1 }
 0x39c   : > { %v4460_v31 = vmul.f32 %v5715_v17, %v7695_v42  ;;  %v5717_v23 = vadd.f32 %v5686_v36, %v5446_v1  ;;  %v4295_v15 = vpop.f32.mrb[3].mxu1 }
 0x39d   : > { %v4458_v63 = vmul.f32 %v5716_v50, %v7695_v42  ;;  %v5718_v35 = vadd.f32 %v4295_v15, %v2284_v26 }
 0x39e   : > { %v7705_v55 = vadd.f32 %v7700_v46, %v4460_v31  ;;  %v4461_v10 = vmul.f32 %v5717_v23, %v7695_v42 }
 0x39f   : > { %v7709_v11 = vadd.f32 %v7700_v46, %v4458_v63  ;;  %v4459_v59 = vmul.f32 %v5718_v35, %v7695_v42 }
 0x3a0   : > { %v4531_v22 = vsub.f32 0.0, %v7705_v55  ;;  %v7714_v25 = vadd.f32 %v7700_v46, %v4461_v10 }
 0x3a1   : > { %v4529_v30 = vsub.f32 0.0, %v7709_v11  ;;  %v7718_v43 = vadd.f32 %v7700_v46, %v4459_v59  ;;  %v5689_v34 = vpop.f32.mrb[4].mxu1 }
 0x3a2   : > { %v4565_v40 = vmul.f32 1.442695, %v4531_v22  ;;  %v4532_v52 = vsub.f32 0.0, %v7714_v25  ;;  %v5719_v60 = vadd.f32 %v5689_v34, %v5449_v0  ;;  %v4308_v41 = vpop.f32.mrb[5].mxu1 }
 0x3a3   : > { %v4561_v3 = vmul.f32 1.442695, %v4529_v30  ;;  %v4530_v54 = vsub.f32 0.0, %v7718_v43  ;;  %v5720_v7 = vadd.f32 %v4308_v41, %v2297_v48  ;;  %v5690_v61 = vpop.f32.mrb[6].mxu1 }
 0x3a4   : > { %6253 = vpow2.f32 %v4565_v40  ;;  %v4567_v33 = vmul.f32 1.442695, %v4532_v52  ;;  %v4464_v6 = vmul.f32 %v5719_v60, %v7695_v42  ;;  %v5721_v5 = vadd.f32 %v5690_v61, %v5450_v8  ;;  %v4311_v16 = vpop.f32.mrb[7].mxu1 }
 0x3a5   : > { %6255 = vpow2.f32 %v4561_v3  ;;  %v4563_v13 = vmul.f32 1.442695, %v4530_v54  ;;  %v4462_v1 = vmul.f32 %v5720_v7, %v7695_v42  ;;  %v5722_v26 = vadd.f32 %v4311_v16, %v2300_v29 }
 0x3a6   : > { %6257 = vpow2.f32 %v4567_v33  ;;  %v7725_v0 = vadd.f32 %v7700_v46, %v4464_v6  ;;  %v4465_v21 = vmul.f32 %v5721_v5, %v7695_v42 }
 0x3a7   : > { %6259 = vpow2.f32 %v4563_v13  ;;  %v7729_v48 = vadd.f32 %v7700_v46, %v4462_v1  ;;  %v4463_v17 = vmul.f32 %v5722_v26, %v7695_v42 }
 0x3a8   : > { %v4535_v8 = vsub.f32 0.0, %v7725_v0  ;;  %v7734_v38 = vadd.f32 %v7700_v46, %v4465_v21 }
 0x3a9   : > { %v4533_v50 = vsub.f32 0.0, %v7729_v48  ;;  %v7738_v29 = vadd.f32 %v7700_v46, %v4463_v17  ;;  %v5693_v36 = vpop.f32.mrb[8].mxu1 }
 0x3aa   : > { %v4573_v31 = vmul.f32 1.442695, %v4535_v8  ;;  %v4536_v23 = vsub.f32 0.0, %v7734_v38  ;;  %v5723_v15 = vadd.f32 %v5693_v36, %v7644_v19  ;;  %v4324_v63 = vpop.f32.mrb[9].mxu1 }
 0x3ab   : > { %v4569_v35 = vmul.f32 1.442695, %v4533_v50  ;;  %v4534_v10 = vsub.f32 0.0, %v7738_v29  ;;  %v5724_v59 = vadd.f32 %v4324_v63, %v7646_v18  ;;  %v5694_v22 = vpop.f32.mrb[10].mxu1 }
 0x3ac   : > { %6261 = vpow2.f32 %v4573_v31  ;;  %v4575_v30 = vmul.f32 1.442695, %v4536_v23  ;;  %v4468_v34 = vmul.f32 %v5723_v15, %v7695_v42  ;;  %v5725_v40 = vadd.f32 %v5694_v22, %v7648_v4  ;;  %v4327_v52 = vpop.f32.mrb[11].mxu1 }
 0x3ad   : > { %6263 = vpow2.f32 %v4569_v35  ;;  %v4571_v60 = vmul.f32 1.442695, %v4534_v10  ;;  %v4466_v41 = vmul.f32 %v5724_v59, %v7695_v42  ;;  %v5726_v19 = vadd.f32 %v4327_v52, %v7650_v12 }
 0x3ae   : > { %v6254_v3 = vpop.eup %6253  ;;  %6265 = vpow2.f32 %v4575_v30  ;;  %v7749_v54 = vadd.f32 %v7700_v46, %v4468_v34  ;;  %v4469_v18 = vmul.f32 %v5725_v40, %v7695_v42 }
 0x3af   : > { %v6256_v7 = vpop.eup %6255  ;;  %v4627_v61 = vadd.f32 1.0, %v6254_v3  ;;  %6267 = vpow2.f32 %v4571_v60  ;;  %v7753_v33 = vadd.f32 %v7700_v46, %v4466_v41  ;;  %v4467_v4 = vmul.f32 %v5726_v19, %v7695_v42 }
 0x3b0   : > { %v6258_v6 = vpop.eup %6257  ;;  %v4625_v5 = vadd.f32 1.0, %v6256_v7  ;;  %v4539_v16 = vsub.f32 0.0, %v7749_v54  ;;  %v7758_v12 = vadd.f32 %v7700_v46, %v4469_v18 }
 0x3b1   : > { %v6260_v13 = vpop.eup %6259  ;;  %6269 = vrcp.f32 %v4627_v61  ;;  %v4628_v1 = vadd.f32 1.0, %v6258_v6  ;;  %v4537_v26 = vsub.f32 0.0, %v7753_v33  ;;  %v7762_v21 = vadd.f32 %v7700_v46, %v4467_v4  ;;  %v5697_v17 = vpop.f32.mrb[12].mxu1 }
 0x3b2   : > { %6271 = vrcp.f32 %v4625_v5  ;;  %v4626_v8 = vadd.f32 1.0, %v6260_v13  ;;  %v4581_v50 = vmul.f32 1.442695, %v4539_v16  ;;  %v4540_v36 = vsub.f32 0.0, %v7758_v12  ;;  %v4340_v31 = vpop.f32.mrb[13].mxu1 }
 0x3b3   : > { %6273 = vrcp.f32 %v4628_v1  ;;  %v4577_v23 = vmul.f32 1.442695, %v4537_v26  ;;  %v4538_v15 = vsub.f32 0.0, %v7762_v21  ;;  %v5727_v63 = vadd.f32 %v5697_v17, %v7652_v58  ;;  %v5698_v35 = vpop.f32.mrb[14].mxu1 }
 0x3b4   : > { %6275 = vrcp.f32 %v4626_v8  ;;  %v4583_v10 = vmul.f32 1.442695, %v4540_v36  ;;  %v5728_v59 = vadd.f32 %v4340_v31, %v7654_v53  ;;  %v5729_v22 = vadd.f32 %v5698_v35, %v7656_v56  ;;  %v4343_v30 = vpop.f32.mrb[15].mxu1 }
 0x3b5   : > { %6277 = vpow2.f32 %v4581_v50  ;;  %v4579_v34 = vmul.f32 1.442695, %v4538_v15  ;;  %v4472_v40 = vmul.f32 %v5727_v63, %v7695_v42  ;;  %v5730_v52 = vadd.f32 %v4343_v30, %v7658_v9 }
 0x3b6   : > { %v6262_v60 = vpop.eup %6261  ;;  %6279 = vpow2.f32 %v4577_v23  ;;  %v4470_v41 = vmul.f32 %v5728_v59, %v7695_v42  ;;  %v4473_v58 = vmul.f32 %v5729_v22, %v7695_v42 }
 0x3b7   : > { %v6264_v19 = vpop.eup %6263  ;;  %v4631_v3 = vadd.f32 1.0, %v6262_v60  ;;  %6281 = vpow2.f32 %v4583_v10  ;;  %v7774_v53 = vadd.f32 %v7700_v46, %v4472_v40  ;;  %v4471_v56 = vmul.f32 %v5730_v52, %v7695_v42 }
 0x3b8   : > { %v6266_v18 = vpop.eup %6265  ;;  %v4629_v7 = vadd.f32 1.0, %v6264_v19  ;;  %6283 = vpow2.f32 %v4579_v34  ;;  %v7778_v61 = vadd.f32 %v7700_v46, %v4470_v41  ;;  %v7781_v9 = vadd.f32 %v7700_v46, %v4473_v58 }
 0x3b9   : > { %v6268_v4 = vpop.eup %6267  ;;  %6285 = vrcp.f32 %v4631_v3  ;;  %v4632_v6 = vadd.f32 1.0, %v6266_v18  ;;  %v4543_v5 = vsub.f32 0.0, %v7774_v53  ;;  %v7785_v16 = vadd.f32 %v7700_v46, %v4471_v56  ;;  %v5701_v13 = vpop.f32.mrb[16].mxu1  ;;  %v6393_v3 = vld [vmem:[%s6811_s21] sm:$0xff] }
 0x3ba   : > { %6287 = vrcp.f32 %v4629_v7  ;;  %v4630_v1 = vadd.f32 1.0, %v6268_v4  ;;  %v4541_v26 = vsub.f32 0.0, %v7778_v61  ;;  %v4544_v17 = vsub.f32 0.0, %v7781_v9  ;;  %v4356_v8 = vpop.f32.mrb[17].mxu1 }
 0x3bb   : > { %v6270_v50 = vpop.eup %6269  ;;  %6289 = vrcp.f32 %v4632_v6  ;;  %v4589_v36 = vmul.f32 1.442695, %v4543_v5  ;;  %v4542_v31 = vsub.f32 0.0, %v7785_v16  ;;  %v5731_v23 = vadd.f32 %v5701_v13, %v7660_v47  ;;  %v5702_v15 = vpop.f32.mrb[18].mxu1  ;;  %v6392_v47 = vld [vmem:[%s6811_s21 + $0x10] sm:$0xff] }
 0x3bc   : > { %v6272_v63 = vpop.eup %6271  ;;  %v4691_v35 = vmul.f32 %v6270_v50, %v7705_v55  ;;  %6291 = vrcp.f32 %v4630_v1  ;;  %v4585_v10 = vmul.f32 1.442695, %v4541_v26  ;;  %v4591_v59 = vmul.f32 1.442695, %v4544_v17  ;;  %v4359_v22 = vpop.f32.mrb[19].mxu1 }
 0x3bd   : > { %v6274_v30 = vpop.eup %6273  ;;  %v4689_v34 = vmul.f32 %v6272_v63, %v7709_v11  ;;  %6293 = vpow2.f32 %v4589_v36  ;;  %v4587_v40 = vmul.f32 1.442695, %v4542_v31  ;;  %v4476_v52 = vmul.f32 %v5731_v23, %v7695_v42 }
 0x3be   : > { %v6276_v60 = vpop.eup %6275  ;;  %v4723_v41 = vadd.f32 %v6392_v47, %v4691_v35  ;;  %v4692_v58 = vmul.f32 %v6274_v30, %v7714_v25  ;;  %6295 = vpow2.f32 %v4585_v10  ;;  %v5732_v55 = vadd.f32 %v4356_v8, %v7662_v20  ;;  %v6394_v25 = vld [vmem:[%s6811_s21 + $0x18] sm:$0xff] }
 0x3bf   : > { %v6278_v19 = vpop.eup %6277  ;;  %v4721_v56 = vadd.f32 %v6393_v3, %v4689_v34  ;;  %v4690_v11 = vmul.f32 %v6276_v60, %v7718_v43  ;;  %6297 = vpow2.f32 %v4591_v59  ;;  %v7800_v18 = vadd.f32 %v7700_v46, %v4476_v52  ;;  %v6395_v43 = vld [vmem:[%s6811_s21 + $0x8] sm:$0xff] }
 0x3c0   : > { %v6280_v7 = vpop.eup %6279  ;;  %4755 = vst [vmem:[%s7804_s12 + $0x10] sm:$0xff] %v4723_v41  ;;  %v4724_v20 = vadd.f32 %v6394_v25, %v4692_v58  ;;  %v4635_v4 = vadd.f32 1.0, %v6278_v19  ;;  %6299 = vpow2.f32 %v4587_v40  ;;  %v4474_v6 = vmul.f32 %v5732_v55, %v7695_v42 }
 0x3c1   : > { %v6282_v5 = vpop.eup %6281  ;;  %4753 = vst [vmem:[%s7804_s12] sm:$0xff] %v4721_v56  ;;  %v4722_v13 = vadd.f32 %v6395_v43, %v4690_v11  ;;  %v4633_v1 = vadd.f32 1.0, %v6280_v7  ;;  %v4547_v26 = vsub.f32 0.0, %v7800_v18  ;;  %v5733_v17 = vadd.f32 %v5702_v15, %v7664_v28  ;;  %v5705_v8 = vpop.f32.mrb[20].mxu1  ;;  %v6397_v11 = vld [vmem:[%s6811_s21 + $0x20] sm:$0xff] }
 0x3c2   : > { %v6284_v50 = vpop.eup %6283  ;;  %4756 = vst [vmem:[%s7804_s12 + $0x18] sm:$0xff] %v4724_v20  ;;  %6301 = vrcp.f32 %v4635_v4  ;;  %v4636_v36 = vadd.f32 1.0, %v6282_v5  ;;  %v7815_v31 = vadd.f32 %v7700_v46, %v4474_v6  ;;  %v5734_v23 = vadd.f32 %v4359_v22, %v7666_v37  ;;  %v4372_v63 = vpop.f32.mrb[21].mxu1  ;;  %v6398_v4 = vld [vmem:[%s6811_s21 + $0x38] sm:$0xff] }
 0x3c3   : > { %v6286_v35 = vpop.eup %6285  ;;  %4754 = vst [vmem:[%s7804_s12 + $0x8] sm:$0xff] %v4722_v13  ;;  %6303 = vrcp.f32 %v4633_v1  ;;  %v4634_v10 = vadd.f32 1.0, %v6284_v50  ;;  %v4597_v59 = vmul.f32 1.442695, %v4547_v26  ;;  %v4477_v30 = vmul.f32 %v5733_v17, %v7695_v42  ;;  %v5706_v28 = vpop.f32.mrb[22].mxu1  ;;  %v6399_v13 = vld [vmem:[%s6811_s21 + $0x28] sm:$0xff] }
 0x3c4   : > { %v6288_v15 = vpop.eup %6287  ;;  %v4695_v34 = vmul.f32 %v6286_v35, %v7725_v0  ;;  %6305 = vrcp.f32 %v4636_v36  ;;  %v4545_v40 = vsub.f32 0.0, %v7815_v31  ;;  %v4475_v52 = vmul.f32 %v5734_v23, %v7695_v42  ;;  %v4375_v37 = vpop.f32.mrb[23].mxu1  ;;  %v6396_v0 = vld [vmem:[%s6811_s21 + $0x30] sm:$0xff] }
 0x3c5   : > { %v6290_v22 = vpop.eup %6289  ;;  %v4693_v60 = vmul.f32 %v6288_v15, %v7729_v48  ;;  %6307 = vrcp.f32 %v4634_v10  ;;  %v7825_v47 = vadd.f32 %v7700_v46, %v4477_v30  ;;  %v5735_v41 = vadd.f32 %v5705_v8, %v7668_v39 }
 0x3c6   : > { %v6292_v58 = vpop.eup %6291  ;;  %v4727_v55 = vadd.f32 %v6396_v0, %v4695_v34  ;;  %v4696_v19 = vmul.f32 %v6290_v22, %v7734_v38  ;;  %6309 = vpow2.f32 %v4597_v59  ;;  %v4593_v3 = vmul.f32 1.442695, %v4545_v40 }
 0x3c7   : > { %v6294_v56 = vpop.eup %6293  ;;  %v4725_v48 = vadd.f32 %v6397_v11, %v4693_v60  ;;  %v4694_v7 = vmul.f32 %v6292_v58, %v7738_v29  ;;  %v4548_v25 = vsub.f32 0.0, %v7825_v47  ;;  %v7834_v20 = vadd.f32 %v7700_v46, %v4475_v52 }
 0x3c8   : > { %v6296_v39 = vpop.eup %6295  ;;  %4759 = vst [vmem:[%s7804_s12 + $0x30] sm:$0xff] %v4727_v55  ;;  %v4728_v6 = vadd.f32 %v6398_v4, %v4696_v19  ;;  %v4639_v38 = vadd.f32 1.0, %v6294_v56  ;;  %6311 = vpow2.f32 %v4593_v3  ;;  %v4480_v5 = vmul.f32 %v5735_v41, %v7695_v42 }
 0x3c9   : > { %v6298_v43 = vpop.eup %6297  ;;  %4757 = vst [vmem:[%s7804_s12 + $0x20] sm:$0xff] %v4725_v48  ;;  %v4726_v1 = vadd.f32 %v6399_v13, %v4694_v7  ;;  %v4637_v29 = vadd.f32 1.0, %v6296_v39  ;;  %v4599_v26 = vmul.f32 1.442695, %v4548_v25  ;;  %v4546_v17 = vsub.f32 0.0, %v7834_v20  ;;  %v5709_v8 = vpop.f32.mrb[24].mxu1 }
 0x3ca   : > { %v6300_v50 = vpop.eup %6299  ;;  %4760 = vst [vmem:[%s7804_s12 + $0x38] sm:$0xff] %v4728_v6  ;;  %6313 = vrcp.f32 %v4639_v38  ;;  %v4640_v36 = vadd.f32 1.0, %v6298_v43  ;;  %v7844_v23 = vadd.f32 %v7700_v46, %v4480_v5  ;;  %v5736_v35 = vadd.f32 %v4372_v63, %v7670_v2  ;;  %v4388_v10 = vpop.f32.mrb[25].mxu1  ;;  %v6402_v25 = vld [vmem:[%s6811_s21 + $0x58] sm:$0xff]  ;;  %v6403_v43 = vld [vmem:[%s6811_s21 + $0x48] sm:$0xff] }
 0x3cb   : > { %4758 = vst [vmem:[%s7804_s12 + $0x28] sm:$0xff] %v4726_v1  ;;  %6315 = vrcp.f32 %v4637_v29  ;;  %v4638_v59 = vadd.f32 1.0, %v6300_v50  ;;  %v4595_v30 = vmul.f32 1.442695, %v4546_v17  ;;  %v5737_v15 = vadd.f32 %v5706_v28, %v7672_v51  ;;  %v5710_v34 = vpop.f32.mrb[26].mxu1 }
 0x3cc   : > { %v6302_v40 = vpop.eup %6301  ;;  %6317 = vrcp.f32 %v4640_v36  ;;  %v4551_v52 = vsub.f32 0.0, %v7844_v23  ;;  %v4478_v22 = vmul.f32 %v5736_v35, %v7695_v42  ;;  %v5738_v60 = vadd.f32 %v4375_v37, %v7674_v24  ;;  %v4391_v41 = vpop.f32.mrb[27].mxu1  ;;  %v6400_v37 = vld [vmem:[%s6811_s21 + $0x50] sm:$0xff] }
 0x3cd   : > { %v6304_v58 = vpop.eup %6303  ;;  %v4699_v2 = vmul.f32 %v6302_v40, %v7749_v54  ;;  %6319 = vrcp.f32 %v4638_v59  ;;  %v4481_v63 = vmul.f32 %v5737_v15, %v7695_v42  ;;  %v5739_v51 = vadd.f32 %v5709_v8, %v7676_v14 }
 0x3ce   : > { %v6306_v28 = vpop.eup %6305  ;;  %v4697_v0 = vmul.f32 %v6304_v58, %v7753_v33  ;;  %6321 = vpow2.f32 %v4599_v26  ;;  %v4605_v55 = vmul.f32 1.442695, %v4551_v52  ;;  %v7857_v19 = vadd.f32 %v7700_v46, %v4478_v22  ;;  %v6401_v33 = vld [vmem:[%s6811_s21 + $0x40] sm:$0xff] }
 0x3cf   : > { %v6308_v24 = vpop.eup %6307  ;;  %v4731_v3 = vadd.f32 %v6400_v37, %v4699_v2  ;;  %v4700_v54 = vmul.f32 %v6306_v28, %v7758_v12  ;;  %6323 = vpow2.f32 %v4595_v30  ;;  %v7862_v56 = vadd.f32 %v7700_v46, %v4481_v63  ;;  %v6404_v63 = vld [vmem:[%s6811_s21 + $0x70] sm:$0xff] }
 0x3d0   : > { %v6310_v14 = vpop.eup %6309  ;;  %v4729_v11 = vadd.f32 %v6401_v33, %v4697_v0  ;;  %v4698_v48 = vmul.f32 %v6308_v24, %v7762_v21  ;;  %6325 = vpow2.f32 %v4605_v55  ;;  %v4549_v7 = vsub.f32 0.0, %v7857_v19 }
 0x3d1   : > { %4763 = vst [vmem:[%s7804_s12 + $0x50] sm:$0xff] %v4731_v3  ;;  %v4732_v39 = vadd.f32 %v6402_v25, %v4700_v54  ;;  %v4643_v4 = vadd.f32 1.0, %v6310_v14  ;;  %v4552_v12 = vsub.f32 0.0, %v7862_v56  ;;  %v4479_v6 = vmul.f32 %v5738_v60, %v7695_v42  ;;  %v7871_v38 = vpop.f32.mrb[28].mxu1  ;;  %v6406_v54 = vld [vmem:[%s6811_s21 + $0x78] sm:$0xff] }
 0x3d2   : > { %v6312_v5 = vpop.eup %6311  ;;  %4761 = vst [vmem:[%s7804_s12 + $0x40] sm:$0xff] %v4729_v11  ;;  %v4730_v13 = vadd.f32 %v6403_v43, %v4698_v48  ;;  %v4601_v21 = vmul.f32 1.442695, %v4549_v7  ;;  %v4484_v1 = vmul.f32 %v5739_v51, %v7695_v42  ;;  %v5740_v29 = vadd.f32 %v4388_v10, %v7678_v27  ;;  %v4404_v26 = vpop.f32.mrb[29].mxu1  ;;  %v6407_v48 = vld [vmem:[%s6811_s21 + $0x68] sm:$0xff] }
 0x3d3   : > { %4764 = vst [vmem:[%s7804_s12 + $0x58] sm:$0xff] %v4732_v39  ;;  %6327 = vrcp.f32 %v4643_v4  ;;  %v4641_v17 = vadd.f32 1.0, %v6312_v5  ;;  %v4607_v8 = vmul.f32 1.442695, %v4552_v12  ;;  %v7879_v50 = vadd.f32 %v7700_v46, %v4479_v6  ;;  %v5714_v36 = vpop.f32.mrb[30].mxu1 }
 0x3d4   : > { %v6314_v35 = vpop.eup %6313  ;;  %4762 = vst [vmem:[%s7804_s12 + $0x48] sm:$0xff] %v4730_v13  ;;  %6329 = vpow2.f32 %v4601_v21  ;;  %v7883_v59 = vadd.f32 %v7700_v46, %v4484_v1  ;;  %v4482_v30 = vmul.f32 %v5740_v29, %v7695_v42  ;;  %v5741_v27 = vadd.f32 %v5710_v34, %v7680_v49  ;;  %v4407_v10 = vpop.f32.mrb[31].mxu1 }
 0x3d5   : > { %v6316_v15 = vpop.eup %6315  ;;  %v4703_v40 = vmul.f32 %v6314_v35, %v7774_v53  ;;  %6331 = vrcp.f32 %v4641_v17  ;;  %v4550_v52 = vsub.f32 0.0, %v7879_v50  ;;  %v5742_v22 = vadd.f32 %v4391_v41, %v7682_v57 }
 0x3d6   : > { %v6318_v60 = vpop.eup %6317  ;;  %v4701_v58 = vmul.f32 %v6316_v15, %v7778_v61  ;;  %6333 = vpow2.f32 %v4607_v8  ;;  %v4555_v2 = vsub.f32 0.0, %v7883_v59  ;;  %v7893_v49 = vadd.f32 %v7700_v46, %v4482_v30  ;;  %v6405_v61 = vld [vmem:[%s6811_s21 + $0x60] sm:$0xff]  ;;  %v6408_v30 = vld [vmem:[%s6811_s21 + $0x90] sm:$0xff] }
 0x3d7   : > { %v6320_v34 = vpop.eup %6319  ;;  %v4735_v53 = vadd.f32 %v6404_v63, %v4703_v40  ;;  %v4704_v51 = vmul.f32 %v6318_v60, %v7781_v9  ;;  %v4603_v28 = vmul.f32 1.442695, %v4550_v52  ;;  %v4485_v57 = vmul.f32 %v5741_v27, %v7695_v42 }
 0x3d8   : > { %v6322_v41 = vpop.eup %6321  ;;  %v4733_v0 = vadd.f32 %v6405_v61, %v4701_v58  ;;  %v4702_v55 = vmul.f32 %v6320_v34, %v7785_v16  ;;  %v4613_v24 = vmul.f32 1.442695, %v4555_v2  ;;  %v4553_v37 = vsub.f32 0.0, %v7893_v49 }
 0x3d9   : > { %v6324_v3 = vpop.eup %6323  ;;  %4767 = vst [vmem:[%s7804_s12 + $0x70] sm:$0xff] %v4735_v53  ;;  %v4736_v14 = vadd.f32 %v6406_v54, %v4704_v51  ;;  %v4644_v9 = vadd.f32 1.0, %v6322_v41  ;;  %6335 = vpow2.f32 %v4603_v28  ;;  %v7904_v33 = vadd.f32 %v7700_v46, %v4485_v57 }
 0x3da   : > { %v6326_v11 = vpop.eup %6325  ;;  %4765 = vst [vmem:[%s7804_s12 + $0x60] sm:$0xff] %v4733_v0  ;;  %v4734_v7 = vadd.f32 %v6407_v48, %v4702_v55  ;;  %v4642_v25 = vadd.f32 1.0, %v6324_v3  ;;  %6337 = vpow2.f32 %v4613_v24  ;;  %v4609_v16 = vmul.f32 1.442695, %v4553_v37 }
 0x3db   : > { %4768 = vst [vmem:[%s7804_s12 + $0x78] sm:$0xff] %v4736_v14  ;;  %6339 = vrcp.f32 %v4644_v9  ;;  %v4647_v39 = vadd.f32 1.0, %v6326_v11  ;;  %v4556_v4 = vsub.f32 0.0, %v7904_v33  ;;  %v4483_v12 = vmul.f32 %v5742_v22, %v7695_v42  ;;  %v6409_v22 = vld [vmem:[%s6811_s21 + $0x80] sm:$0xff]  ;;  %v6410_v9 = vld [vmem:[%s6811_s21 + $0x98] sm:$0xff] }
 0x3dc   : > { %4766 = vst [vmem:[%s7804_s12 + $0x68] sm:$0xff] %v4734_v7  ;;  %6341 = vrcp.f32 %v4642_v25  ;;  %v5743_v6 = vadd.f32 %v7871_v38, %v7684_v62  ;;  %v5744_v5 = vadd.f32 %v4404_v26, %v7686_v32  ;;  %v5745_v43 = vadd.f32 %v5714_v36, %v7688_v44 }
 0x3dd   : > { %v6328_v13 = vpop.eup %6327  ;;  %6343 = vrcp.f32 %v4647_v39  ;;  %v4615_v21 = vmul.f32 1.442695, %v4556_v4  ;;  %v7917_v1 = vadd.f32 %v7700_v46, %v4483_v12  ;;  %v5746_v29 = vadd.f32 %v4407_v10, %v7690_v45 }
 0x3de   : > { %v6330_v17 = vpop.eup %6329  ;;  %v4707_v8 = vmul.f32 %v6328_v13, %v7800_v18  ;;  %6345 = vpow2.f32 %v4609_v16  ;;  %v4488_v35 = vmul.f32 %v5743_v6, %v7695_v42  ;;  %v4486_v62 = vmul.f32 %v5744_v5, %v7695_v42 }
 0x3df   : > { %v6332_v32 = vpop.eup %6331  ;;  %v4645_v44 = vadd.f32 1.0, %v6330_v17  ;;  %6347 = vpow2.f32 %v4615_v21  ;;  %v4554_v38 = vsub.f32 0.0, %v7917_v1  ;;  %v4489_v26 = vmul.f32 %v5745_v43, %v7695_v42  ;;  %v6413_v43 = vld [vmem:[%s6811_s21 + $0xa0] sm:$0xff] }
 0x3e0   : > { %v6334_v36 = vpop.eup %6333  ;;  %v4739_v45 = vadd.f32 %v6408_v30, %v4707_v8  ;;  %v4705_v27 = vmul.f32 %v6332_v32, %v7815_v31  ;;  %v7928_v18 = vadd.f32 %v7700_v46, %v4488_v35  ;;  %v7931_v10 = vadd.f32 %v7700_v46, %v4486_v62  ;;  %v6414_v8 = vld [vmem:[%s6811_s21 + $0xb8] sm:$0xff] }
 0x3e1   : > { %6349 = vrcp.f32 %v4645_v44  ;;  %v4648_v15 = vadd.f32 1.0, %v6334_v36  ;;  %v4611_v40 = vmul.f32 1.442695, %v4554_v38  ;;  %v7934_v52 = vadd.f32 %v7700_v46, %v4489_v26  ;;  %v6415_v26 = vld [vmem:[%s6811_s21 + $0xa8] sm:$0xff] }
 0x3e2   : > { %4771 = vst [vmem:[%s7804_s12 + $0x90] sm:$0xff] %v4739_v45  ;;  %v4737_v60 = vadd.f32 %v6409_v22, %v4705_v27  ;;  %v4559_v58 = vsub.f32 0.0, %v7928_v18  ;;  %v4557_v31 = vsub.f32 0.0, %v7931_v10  ;;  %v4487_v2 = vmul.f32 %v5746_v29, %v7695_v42  ;;  %v6416_v45 = vld [vmem:[%s6811_s21 + $0xd0] sm:$0xff] }
 0x3e3   : > { %v6336_v34 = vpop.eup %6335  ;;  %6351 = vrcp.f32 %v4648_v15  ;;  %v4560_v63 = vsub.f32 0.0, %v7934_v52 }
 0x3e4   : > { %v6338_v53 = vpop.eup %6337  ;;  %4769 = vst [vmem:[%s7804_s12 + $0x80] sm:$0xff] %v4737_v60  ;;  %v4646_v51 = vadd.f32 1.0, %v6336_v34  ;;  %6353 = vpow2.f32 %v4611_v40  ;;  %v4621_v28 = vmul.f32 1.442695, %v4559_v58  ;;  %v4617_v61 = vmul.f32 1.442695, %v4557_v31 }
 0x3e5   : > { %v6340_v57 = vpop.eup %6339  ;;  %v4651_v41 = vadd.f32 1.0, %v6338_v53  ;;  %v7944_v0 = vadd.f32 %v7700_v46, %v4487_v2  ;;  %v4623_v24 = vmul.f32 1.442695, %v4560_v63  ;;  %v6417_v31 = vld [vmem:[%s6811_s21 + $0xc0] sm:$0xff]  ;;  %v6418_v63 = vld [vmem:[%s6811_s21 + $0xd8] sm:$0xff] }
 0x3e6   : > { %v6342_v55 = vpop.eup %6341  ;;  %v4708_v42 = vmul.f32 %v6340_v57, %v7825_v47  ;;  %6355 = vrcp.f32 %v4646_v51  ;;  %v6411_v47 = vld [vmem:[%s6811_s21 + $0x88] sm:$0xff] }
 0x3e7   : > { %v6344_v37 = vpop.eup %6343  ;;  %v4706_v3 = vmul.f32 %v6342_v55, %v7834_v20  ;;  %6357 = vrcp.f32 %v4651_v41  ;;  %v4558_v54 = vsub.f32 0.0, %v7944_v0  ;;  %v6412_v20 = vld [vmem:[%s6811_s21 + $0xb0] sm:$0xff] }
 0x3e8   : > { %v6346_v14 = vpop.eup %6345  ;;  %v4740_v11 = vadd.f32 %v6410_v9, %v4708_v42  ;;  %v4711_v46 = vmul.f32 %v6344_v37, %v7844_v23  ;;  %6359 = vpow2.f32 %v4621_v28  ;;  %v6419_v28 = vld [vmem:[%s6811_s21 + $0xc8] sm:$0xff]  ;;  %v6422_v9 = vld [vmem:[%s6811_s21 + $0xf8] sm:$0xff] }
 0x3e9   : > { %v6348_v48 = vpop.eup %6347  ;;  %v4738_v7 = vadd.f32 %v6411_v47, %v4706_v3  ;;  %v4649_v25 = vadd.f32 1.0, %v6346_v14  ;;  %6361 = vpow2.f32 %v4617_v61  ;;  %v4619_v16 = vmul.f32 1.442695, %v4558_v54 }
 0x3ea   : > { %4772 = vst [vmem:[%s7804_s12 + $0x98] sm:$0xff] %v4740_v11  ;;  %v4743_v39 = vadd.f32 %v6412_v20, %v4711_v46  ;;  %v4652_v4 = vadd.f32 1.0, %v6348_v48  ;;  %6363 = vpow2.f32 %v4623_v24  ;;  %v6420_v24 = vld [vmem:[%s6811_s21 + $0xf0] sm:$0xff] }
 0x3eb   : > { %v6350_v12 = vpop.eup %6349  ;;  %4770 = vst [vmem:[%s7804_s12 + $0x88] sm:$0xff] %v4738_v7  ;;  %6365 = vrcp.f32 %v4649_v25 }
 0x3ec   : > { %4775 = vst [vmem:[%s7804_s12 + $0xb0] sm:$0xff] %v4743_v39  ;;  %v4709_v23 = vmul.f32 %v6350_v12, %v7857_v19  ;;  %6367 = vrcp.f32 %v4652_v4 }
 0x3ed   : > { %v6352_v6 = vpop.eup %6351  ;;  %6369 = vpow2.f32 %v4619_v16 }
 0x3ee   : > { %v6354_v5 = vpop.eup %6353  ;;  %v4741_v13 = vadd.f32 %v6413_v43, %v4709_v23  ;;  %v4712_v21 = vmul.f32 %v6352_v6, %v7862_v56 }
 0x3ef   : > { %v4650_v29 = vadd.f32 1.0, %v6354_v5 }
 0x3f0   : > { %v6356_v17 = vpop.eup %6355  ;;  %4773 = vst [vmem:[%s7804_s12 + $0xa0] sm:$0xff] %v4741_v13  ;;  %v4744_v35 = vadd.f32 %v6414_v8, %v4712_v21 }
 0x3f1   : > { %v6358_v62 = vpop.eup %6357  ;;  %v4710_v19 = vmul.f32 %v6356_v17, %v7879_v50  ;;  %6371 = vrcp.f32 %v4650_v29 }
 0x3f2   : > { %v6360_v32 = vpop.eup %6359  ;;  %4776 = vst [vmem:[%s7804_s12 + $0xb8] sm:$0xff] %v4744_v35  ;;  %v4715_v44 = vmul.f32 %v6358_v62, %v7883_v59 }
 0x3f3   : > { %v6362_v38 = vpop.eup %6361  ;;  %v4742_v36 = vadd.f32 %v6415_v26, %v4710_v19  ;;  %v4655_v56 = vadd.f32 1.0, %v6360_v32 }
 0x3f4   : > { %v6364_v30 = vpop.eup %6363  ;;  %v4747_v27 = vadd.f32 %v6416_v45, %v4715_v44  ;;  %v4653_v15 = vadd.f32 1.0, %v6362_v38 }
 0x3f5   : > { %v6366_v40 = vpop.eup %6365  ;;  %4774 = vst [vmem:[%s7804_s12 + $0xa8] sm:$0xff] %v4742_v36  ;;  %6373 = vrcp.f32 %v4655_v56  ;;  %v4656_v50 = vadd.f32 1.0, %v6364_v30 }
 0x3f6   : > { %v6368_v22 = vpop.eup %6367  ;;  %4779 = vst [vmem:[%s7804_s12 + $0xd0] sm:$0xff] %v4747_v27  ;;  %v4713_v59 = vmul.f32 %v6366_v40, %v7893_v49  ;;  %6375 = vrcp.f32 %v4653_v15 }
 0x3f7   : > { %v6370_v60 = vpop.eup %6369  ;;  %v4716_v58 = vmul.f32 %v6368_v22, %v7904_v33  ;;  %6377 = vrcp.f32 %v4656_v50 }
 0x3f8   : > { %v4745_v2 = vadd.f32 %v6417_v31, %v4713_v59  ;;  %v4654_v34 = vadd.f32 1.0, %v6370_v60 }
 0x3f9   : > { %v4748_v53 = vadd.f32 %v6418_v63, %v4716_v58 }
 0x3fa   : > { %4777 = vst [vmem:[%s7804_s12 + $0xc0] sm:$0xff] %v4745_v2  ;;  %6379 = vrcp.f32 %v4654_v34 }
 0x3fb   : > { %v6372_v51 = vpop.eup %6371  ;;  %4780 = vst [vmem:[%s7804_s12 + $0xd8] sm:$0xff] %v4748_v53 }
 0x3fc   : > { %v4714_v49 = vmul.f32 %v6372_v51, %v7917_v1  ;;  %v6421_v1 = vld [vmem:[%s6811_s21 + $0xe0] sm:$0xff] }
 0x3fe   : > { %v4746_v33 = vadd.f32 %v6419_v28, %v4714_v49 }
 0x3ff   : > { %v6374_v57 = vpop.eup %6373 }
 0x400   : > { %v6376_v41 = vpop.eup %6375  ;;  %4778 = vst [vmem:[%s7804_s12 + $0xc8] sm:$0xff] %v4746_v33  ;;  %v4719_v61 = vmul.f32 %v6374_v57, %v7928_v18 }
 0x401   : > { %v6378_v55 = vpop.eup %6377  ;;  %v4717_v42 = vmul.f32 %v6376_v41, %v7931_v10  ;;  %v6423_v10 = vld [vmem:[%s6811_s21 + $0xe8] sm:$0xff] }
 0x402   : > { %v4751_v37 = vadd.f32 %v6420_v24, %v4719_v61  ;;  %v4720_v3 = vmul.f32 %v6378_v55, %v7934_v52 }
 0x403   : > { %v4749_v54 = vadd.f32 %v6421_v1, %v4717_v42 }
 0x404   : > { %v6380_v14 = vpop.eup %6379  ;;  %4783 = vst [vmem:[%s7804_s12 + $0xf0] sm:$0xff] %v4751_v37  ;;  %v4752_v18 = vadd.f32 %v6422_v9, %v4720_v3 }
 0x405   : > { %4781 = vst [vmem:[%s7804_s12 + $0xe0] sm:$0xff] %v4749_v54  ;;  %v4718_v11 = vmul.f32 %v6380_v14, %v7944_v0 }
 0x406   : > { %4784 = vst [vmem:[%s7804_s12 + $0xf8] sm:$0xff] %v4752_v18 }
 0x407   : > { %v4750_v52 = vadd.f32 %v6423_v10, %v4718_v11 }
 0x409   : > { %4782 = vst [vmem:[%s7804_s12 + $0xe8] sm:$0xff] %v4750_v52 }
 0x40a   : > { %6523 = shalt.err (!%p6520_p2)
}
 0x40b   : > { %s6524_s21 = scalar_lea.hbm %s7992_s9, 4096  ;;  %s6528_s12 = scalar_lea.hbm %s8047_s7, 8192 }
 0x40c   : > { %p6525_p13 = scmp.ne.s32.totalorder %s7992_s9, %s6524_s21  ;;  %p6529_p4 = scmp.lt.u32.totalorder %s7992_s9, %s8047_s7 }
 0x40d   : > { %p6530_p5 = scmp.lt.u32.totalorder %s6528_s12, %s6524_s21  ;;  %p6532_p11 = scmp.lt.u32.totalorder %s6524_s21, %s7992_s9 }
 0x40e   : > { %p6526_p6 = pnand %p6525_p13, %p8063_p0 }
 0x40f   : > { %p6531_p8 = por %p6530_p5, %p6529_p4 }
 0x410   : > { %p6527_p10 = pneg %p6526_p6 }
 0x411   : > { %p6533_p1 = por %p6532_p11, %p6531_p8 }
 0x413   : > { %p6534_p3 = pnand %p6533_p1, %p6527_p10 }
 0x415   : > { %6537 = shalt.err (!%p6534_p3)
}
 0x416   : > { %s6591_s30 = smov 128   ;;  %s6592_s20 = smov 8  }
 0x417   : > { %5981 = dma.vmem_to_hbm [thread:$0]  (%p8063_p0), %s7994_s29, 4096, %s7992_s9, %s4786_s28, %s6591_s30, %s6591_s30, %s6592_s20  }
 0x418 PF: > { %s4814_s11 = sand.u32 1, %s6568_s24   ;;  %p8064_p7 = scmp.ne.s32.totalorder %s8052_s8, 0 }
 0x419   : > { %p8065_p9 = scmp.ge.s32.totalorder %s6580_s27, 2  ;;  %s4815_s22 = scalar_lea.sflag [#allocation5], %s4814_s11 }
 0x41b   : > { %p5995_p12 = pnand %p8065_p9, %p8064_p7 }
 0x41d   : > { %6563 = dma.done.wait (!%p5995_p12), %s4815_s22, 4096  }
 0x41e   : > { %6565 = vsyncadd (!%p5995_p12), %s4815_s22, 4294963200  ;;  %p21_p2 = scmp.ge.s32.totalorder %s6743_s13, 4   ;;  %s8066_s24 = smov %s6572_s25 }
 0x41f   : > { %s8067_s25 = smov %s6576_s26  ;;  %s8068_s26 = smov %s6759_s17 }
 0x420   : > { %s8069_s27 = smov %s6743_s13  ;;  %23 = sbr.rel (!%p21_p2) target bundleno = 6 (0x6), region = 112 }
 0x427   :  { %4820 = vsyncpa [#allocation4], 1 }
 0x428   :  { %4822 = vsyncpa [#allocation4 + $0x1], 1 }
 0x429   :  { %4823 = vsyncpa [#allocation7], 1 }
 0x42a   :  { %4824 = vsyncpa [#allocation5], 1 }
 0x42b   :  { %4826 = vsyncpa [#allocation5 + $0x1], 1 }

</bundles_post_ra>
